<compile_context>
chip_gen: v5e
topology: v5e:2x2
jax: 0.10.0
libtpu: 0.0.40
codegen_flags: <defaults>
</compile_context>

<pallas_src>
import functools

import jax
import jax.numpy as jnp
from jax.experimental import pallas as pl
from jax.experimental.pallas import tpu as pltpu

LANES = 128
MAX_TM = 2048   # rows per grid step; keeps per-step VMEM ~4-5 MB (v7x-safe)


def _round_up(x, m):
    return (x + m - 1) // m * m


def _time_encoding_kernel(t_ref, c_ref, w_ref, o_ref, *, dim, compute_dtype):
    t = t_ref[...]                         # [TM, 1]   f32
    pe2 = c_ref[0:1, :]                    # [1, 128]  pe in lanes [0,H) and [H,2H), else 0
    ph2 = c_ref[1:2, :]                    # [1, 128]  phase / phase + pi/2, else 0
    b1 = c_ref[2:3, :]                     # [1, 128]  (lanes >= hidden are 0)
    b2 = c_ref[3:4, :]                     # [1, 128]  (lanes >= dim are 0)

    # Sinusoid argument stays f32 (pe spans up to 100 -> bf16 would corrupt phase).
    # One sin covers both halves: lanes [H,2H) carry phase + pi/2, i.e. cos.
    arg = t * pe2 + ph2                    # [TM, 128]; padded lanes are exactly 0
    sc = jnp.sin(arg).astype(compute_dtype)    # sin(0)=0 in padded lanes -> exact

    w1 = w_ref[0:LANES, :]                 # [128, 128] rows [0,H) sin-half, [H,2H) cos-half
    w2 = w_ref[LANES:2 * LANES, :]         # [128, 128] (rows >= hidden are 0)

    # Linear(2H -> hidden): single MXU dot, f32 accumulation.
    h = jnp.dot(sc, w1, preferred_element_type=jnp.float32) + b1   # [TM, 128]
    # tanh-GELU in f32 (EUP slot; bf16-free so it is safe on v5e too).
    h = jax.nn.gelu(h, approximate=True).astype(compute_dtype)

    out = jnp.dot(h, w2, preferred_element_type=jnp.float32) + b2  # [TM, 128] f32
    # Store only the real `dim` columns (masked vst, but no post-kernel slice pass).
    o_ref[...] = out[:, :dim].astype(o_ref.dtype)


def pack_params(pe, phase, w1, b1, w2, b2, compute_dtype=jnp.bfloat16):
    """Pack module parameters into two lane-dense buffers (do this ONCE at init).

    consts  [8, 128]   f32          : row0 [pe | pe | 0], row1 [phase | phase+pi/2 | 0],
                                      row2 b1 (zero-padded), row3 b2 (zero-padded)
    weights [256, 128] compute_dtype: rows [0,H)  W1 sin-half, rows [H,2H) W1 cos-half,
                                      rows [128, 128+hidden) W2; everything else 0.
    """
    H = pe.shape[-1]
    hidden = w1.shape[1]
    dim = w2.shape[1]
    assert w1.shape[0] == 2 * H and w2.shape[0] == hidden
    assert 2 * H <= LANES and hidden <= LANES and dim <= LANES, (
        "this packing assumes 2*harmonics_dim, hidden and dim are all <= 128")

    pe_f = pe.reshape(-1).astype(jnp.float32)
    ph_f = phase.reshape(-1).astype(jnp.float32)

    consts = jnp.zeros((8, LANES), jnp.float32)
    consts = consts.at[0, :H].set(pe_f)
    consts = consts.at[0, H:2 * H].set(pe_f)                       # duplicated for cos lanes
    consts = consts.at[1, :H].set(ph_f)
    consts = consts.at[1, H:2 * H].set(ph_f + jnp.float32(jnp.pi / 2))  # cos(x)=sin(x+pi/2)
    consts = consts.at[2, :hidden].set(b1.reshape(-1).astype(jnp.float32))
    consts = consts.at[3, :dim].set(b2.reshape(-1).astype(jnp.float32))

    wbuf = jnp.zeros((2 * LANES, LANES), jnp.float32)
    wbuf = wbuf.at[0:H, :hidden].set(w1[:H])                       # sin half of W1
    wbuf = wbuf.at[H:2 * H, :hidden].set(w1[H:])                   # cos half of W1
    wbuf = wbuf.at[LANES:LANES + hidden, :dim].set(w2)             # W2
    wbuf = wbuf.astype(compute_dtype)

    return {"consts": consts, "weights": wbuf, "dim": dim}


def _choose_tm(B):
    """Pick rows/step so the grid has an even number of steps (>=2 when possible)."""
    Bp = _round_up(max(B, 1), 8)
    if Bp <= 8:
        return 8
    n_pairs = pl.cdiv(Bp, 2 * MAX_TM)                 # each pair of steps covers <= 2*MAX_TM rows
    return _round_up(pl.cdiv(Bp, 2 * n_pairs), 8)


def time_encoding_pis(t, packed, *, tm=None):
    """t: [B, 1] float32 batch of timesteps -> [B, dim] float32."""
    B = t.shape[0]
    consts, wbuf, dim = packed["consts"], packed["weights"], packed["dim"]

    if tm is None:
        tm = _choose_tm(B)
    grid = pl.cdiv(B, tm)                              # ragged last block handled by Pallas

    kernel = functools.partial(_time_encoding_kernel, dim=dim, compute_dtype=wbuf.dtype)

    out = pl.pallas_call(
        kernel,
        out_shape=jax.ShapeDtypeStruct((B, dim), jnp.float32),
        grid_spec=pltpu.PrefetchScalarGridSpec(
            num_scalar_prefetch=0,
            grid=(grid,),
            in_specs=[
                pl.BlockSpec((tm, 1), lambda i: (i, 0)),        # streamed t tile
                pl.BlockSpec(consts.shape, lambda i: (0, 0)),   # resident consts (one DMA)
                pl.BlockSpec(wbuf.shape, lambda i: (0, 0)),     # resident weights (one DMA)
            ],
            out_specs=pl.BlockSpec((tm, dim), lambda i: (i, 0)),
        ),
        compiler_params=pltpu.CompilerParams(
            dimension_semantics=("parallel",),   # batch axis shards across v7x's 2 TCs
        ),
    )(t, consts, wbuf)

    return out


def init_params(key, harmonics_dim, dim, hidden_dim):
    """Deterministic synthetic initialization mirroring the module's shapes."""
    k_phase, k_w1, k_b1, k_w2, k_b2 = jax.random.split(key, 5)

    pe = jnp.linspace(0.1, 100.0, harmonics_dim, dtype=jnp.float32)[None, :]   # [1, H]
    phase = jax.random.normal(k_phase, (1, harmonics_dim), dtype=jnp.float32)  # [1, H]

    in1 = 2 * harmonics_dim
    lim1 = 1.0 / jnp.sqrt(in1)
    w1 = jax.random.uniform(k_w1, (in1, hidden_dim), jnp.float32, -lim1, lim1)  # [2H, hidden]
    b1 = jax.random.uniform(k_b1, (1, hidden_dim), jnp.float32, -lim1, lim1)

    lim2 = 1.0 / jnp.sqrt(hidden_dim)
    w2 = jax.random.uniform(k_w2, (hidden_dim, dim), jnp.float32, -lim2, lim2)  # [hidden, dim]
    b2 = jax.random.uniform(k_b2, (1, dim), jnp.float32, -lim2, lim2)

    return pe, phase, w1, b1, w2, b2


def reference(t, pe, phase, w1, b1, w2, b2, compute_dtype=jnp.float32,
              approximate_gelu=False):
    """Pure-JAX forward, optionally mirroring the kernel's matmul dtype / GELU."""
    H = pe.shape[-1]
    arg = t * pe + phase
    s = jnp.sin(arg).astype(compute_dtype)
    c = jnp.cos(arg).astype(compute_dtype)
    h = (jnp.dot(s, w1[:H].astype(compute_dtype), preferred_element_type=jnp.float32)
         + jnp.dot(c, w1[H:].astype(compute_dtype), preferred_element_type=jnp.float32)
         + b1)
    h = jax.nn.gelu(h, approximate=approximate_gelu).astype(compute_dtype)
    return jnp.dot(h, w2.astype(compute_dtype), preferred_element_type=jnp.float32) + b2


if __name__ == "__main__":
    harmonics_dim = 8
    dim = 32
    hidden_dim = 64
    batch = 256          # tm auto-picks 128 -> grid of 2 steps (both v7x TCs active)

    key = jax.random.PRNGKey(0)
    k_params, k_t = jax.random.split(key)
    pe, phase, w1, b1, w2, b2 = init_params(key=k_params, harmonics_dim=harmonics_dim,
                                            dim=dim, hidden_dim=hidden_dim)
    t = jax.random.uniform(k_t, (batch, 1), dtype=jnp.float32)

    # bf16 matmuls (f32 accumulation) are MXU-native on v5e/v6e/v7x alike; only the
    # elementwise math (sinusoid, GELU) stays f32.  Use jnp.float32 here only when
    # bit-level parity with the f32 PyTorch forward is required.
    compute_dtype = jnp.bfloat16
    packed = pack_params(pe, phase, w1, b1, w2, b2, compute_dtype=compute_dtype)

    out = time_encoding_pis(t, packed)
    out = jax.block_until_ready(out)
    assert out.shape == (batch, dim)

    # Tight check against a pure-JAX reference matching the kernel's dtype / tanh-GELU.
    ref = reference(t, pe, phase, w1, b1, w2, b2,
                    compute_dtype=compute_dtype, approximate_gelu=True)
    assert jnp.allclose(out, ref, atol=1e-2, rtol=1e-2), "mismatch vs matched reference"

    # Coarser sanity check against the exact f32 / erf-GELU forward (torch semantics).
    ref_f32 = reference(t, pe, phase, w1, b1, w2, b2,
                        compute_dtype=jnp.float32, approximate_gelu=False)
    assert jnp.allclose(out, ref_f32, atol=5e-2, rtol=5e-2), "mismatch vs f32 reference"

    print("KERNEL_OK")
</pallas_src>

<mosaic_0001>
module attributes {stable_mosaic.version = 11 : i64} {
  func.func @_time_encoding_kernel(%arg0: i32, %arg1: memref<128x1xf32, #tpu.memory_space<vmem>>, %arg2: memref<8x128xf32, #tpu.memory_space<vmem>>, %arg3: memref<256x128xbf16, #tpu.memory_space<vmem>>, %arg4: memref<128x32xf32, #tpu.memory_space<vmem>>) attributes {dimension_semantics = [#tpu.dimension_semantics<parallel>], iteration_bounds = array<i64: 2>, scalar_prefetch = 0 : i64, scratch_operands = 0 : i64, tpu.core_type = #tpu.core_type<tc>, window_params = [{transform_indices = @transform_0, window_bounds = array<i64: 128, 1>}, {pipeline_mode = #tpu.pipeline_mode<synchronous>, transform_indices = @transform_1, window_bounds = array<i64: 8, 128>}, {pipeline_mode = #tpu.pipeline_mode<synchronous>, transform_indices = @transform_2, window_bounds = array<i64: 256, 128>}, {transform_indices = @transform_3, window_bounds = array<i64: 128, 32>}]} {
    %c0 = arith.constant 0 : index
    %c0_0 = arith.constant 0 : index
    %0 = vector.load %arg1[%c0, %c0_0] : memref<128x1xf32, #tpu.memory_space<vmem>>, vector<128x1xf32>
    %c0_1 = arith.constant 0 : index
    %c0_2 = arith.constant 0 : index
    %1 = vector.load %arg2[%c0_1, %c0_2] : memref<8x128xf32, #tpu.memory_space<vmem>>, vector<1x128xf32>
    %c1 = arith.constant 1 : index
    %c0_3 = arith.constant 0 : index
    %2 = vector.load %arg2[%c1, %c0_3] : memref<8x128xf32, #tpu.memory_space<vmem>>, vector<1x128xf32>
    %c2 = arith.constant 2 : index
    %c0_4 = arith.constant 0 : index
    %3 = vector.load %arg2[%c2, %c0_4] : memref<8x128xf32, #tpu.memory_space<vmem>>, vector<1x128xf32>
    %c3 = arith.constant 3 : index
    %c0_5 = arith.constant 0 : index
    %4 = vector.load %arg2[%c3, %c0_5] : memref<8x128xf32, #tpu.memory_space<vmem>>, vector<1x128xf32>
    %5 = vector.broadcast %0 : vector<128x1xf32> to vector<128x128xf32>
    %6 = vector.broadcast %1 : vector<1x128xf32> to vector<128x128xf32>
    %7 = arith.mulf %5, %6 : vector<128x128xf32>
    %8 = vector.broadcast %2 : vector<1x128xf32> to vector<128x128xf32>
    %9 = arith.addf %7, %8 : vector<128x128xf32>
    %10 = math.sin %9 : vector<128x128xf32>
    %11 = arith.truncf %10 : vector<128x128xf32> to vector<128x128xbf16>
    %c0_6 = arith.constant 0 : index
    %c0_7 = arith.constant 0 : index
    %12 = vector.load %arg3[%c0_6, %c0_7] : memref<256x128xbf16, #tpu.memory_space<vmem>>, vector<128x128xbf16>
    %c128 = arith.constant 128 : index
    %c0_8 = arith.constant 0 : index
    %13 = vector.load %arg3[%c128, %c0_8] : memref<256x128xbf16, #tpu.memory_space<vmem>>, vector<128x128xbf16>
    %cst = arith.constant dense<0.000000e+00> : vector<128x128xf32>
    %14 = tpu.matmul %11, %12, %cst {dimension_numbers = #tpu.dot_dimension_numbers<[1], [0], [0], [1], [0, 0, 1, 1], [], []>} : vector<128x128xbf16>, vector<128x128xbf16>, vector<128x128xf32> -> vector<128x128xf32>
    %15 = vector.broadcast %3 : vector<1x128xf32> to vector<128x128xf32>
    %16 = arith.addf %14, %15 : vector<128x128xf32>
    %17 = arith.mulf %16, %16 : vector<128x128xf32>
    %18 = arith.mulf %16, %17 : vector<128x128xf32>
    %cst_9 = arith.constant 4.471500e-02 : f32
    %19 = vector.broadcast %cst_9 : f32 to vector<128x128xf32>
    %20 = arith.mulf %19, %18 : vector<128x128xf32>
    %21 = arith.addf %16, %20 : vector<128x128xf32>
    %cst_10 = arith.constant 0.797884583 : f32
    %22 = vector.broadcast %cst_10 : f32 to vector<128x128xf32>
    %23 = arith.mulf %22, %21 : vector<128x128xf32>
    %24 = math.tanh %23 : vector<128x128xf32>
    %cst_11 = arith.constant 1.000000e+00 : f32
    %25 = vector.broadcast %cst_11 : f32 to vector<128x128xf32>
    %26 = arith.addf %25, %24 : vector<128x128xf32>
    %cst_12 = arith.constant 5.000000e-01 : f32
    %27 = vector.broadcast %cst_12 : f32 to vector<128x128xf32>
    %28 = arith.mulf %27, %26 : vector<128x128xf32>
    %29 = arith.mulf %16, %28 : vector<128x128xf32>
    %30 = arith.truncf %29 : vector<128x128xf32> to vector<128x128xbf16>
    %cst_13 = arith.constant dense<0.000000e+00> : vector<128x128xf32>
    %31 = tpu.matmul %30, %13, %cst_13 {dimension_numbers = #tpu.dot_dimension_numbers<[1], [0], [0], [1], [0, 0, 1, 1], [], []>} : vector<128x128xbf16>, vector<128x128xbf16>, vector<128x128xf32> -> vector<128x128xf32>
    %32 = vector.broadcast %4 : vector<1x128xf32> to vector<128x128xf32>
    %33 = arith.addf %31, %32 : vector<128x128xf32>
    %34 = vector.extract_strided_slice %33 {offsets = [0, 0], sizes = [128, 32], strides = [1, 1]} : vector<128x128xf32> to vector<128x32xf32>
    %c0_14 = arith.constant 0 : index
    %c0_15 = arith.constant 0 : index
    %35 = vector.load %arg4[%c0_14, %c0_15] : memref<128x32xf32, #tpu.memory_space<vmem>>, vector<128x32xf32>
    tpu.vector_store %arg4[%c0_14, %c0_15], %34 {strides = array<i32>} : memref<128x32xf32, #tpu.memory_space<vmem>>, vector<128x32xf32>,
    return
  }
  func.func @transform_0(%arg0: i32) -> (i32, i32) {
    %c0_i32 = arith.constant 0 : i32
    %c0_i32_0 = arith.constant 0 : i32
    return %arg0, %c0_i32 : i32, i32
  }
  func.func @transform_1(%arg0: i32) -> (i32, i32) {
    %c0_i32 = arith.constant 0 : i32
    %c0_i32_0 = arith.constant 0 : i32
    %c0_i32_1 = arith.constant 0 : i32
    return %c0_i32, %c0_i32_0 : i32, i32
  }
  func.func @transform_2(%arg0: i32) -> (i32, i32) {
    %c0_i32 = arith.constant 0 : i32
    %c0_i32_0 = arith.constant 0 : i32
    %c0_i32_1 = arith.constant 0 : i32
    return %c0_i32, %c0_i32_0 : i32, i32
  }
  func.func @transform_3(%arg0: i32) -> (i32, i32) {
    %c0_i32 = arith.constant 0 : i32
    %c0_i32_0 = arith.constant 0 : i32
    return %arg0, %c0_i32 : i32, i32
  }
}

</mosaic_0001>

<bundles_post_ra>
// kernel: tpu_custom_call.1
= control target key start
LH: loop header
LB: loop body
LE: loop exit
PB: predicated region body
PF: predicated region fallthrough
CT: control target
= control target key end

     0   :  { %s3493_s12 = smov 0   ;;  %s6297_s0 = inlined_call_operand.vmem [shape: f32[256,1], index: 0, kind: input, shape index: {}]   ;;  %s6298_s1 = inlined_call_operand.vmem [shape: f32[8,128], index: 1, kind: input, shape index: {}]   ;;  %s6299_s2 = inlined_call_operand.vmem [shape: bf16[256,128], index: 2, kind: input, shape index: {}]   ;;  %s6300_s3 = inlined_call_operand.vmem [shape: f32[256,32], index: 3, kind: output, shape index: {}]  }
   0x1 LB: > { %s3249_s13 = sadd.s32 4294967295, %s3464_s12   ;;  %p3253_p0 = scmp.ge.s32.totalorder %s3464_s12, 1  ;;  %s3464_s12 = sphi %s3493_s12, %s13_s12  }
   0x2   : > { %p138_p1 = scmp.lt.s32.totalorder %s3464_s12, 3 }
   0x4   : > { %p139_p2 = pnand %p3253_p0, %p138_p1 }
   0x6   : > { %142 = sbr.rel (%p139_p2) target bundleno = 1085 (0x43d), region = 32 }
   0xb   : > { %s3254_s14 = sshll.u32 %s3249_s13, 4  ;;  %v6301_v0 = vmov 0   ;;  %v3533_v18 = vld [vmem:[%s6298_s1] ss:$0 sm:$0xff]  ;;  %v3538_v20 = vld [vmem:[%s6298_s1 + $0x1] ss:$0 sm:$0xff] }
   0xc   : > { %3421 = vset.pattern.permute.xlu2 %v6301_v0  ;;  %3420 = vset.pattern.permute.xlu1 %v6301_v0  ;;  %p163_p3 = scmp.lt.s32.totalorder %s3254_s14, 31 }
   0xd   : > { %3419 = vset.pattern.permute.xlu0 %v6301_v0 }
   0xe   : > { %s6609_s14 = smov (!%p163_p3, %s3254_s14), 31 }
   0xf   : > { %s3255_s15 = sshll.u32 %s6609_s14, 3 }
  0x10   : > { %s3512_s18 = scalar_lea.vmem %s6297_s0, %s3255_s15  ;;  %s6240_s10 = scalar_lea.vmem %s6300_s3, %s3255_s15 }
  0x11   : > { %v184_v1 = vld [vmem:[%s3512_s18 + $0x50] sm:$0xff]  ;;  %v182_v2 = vld [vmem:[%s3512_s18 + $0x40] sm:$0xff]  ;;  %v185_v4 = vld [vmem:[%s3512_s18 + $0x58] sm:$0xff] }
  0x12   : > { %v174_v3 = vld [vmem:[%s3512_s18] sm:$0xff]  ;;  %246 = vperm.xlu2 %3421, %v184_v1   ;;  %236 = vperm.xlu0 %3419, %v182_v2   ;;  %v183_v5 = vld [vmem:[%s3512_s18 + $0x48] sm:$0xff]  ;;  %v176_v8 = vld [vmem:[%s3512_s18 + $0x10] sm:$0xff] }
  0x13   : > { %196 = vperm.xlu1 %3420, %v174_v3   ;;  %v175_v6 = vld [vmem:[%s3512_s18 + $0x8] sm:$0xff]  ;;  %v186_v7 = vld [vmem:[%s3512_s18 + $0x60] sm:$0xff]  ;;  %v177_v9 = vld [vmem:[%s3512_s18 + $0x18] sm:$0xff] }
  0x14   : > { %v179_v10 = vld [vmem:[%s3512_s18 + $0x28] sm:$0xff]  ;;  %v178_v12 = vld [vmem:[%s3512_s18 + $0x20] sm:$0xff]  ;;  %v180_v13 = vld [vmem:[%s3512_s18 + $0x30] sm:$0xff] }
  0x15   : > { %v187_v11 = vld [vmem:[%s3512_s18 + $0x68] sm:$0xff]  ;;  %v188_v14 = vld [vmem:[%s3512_s18 + $0x70] sm:$0xff]  ;;  %v189_v15 = vld [vmem:[%s3512_s18 + $0x78] sm:$0xff] }
  0x16   : > { %v181_v16 = vld [vmem:[%s3512_s18 + $0x38] sm:$0xff] }
  0x1a   : > { %251 = vperm.xlu2 %3421, %v185_v4   ;;  %241 = vperm.xlu0 %3419, %v183_v5  }
  0x1b   : > { %201 = vperm.xlu1 %3420, %v175_v6  }
  0x22   : > { %256 = vperm.xlu2 %3421, %v186_v7   ;;  %206 = vperm.xlu0 %3419, %v176_v8  }
  0x23   : > { %211 = vperm.xlu1 %3420, %v177_v9   ;;  %v6305_v9 = vmov 2102212464  }
  0x2a   : > { %221 = vperm.xlu2 %3421, %v179_v10   ;;  %261 = vperm.xlu0 %3419, %v187_v11   ;;  %v6309_v11 = vmov 920167782  }
  0x2b   : > { %216 = vperm.xlu1 %3420, %v178_v12  }
  0x32   : > { %226 = vperm.xlu2 %3421, %v180_v13   ;;  %266 = vperm.xlu0 %3419, %v188_v14  }
  0x33   : > { %271 = vperm.xlu1 %3420, %v189_v15  }
  0x3a   : > { %231 = vperm.xlu0 %3419, %v181_v16  }
  0x6c   : > { %v247_v17 = vpop.permute.xlu2 %246 }
  0x6d   : > { %v285_v21 = vmul.f32 %v3533_v18, %v247_v17  ;;  %v6307_v17 = vmov 1326507024  }
  0x6f   : > { %v3542_v22 = vadd.f32 %v3538_v20, %v285_v21 }
  0x71   : > { %6414 = vst [vmem:[#allocation2_spill] sm:$0xff] %v3542_v22  ;;  %v1861_v24 = vand.u32 2139095040, %v3542_v22 }
  0x73   : > { %v1862_v27 = vshrl.u32 %v1861_v24, 23 }
  0x74   : > { %v252_v19 = vpop.permute.xlu2 %251 }
  0x75   : > { %v286_v25 = vmul.f32 %v3533_v18, %v252_v19  ;;  %v3288_v31 = vadd.s32 4294967169, %v1862_v27 }
  0x77   : > { %v3548_v28 = vadd.f32 %v3538_v20, %v286_v25  ;;  %v1868_v37 = vadd.s32 1, %v3288_v31 }
  0x79   : > { %6415 = vst [vmem:[#allocation3_spill] sm:$0xff] %v3548_v28  ;;  %v2016_v32 = vand.u32 2139095040, %v3548_v28  ;;  %vm1869_vm0 = vcmp.gt.s32.totalorder %v1868_v37, 0 }
  0x7a   : > { %v1870_v48 = vsel %vm1869_vm0, %v1868_v37, 0 }
  0x7b   : > { %v2017_v38 = vshrl.u32 %v2016_v32, 23  ;;  %v3570_v55 = vand.u32 31, %v1870_v48  ;;  %v3583_v5 = vshrl.u32 %v1870_v48, 5 }
  0x7c   : > { %v257_v23 = vpop.permute.xlu2 %256 }
  0x7d   : > { %v287_v26 = vmul.f32 %v3533_v18, %v257_v23  ;;  %v3291_v42 = vadd.s32 4294967169, %v2017_v38  ;;  %6418 = vst [vmem:[#allocation6_spill] sm:$0xff] %v3570_v55  ;;  %v3578_v62 = vsub.s32 32, %v3570_v55  ;;  %v1884_v10 = vshll.u32 %v6305_v9, %v3570_v55 }
  0x7e   : > { %6421 = vst [vmem:[#allocation9_spill] sm:$0xff] %v3583_v5  ;;  %v1887_v16 = vshll.u32 %v6309_v11, %v3570_v55  ;;  %vm1893_vm3 = vcmp.lt.s32.totalorder %v3583_v5, 4 }
  0x7f   : > { %v3551_v29 = vadd.f32 %v3538_v20, %v287_v26  ;;  %v2023_v49 = vadd.s32 1, %v3291_v42  ;;  %6419 = vst [vmem:[#allocation7_spill] sm:$0xff] %v3578_v62  ;;  %v1885_v12 = vshrl.u32 %v6309_v11, %v3578_v62  ;;  %v1888_v19 = vshrl.u32 %v6307_v17, %v3578_v62 }
  0x81   : > { %6416 = vst [vmem:[#allocation4_spill] sm:$0xff] %v3551_v29  ;;  %v2171_v34 = vand.u32 2139095040, %v3551_v29  ;;  %vm2024_vm1 = vcmp.gt.s32.totalorder %v2023_v49, 0  ;;  %v3605_v32 = vor.u32 %v1885_v12, %v1884_v10  ;;  %v3378_v29 = vld [vmem:[%s6299_s2 + $0x30] sm:$0xff] }
  0x82   : > { %v2025_v1 = vsel %vm2024_vm1, %v2023_v49, 0 }
  0x83   : > { %v2172_v40 = vshrl.u32 %v2171_v34, 23  ;;  %v3591_v13 = vand.u32 31, %v2025_v1  ;;  %6424 = vst [vmem:[#allocation12_spill] sm:$0xff] %v3605_v32 }
  0x84   : > { %v237_v30 = vpop.permute.xlu0 %236  ;;  %v222_v33 = vpop.permute.xlu2 %221 }
  0x85   : > { %v283_v35 = vmul.f32 %v3533_v18, %v237_v30  ;;  %v197_v36 = vpop.permute.xlu1 %196  ;;  %v280_v39 = vmul.f32 %v3533_v18, %v222_v33  ;;  %v3294_v45 = vadd.s32 4294967169, %v2172_v40  ;;  %6422 = vst [vmem:[#allocation10_spill] sm:$0xff] %v3591_v13  ;;  %v3608_v33 = vsub.s32 32, %v3591_v13 }
  0x86   : > { %v275_v44 = vmul.f32 %v3533_v18, %v197_v36  ;;  %v3611_v36 = vshrl.u32 %v2025_v1, 5  ;;  %v2039_v37 = vshll.u32 %v6305_v9, %v3591_v13  ;;  %v2042_v49 = vshll.u32 %v6309_v11, %v3591_v13 }
  0x87   : > { %v3558_v41 = vadd.f32 %v3538_v20, %v283_v35  ;;  %v3561_v43 = vadd.f32 %v3538_v20, %v280_v39  ;;  %v2178_v56 = vadd.s32 1, %v3294_v45  ;;  %6425 = vst [vmem:[#allocation13_spill] sm:$0xff] %v3608_v33  ;;  %v1889_v35 = vor.u32 %v1888_v19, %v1887_v16 }
  0x88   : > { %v3567_v51 = vadd.f32 %v3538_v20, %v275_v44  ;;  %6426 = vst [vmem:[#allocation14_spill] sm:$0xff] %v3611_v36  ;;  %v2040_v48 = vshrl.u32 %v6309_v11, %v3608_v33  ;;  %vm2048_vm7 = vcmp.lt.s32.totalorder %v3611_v36, 4 }
  0x89   : > { %6417 = vst [vmem:[#allocation5_spill] sm:$0xff] %v3561_v43  ;;  %v1551_v46 = vand.u32 2139095040, %v3558_v41  ;;  %v1086_v50 = vand.u32 2139095040, %v3561_v43  ;;  %vm2179_vm2 = vcmp.gt.s32.totalorder %v2178_v56, 0  ;;  %v3656_v12 = vsel %vm1893_vm3, %v1889_v35, 1326507024 }
  0x8a   : > { %v311_v60 = vand.u32 2139095040, %v3567_v51  ;;  %v2180_v6 = vsel %vm2179_vm2, %v2178_v56, 0  ;;  %6434 = vst [vmem:[#allocation22_spill] sm:$0xff] %v3656_v12 }
  0x8b   : > { %v1552_v57 = vshrl.u32 %v1551_v46, 23  ;;  %v1087_v59 = vshrl.u32 %v1086_v50, 23  ;;  %v3598_v24 = vand.u32 31, %v2180_v6  ;;  %v2043_v50 = vshrl.u32 %v6307_v17, %v3608_v33 }
  0x8c   : > { %v242_v47 = vpop.permute.xlu0 %241  ;;  %v227_v52 = vpop.permute.xlu2 %226  ;;  %v312_v4 = vshrl.u32 %v311_v60, 23 }
  0x8d   : > { %v284_v53 = vmul.f32 %v3533_v18, %v242_v47  ;;  %v202_v54 = vpop.permute.xlu1 %201  ;;  %v281_v58 = vmul.f32 %v3533_v18, %v227_v52  ;;  %v3282_v63 = vadd.s32 4294967169, %v1552_v57  ;;  %v3273_v3 = vadd.s32 4294967169, %v1087_v59  ;;  %6423 = vst [vmem:[#allocation11_spill] sm:$0xff] %v3598_v24 }
  0x8e   : > { %v276_v8 = vmul.f32 %v3533_v18, %v202_v54  ;;  %v3258_v26 = vadd.s32 4294967169, %v312_v4  ;;  %v3616_v39 = vsub.s32 32, %v3598_v24  ;;  %v3631_v52 = vshrl.u32 %v2180_v6, 5 }
  0x8f   : > { %v3575_v61 = vadd.f32 %v3538_v20, %v284_v53  ;;  %v3581_v2 = vadd.f32 %v3538_v20, %v281_v58  ;;  %v1558_v14 = vadd.s32 1, %v3282_v63  ;;  %v1093_v25 = vadd.s32 1, %v3273_v3 }
  0x90   : > { %v3602_v30 = vadd.f32 %v3538_v20, %v276_v8  ;;  %6427 = vst [vmem:[#allocation15_spill] sm:$0xff] %v3616_v39  ;;  %v318_v40 = vadd.s32 1, %v3258_v26  ;;  %v2194_v53 = vshll.u32 %v6305_v9, %v3598_v24  ;;  %v2195_v58 = vshrl.u32 %v6309_v11, %v3616_v39 }
  0x91   : > { %6420 = vst [vmem:[#allocation8_spill] sm:$0xff] %v3581_v2  ;;  %v1706_v7 = vand.u32 2139095040, %v3575_v61  ;;  %v1241_v21 = vand.u32 2139095040, %v3581_v2  ;;  %vm1559_vm4 = vcmp.gt.s32.totalorder %v1558_v14, 0  ;;  %vm1094_vm5 = vcmp.gt.s32.totalorder %v1093_v25, 0 }
  0x92   : > { %v1560_v44 = vsel %vm1559_vm4, %v1558_v14, 0  ;;  %v466_v46 = vand.u32 2139095040, %v3602_v30  ;;  %6430 = vst [vmem:[#allocation18_spill] sm:$0xff] %v3631_v52  ;;  %v1095_v54 = vsel %vm1094_vm5, %v1093_v25, 0  ;;  %v2197_v59 = vshll.u32 %v6309_v11, %v3598_v24 }
  0x93   : > { %v1707_v27 = vshrl.u32 %v1706_v7, 23  ;;  %v1242_v38 = vshrl.u32 %v1241_v21, 23  ;;  %v2198_v60 = vshrl.u32 %v6307_v17, %v3616_v39  ;;  %v3642_v63 = vand.u32 31, %v1560_v44 }
  0x94   : > { %v207_v15 = vpop.permute.xlu0 %206  ;;  %vm319_vm6 = vcmp.gt.s32.totalorder %v318_v40, 0  ;;  %v467_v3 = vshrl.u32 %v466_v46, 23  ;;  %v3648_v6 = vsel %vm1893_vm3, %v3605_v32, 920167782  ;;  %v3650_v7 = vor.u32 %v2040_v48, %v2039_v37 }
  0x95   : > { %v212_v23 = vpop.permute.xlu1 %211  ;;  %v277_v31 = vmul.f32 %v3533_v18, %v207_v15  ;;  %v3285_v45 = vadd.s32 4294967169, %v1707_v27  ;;  %v3276_v56 = vadd.s32 4294967169, %v1242_v38  ;;  %6431 = vst [vmem:[#allocation19_spill] sm:$0xff] %v3648_v6  ;;  %v2044_v8 = vor.u32 %v2043_v50, %v2042_v49 }
  0x96   : > { %v278_v34 = vmul.f32 %v3533_v18, %v212_v23  ;;  %6432 = vst [vmem:[#allocation20_spill] sm:$0xff] %v3650_v7  ;;  %v3652_v10 = vand.u32 31, %v1095_v54  ;;  %v3659_v16 = vor.u32 %v2195_v58, %v2194_v53  ;;  %vm6402_vm8 = vcmp.lt.s32.totalorder %v3631_v52, 4 }
  0x97   : > { %v3619_v42 = vadd.f32 %v3538_v20, %v277_v31  ;;  %v1713_v1 = vadd.s32 1, %v3285_v45  ;;  %v1248_v14 = vadd.s32 1, %v3276_v56  ;;  %v3663_v19 = vsub.s32 32, %v3642_v63 }
  0x98   : > { %v3623_v47 = vadd.f32 %v3538_v20, %v278_v34  ;;  %6433 = vst [vmem:[#allocation21_spill] sm:$0xff] %v3652_v10  ;;  %v320_v21 = vsel %vm319_vm6, %v318_v40, 0  ;;  %v2199_v23 = vor.u32 %v2198_v60, %v2197_v59  ;;  %v3261_v25 = vadd.s32 4294967169, %v467_v3 }
  0x99   : > { %6428 = vst [vmem:[#allocation16_spill] sm:$0xff] %v3619_v42  ;;  %v621_v57 = vand.u32 2139095040, %v3619_v42  ;;  %vm1714_vm9 = vcmp.gt.s32.totalorder %v1713_v1, 0  ;;  %v3668_v27 = vsel %vm2048_vm7, %v3650_v7, 920167782  ;;  %v3675_v34 = vsub.s32 32, %v3652_v10 }
  0x9a   : > { %6429 = vst [vmem:[#allocation17_spill] sm:$0xff] %v3623_v47  ;;  %v776_v4 = vand.u32 2139095040, %v3623_v47  ;;  %v3672_v31 = vsel %vm2048_vm7, %v2044_v8, 1326507024  ;;  %v3677_v35 = vshrl.u32 %v1560_v44, 5  ;;  %v3679_v37 = vand.u32 31, %v320_v21 }
  0x9b   : > { %v622_v15 = vshrl.u32 %v621_v57, 23  ;;  %6435 = vst [vmem:[#allocation23_spill] sm:$0xff] %v3659_v16  ;;  %vm1249_vm10 = vcmp.gt.s32.totalorder %v1248_v14, 0  ;;  %v3684_v40 = vsel %vm6402_vm8, %v3659_v16, 920167782  ;;  %v1575_v45 = vshrl.u32 %v6309_v11, %v3663_v19 }
  0x9c   : > { %v777_v26 = vshrl.u32 %v776_v4, 23  ;;  %6436 = vst [vmem:[#allocation24_spill] sm:$0xff] %v3668_v27  ;;  %v3688_v46 = vshrl.u32 %v1095_v54, 5  ;;  %v1715_v48 = vsel %vm1714_vm9, %v1713_v1, 0  ;;  %v3692_v49 = vsel %vm6402_vm8, %v2199_v23, 1326507024  ;;  %v262_v4 = vpop.permute.xlu0 %261 }
  0x9d   : > { %6437 = vst [vmem:[#allocation25_spill] sm:$0xff] %v3672_v31  ;;  %v3264_v38 = vadd.s32 4294967169, %v622_v15  ;;  %v1578_v44 = vshrl.u32 %v6307_v17, %v3663_v19  ;;  %v473_v50 = vadd.s32 1, %v3261_v25  ;;  %v1574_v56 = vshll.u32 %v6305_v9, %v3642_v63  ;;  %v3376_v31 = vld [vmem:[%s6299_s2 + $0x20] sm:$0xff] }
  0x9e   : > { %6438 = vst [vmem:[#allocation26_spill] sm:$0xff] %v3675_v34  ;;  %v3267_v53 = vadd.s32 4294967169, %v777_v26  ;;  %v1109_v57 = vshll.u32 %v6305_v9, %v3652_v10  ;;  %v1110_v54 = vshrl.u32 %v6309_v11, %v3675_v34  ;;  %v1250_v58 = vsel %vm1249_vm10, %v1248_v14, 0 }
  0x9f   : > { %6439 = vst [vmem:[#allocation27_spill] sm:$0xff] %v3684_v40  ;;  %v1577_v59 = vshll.u32 %v6309_v11, %v3642_v63  ;;  %v3705_v60 = vsub.s32 32, %v3679_v37  ;;  %v3707_v1 = vand.u32 31, %v1715_v48  ;;  %v628_v3 = vadd.s32 1, %v3264_v38 }
  0xa0   : > { %6440 = vst [vmem:[#allocation28_spill] sm:$0xff] %v3688_v46  ;;  %v3709_v8 = vor.u32 %v1575_v45, %v1574_v56  ;;  %vm1583_vm11 = vcmp.lt.s32.totalorder %v3677_v35, 4  ;;  %v1112_v15 = vshll.u32 %v6309_v11, %v3652_v10  ;;  %v1113_v14 = vshrl.u32 %v6307_v17, %v3675_v34 }
  0xa1   : > { %6441 = vst [vmem:[#allocation29_spill] sm:$0xff] %v3692_v49  ;;  %v1579_v23 = vor.u32 %v1578_v44, %v1577_v59  ;;  %v3716_v25 = vand.u32 31, %v1250_v58  ;;  %vm474_vm12 = vcmp.gt.s32.totalorder %v473_v50, 0  ;;  %v783_v26 = vadd.s32 1, %v3267_v53  ;;  %v217_v59 = vpop.permute.xlu1 %216 }
  0xa2   : > { %v3718_v0 = vor.u32 %v1110_v54, %v1109_v57  ;;  %vm6403_vm13 = vcmp.lt.s32.totalorder %v3688_v46, 4  ;;  %v3721_v38 = vshrl.u32 %v320_v21, 5  ;;  %v288_v45 = vmul.f32 %v3533_v18, %v262_v4 }
  0xa3   : > { %6442 = vst [vmem:[#allocation30_spill] sm:$0xff] %v3716_v25  ;;  %v334_v56 = vshll.u32 %v6305_v9, %v3679_v37  ;;  %v335_v2 = vshrl.u32 %v6309_v11, %v3705_v60  ;;  %v3729_v44 = vsub.s32 32, %v3707_v1  ;;  %vm629_vm14 = vcmp.gt.s32.totalorder %v628_v3, 0 }
  0xa4   : > { %6443 = vst [vmem:[#allocation31_spill] sm:$0xff] %v3718_v0  ;;  %v1114_v53 = vor.u32 %v1113_v14, %v1112_v15  ;;  %v337_v57 = vshll.u32 %v6309_v11, %v3679_v37  ;;  %v338_v21 = vshrl.u32 %v6307_v17, %v3705_v60  ;;  %v475_v54 = vsel %vm474_vm12, %v473_v50, 0  ;;  %v3379_v17 = vld [vmem:[%s6299_s2 + $0x38] sm:$0xff] }
  0xa5   : > { %v3738_v4 = vsel %vm1583_vm11, %v3709_v8, 920167782  ;;  %v3742_v9 = vsel %vm1583_vm11, %v1579_v23, 1326507024  ;;  %v3745_v40 = vsub.s32 32, %v3716_v25  ;;  %vm784_vm15 = vcmp.gt.s32.totalorder %v783_v26, 0  ;;  %2877 = vmatpush.bf16.msra.mxu0 %v3379_v17  ;;  %3388 = vmatpush.bf16.msra.mxu2 %v3379_v17 }
  0xa6   : > { %vm343_vm0 = vcmp.lt.s32.totalorder %v3721_v38, 4  ;;  %v630_v15 = vsel %vm629_vm14, %v628_v3, 0  ;;  %v3749_v14 = vadd.f32 %v3538_v20, %v288_v45  ;;  %v279_v50 = vmul.f32 %v3533_v18, %v217_v59 }
  0xa7   : > { %6444 = vst [vmem:[#allocation32_spill] sm:$0xff] %v3745_v40  ;;  %v3758_v23 = vsel %vm6403_vm13, %v3718_v0, 920167782  ;;  %v3760_v11 = vor.u32 %v335_v2, %v334_v56  ;;  %v6447_v16 = vmov 920167782   ;;  %v3764_v3 = vand.u32 31, %v475_v54 }
  0xa8   : > { %6445 = vst [vmem:[#allocation33_spill] sm:$0xff] %v3749_v14  ;;  %v1730_v49 = vshrl.u32 %v6447_v16, %v3729_v44  ;;  %v339_v45 = vor.u32 %v338_v21, %v337_v57  ;;  %v3766_v52 = vshrl.u32 %v1715_v48, 5  ;;  %v6448_v59 = vmov 1326507024  }
  0xa9   : > { %6446 = vst [vmem:[#allocation34_spill] sm:$0xff] %v3758_v23  ;;  %v1733_v39 = vshrl.u32 %v6448_v59, %v3729_v44  ;;  %v785_v24 = vsel %vm784_vm15, %v783_v26, 0  ;;  %v6449_v2 = vmov 2102212464   ;;  %v1265_v48 = vshrl.u32 %v6447_v16, %v3745_v40  ;;  %2878 = vmatpush.bf16.msra.mxu0 %v3378_v29  ;;  %3389 = vmatpush.bf16.msra.mxu2 %v3378_v29 }
  0xaa   : > { %v1729_v56 = vshll.u32 %v6449_v2, %v3707_v1  ;;  %v1264_v23 = vshll.u32 %v6449_v2, %v3716_v25  ;;  %v3779_v57 = vand.u32 31, %v630_v15  ;;  %v1732_v26 = vshll.u32 %v6447_v16, %v3707_v1 }
  0xab   : > { %v3783_v21 = vshrl.u32 %v1250_v58, 5  ;;  %v2326_v17 = vand.u32 2139095040, %v3749_v14  ;;  %v3787_v0 = vadd.f32 %v3538_v20, %v279_v50  ;;  %v3791_v34 = vsel %vm6403_vm13, %v1114_v53, 1326507024 }
  0xac   : > { %6450 = vst [vmem:[#allocation35_spill] sm:$0xff] %v3779_v57  ;;  %v3793_v10 = vor.u32 %v1730_v49, %v1729_v56  ;;  %v3796_v43 = vsub.s32 32, %v3764_v3  ;;  %v3798_v27 = vand.u32 31, %v785_v24  ;;  %v3803_v58 = vsel %vm343_vm0, %v3760_v11, 920167782  ;;  %v3377_v49 = vld [vmem:[%s6299_s2 + $0x28] sm:$0xff] }
  0xad   : > { %6451 = vst [vmem:[#allocation36_spill] sm:$0xff] %v3783_v21  ;;  %v3807_v50 = vsel %vm343_vm0, %v339_v45, 1326507024  ;;  %v1734_v14 = vor.u32 %v1733_v39, %v1732_v26  ;;  %v3809_v46 = vshrl.u32 %v475_v54, 5  ;;  %v3814_v53 = vor.u32 %v1265_v48, %v1264_v23  ;;  %v267_v54 = vpop.permute.xlu0 %266  ;;  %2879 = vmatpush.bf16.msra.mxu0 %v3377_v49  ;;  %3390 = vmatpush.bf16.msra.mxu2 %v3377_v49 }
  0xae   : > { %6452 = vst [vmem:[#allocation37_spill] sm:$0xff] %v3787_v0  ;;  %v1267_v56 = vshll.u32 %v6447_v16, %v3716_v25  ;;  %v3821_v45 = vsub.s32 32, %v3779_v57  ;;  %vm1738_vm1 = vcmp.lt.s32.totalorder %v3766_v52, 4  ;;  %vm6395_vm2 = vcmp.lt.s32.totalorder %v3783_v21, 4  ;;  %v272_v25 = vpop.permute.xlu1 %271 }
  0xaf   : > { %6453 = vst [vmem:[#allocation38_spill] sm:$0xff] %v3791_v34  ;;  %v1268_v34 = vshrl.u32 %v6448_v59, %v3745_v40  ;;  %v2327_v29 = vshrl.u32 %v2326_v17, 23  ;;  %v931_v39 = vand.u32 2139095040, %v3787_v0  ;;  %v3829_v23 = vsel %vm1738_vm1, %v3793_v10, 920167782 }
  0xb0   : > { %6454 = vst [vmem:[#allocation39_spill] sm:$0xff] %v3793_v10  ;;  %v489_v48 = vshll.u32 %v6449_v2, %v3764_v3  ;;  %v490_v26 = vshrl.u32 %v6447_v16, %v3796_v43  ;;  %v3836_v40 = vsub.s32 32, %v3798_v27  ;;  %v3840_v17 = vsel %vm1738_vm1, %v1734_v14, 1326507024 }
  0xb1   : > { %6455 = vst [vmem:[#allocation40_spill] sm:$0xff] %v3798_v27  ;;  %v492_v0 = vshll.u32 %v6447_v16, %v3764_v3  ;;  %v493_v7 = vshrl.u32 %v6448_v59, %v3796_v43  ;;  %vm498_vm4 = vcmp.lt.s32.totalorder %v3809_v46, 4  ;;  %v1269_v36 = vor.u32 %v1268_v34, %v1267_v56  ;;  %2880 = vmatpush.bf16.msra.mxu0 %v3376_v31 }
  0xb2   : > { %6456 = vst [vmem:[#allocation41_spill] sm:$0xff] %v3814_v53  ;;  %v3853_v14 = vsel %vm6395_vm2, %v3814_v53, 920167782  ;;  %v645_v33 = vshrl.u32 %v6447_v16, %v3821_v45  ;;  %v289_v13 = vmul.f32 %v3533_v18, %v267_v54  ;;  %v3858_v28 = vshrl.u32 %v630_v15, 5  ;;  %3391 = vmatpush.bf16.msra.mxu2 %v3376_v31 }
  0xb3   : > { %6457 = vst [vmem:[#allocation42_spill] sm:$0xff] %v3821_v45  ;;  %v3297_v6 = vadd.s32 4294967169, %v2327_v29  ;;  %v932_v32 = vshrl.u32 %v931_v39, 23  ;;  %v290_v49 = vmul.f32 %v3533_v18, %v272_v25  ;;  %v3861_v12 = vor.u32 %v490_v26, %v489_v48  ;;  %v3375_v25 = vld [vmem:[%s6299_s2 + $0x18] sm:$0xff] }
  0xb4   : > { %6458 = vst [vmem:[#allocation43_spill] sm:$0xff] %v3829_v23  ;;  %v644_v34 = vshll.u32 %v6449_v2, %v3779_v57  ;;  %v648_v56 = vshrl.u32 %v6448_v59, %v3821_v45  ;;  %v494_v53 = vor.u32 %v493_v7, %v492_v0  ;;  %v647_v15 = vshll.u32 %v6447_v16, %v3779_v57 }
  0xb5   : > { %6459 = vst [vmem:[#allocation44_spill] sm:$0xff] %v3836_v40  ;;  %v3871_v54 = vshrl.u32 %v785_v24, 5  ;;  %v799_v48 = vshll.u32 %v6449_v2, %v3798_v27  ;;  %v803_v0 = vshrl.u32 %v6448_v59, %v3836_v40  ;;  %v3884_v7 = vadd.f32 %v3538_v20, %v289_v13  ;;  %2881 = vmatpush.bf16.msra.mxu0 %v3375_v25 }
  0xb6   : > { %6460 = vst [vmem:[#allocation45_spill] sm:$0xff] %v3853_v14  ;;  %v800_v14 = vshrl.u32 %v6447_v16, %v3836_v40  ;;  %v3877_v39 = vor.u32 %v645_v33, %v644_v34  ;;  %v3888_v24 = vsel %vm6395_vm2, %v1269_v36, 1326507024  ;;  %v2333_v31 = vadd.s32 1, %v3297_v6  ;;  %3392 = vmatpush.bf16.msra.mxu2 %v3375_v25 }
  0xb7   : > { %6461 = vst [vmem:[#allocation46_spill] sm:$0xff] %v3858_v28  ;;  %v3270_v26 = vadd.s32 4294967169, %v932_v32  ;;  %v3891_v5 = vadd.f32 %v3538_v20, %v290_v49  ;;  %v3896_v33 = vsel %vm498_vm4, %v3861_v12, 920167782  ;;  %v649_v34 = vor.u32 %v648_v56, %v647_v15  ;;  %v3374_v32 = vld [vmem:[%s6299_s2 + $0x10] sm:$0xff]  ;;  %v232_v15 = vpop.permute.xlu0 %231 }
  0xb8   : > { %6462 = vst [vmem:[#allocation47_spill] sm:$0xff] %v3871_v54  ;;  %v3898_v29 = vor.u32 %v800_v14, %v799_v48  ;;  %v802_v13 = vshll.u32 %v6447_v16, %v3798_v27  ;;  %v3904_v36 = vsel %vm498_vm4, %v494_v53, 1326507024  ;;  %vm653_vm5 = vcmp.lt.s32.totalorder %v3858_v28, 4 }
  0xb9   : > { %6463 = vst [vmem:[#allocation48_spill] sm:$0xff] %v3877_v39  ;;  %v6468_v6 = vand.u32 2147483647, %v3567_v51  ;;  %v3915_v14 = vsel %vm653_vm5, %v3877_v39, 920167782  ;;  %vm808_vm6 = vcmp.lt.s32.totalorder %v3871_v54, 4  ;;  %2882 = vmatpush.bf16.msra.mxu0 %v3374_v32  ;;  %v332_v62 = vshrl.u32 %v6449_v2, %v3705_v60 }
  0xba   : > { %6464 = vst [vmem:[#allocation49_spill] sm:$0xff] %v3884_v7  ;;  %v804_v56 = vor.u32 %v803_v0, %v802_v13  ;;  %v2481_v53 = vand.u32 2139095040, %v3884_v7  ;;  %vm2334_vm9 = vcmp.gt.s32.totalorder %v2333_v31, 0  ;;  %v938_v25 = vadd.s32 1, %v3270_v26  ;;  %3393 = vmatpush.bf16.msra.mxu2 %v3374_v32  ;;  %v3373_v26 = vld [vmem:[%s6299_s2 + $0x8] sm:$0xff] }
  0xbb   : > { %6465 = vst [vmem:[#allocation50_spill] sm:$0xff] %v3888_v24  ;;  %v315_v49 = vand.u32 8388607, %v6468_v6  ;;  %v2636_v48 = vand.u32 2139095040, %v3891_v5  ;;  %v3922_v24 = vsel %vm653_vm5, %v649_v34, 1326507024  ;;  %v282_v13 = vmul.f32 %v3533_v18, %v232_v15 }
  0xbc   : > { %6466 = vst [vmem:[#allocation51_spill] sm:$0xff] %v3891_v5  ;;  %v3927_v6 = vsel %vm808_vm6, %v3898_v29, 920167782  ;;  %v6362_v21 = vmov 683565275   ;;  %v2335_v55 = vsel %vm2334_vm9, %v2333_v31, 0 }
  0xbd   : > { %6467 = vst [vmem:[#allocation52_spill] sm:$0xff] %v3898_v29  ;;  %v325_v0 = vshll.u32 %v6362_v21, %v3679_v37  ;;  %v316_v5 = vor.u32 8388608, %v315_v49  ;;  %v6367_v34 = vmov 2475754826   ;;  %v2482_v22 = vshrl.u32 %v2481_v53, 23  ;;  %2883 = vmatpush.bf16.msra.mxu0 %v3373_v26 }
  0xbe   : > { %6469 = vst [vmem:[#allocation53_spill] sm:$0xff] %v3915_v14  ;;  %v326_v7 = vshrl.u32 %v6367_v34, %v3705_v60  ;;  %v328_v21 = vshll.u32 %v6367_v34, %v3679_v37  ;;  %v3943_v18 = vsel %vm808_vm6, %v804_v56, 1326507024  ;;  %vm939_vm10 = vcmp.gt.s32.totalorder %v938_v25, 0  ;;  %3394 = vmatpush.bf16.msra.mxu2 %v3373_v26 }
  0xbf   : > { %6470 = vst [vmem:[#allocation54_spill] sm:$0xff] %v3922_v24  ;;  %v2637_v32 = vshrl.u32 %v2636_v48, 23  ;;  %v6365_v15 = vmov 2131351028   ;;  %vm340_vm12 = vcmp.lt.s32.totalorder %v3721_v38, 1  ;;  %vm342_vm14 = vcmp.lt.s32.totalorder %v3721_v38, 3 }
  0xc0   : > { %6471 = vst [vmem:[#allocation55_spill] sm:$0xff] %v3927_v6  ;;  %v329_v49 = vshrl.u32 %v6365_v15, %v3705_v60  ;;  %v327_v6 = vor.u32 %v326_v7, %v325_v0  ;;  %v331_v29 = vshll.u32 %v6365_v15, %v3679_v37  ;;  %v3951_v31 = vshrl.u32 %v2335_v55, 5  ;;  %v3372_v7 = vld [vmem:[%s6299_s2] sm:$0xff] }
  0xc1   : > { %6472 = vst [vmem:[#allocation56_spill] sm:$0xff] %v3943_v18  ;;  %v3953_v53 = vand.u32 31, %v2335_v55  ;;  %v3956_v56 = vadd.f32 %v3538_v20, %v282_v13  ;;  %v3961_v48 = vshll.u32 %v316_v5, 8  ;;  %v940_v37 = vsel %vm939_vm10, %v938_v25, 0  ;;  %2884 = vmatpush.bf16.msra.mxu0 %v3372_v7 }
  0xc2   : > { %6473 = vst [vmem:[#allocation57_spill] sm:$0xff] %v3951_v31  ;;  %v3300_v0 = vadd.s32 4294967169, %v2482_v22  ;;  %v330_v15 = vor.u32 %v329_v49, %v328_v21  ;;  %v333_v34 = vor.u32 %v332_v62, %v331_v29  ;;  %v3963_v18 = vadd.s32 4294967169, %v2637_v32  ;;  %3395 = vmatpush.bf16.msra.mxu2 %v3372_v7 }
  0xc3   : > { %6474 = vst [vmem:[#allocation58_spill] sm:$0xff] %v3953_v53  ;;  %v6476_v55 = vmov 683565275   ;;  %vm341_vm15 = vcmp.lt.s32.totalorder %v3721_v38, 2  ;;  %v354_v20 = vsel %vm342_vm14, %v3760_v11, %v3807_v50  ;;  %v3982_v21 = vsub.s32 32, %v3953_v53 }
  0xc4   : > { %6475 = vst [vmem:[#allocation59_spill] sm:$0xff] %v3956_v56  ;;  %v324_v54 = vshrl.u32 %v6476_v55, %v3705_v60  ;;  %v345_v5 = vsel %vm343_vm0, %v333_v34, 2102212464  ;;  %v348_v22 = vsel %vm340_vm12, %v327_v6, %v330_v15  ;;  %v350_v62 = vsel %vm342_vm14, %v333_v34, %v3803_v58 }
  0xc5   : > { %v352_v60 = vsel %vm340_vm12, %v330_v15, %v333_v34  ;;  %6477 = vst [vmem:[#allocation60_spill] sm:$0xff] %v3982_v21  ;;  %v357_v11 = vand.u32 65535, %v3961_v48  ;;  %v358_v50 = vshrl.u32 %v3961_v48, 16  ;;  %v3989_v25 = vshll.u32 %v6449_v2, %v3953_v53 }
  0xc6   : > { %v3993_v58 = vshll.u32 %v6447_v16, %v3953_v53  ;;  %v351_v13 = vsel %vm341_vm15, %v348_v22, %v350_v62  ;;  %v355_v26 = vsel %vm341_vm15, %v352_v60, %v354_v20  ;;  %v344_v34 = vsel %vm340_vm12, %v324_v54, %v327_v6 }
  0xc7   : > { %v346_v32 = vsel %vm342_vm14, %v330_v15, %v345_v5  ;;  %v359_v49 = vand.u32 65535, %v355_v26  ;;  %v360_v7 = vshrl.u32 %v355_v26, 16  ;;  %v4003_v29 = vshrl.u32 %v940_v37, 5 }
  0xc8   : > { %v4005_v40 = vand.u32 31, %v940_v37  ;;  %v381_v53 = vand.u32 65535, %v351_v13  ;;  %v382_v27 = vshrl.u32 %v351_v13, 16  ;;  %v4007_v47 = vadd.s32 1, %v3300_v0 }
  0xc9   : > { %6478 = vst [vmem:[#allocation61_spill] sm:$0xff] %v4003_v29  ;;  %v362_v22 = vmul.u32 %v360_v7, %v357_v11  ;;  %v363_v62 = vmul.u32 %v359_v49, %v358_v50  ;;  %v6387_v20 = vand.u32 2147483647, %v3602_v30  ;;  %v4012_v54 = vsel %vm341_vm15, %v344_v34, %v346_v32 }
  0xca   : > { %v361_v6 = vmul.u32 %v359_v49, %v357_v11  ;;  %v384_v15 = vmul.u32 %v382_v27, %v357_v11  ;;  %v385_v5 = vmul.u32 %v381_v53, %v358_v50  ;;  %v364_v60 = vmul.u32 %v360_v7, %v358_v50 }
  0xcb   : > { %v365_v26 = vshll.u32 %v362_v22, 16  ;;  %v383_v29 = vmul.u32 %v381_v53, %v357_v11  ;;  %v386_v37 = vmul.u32 %v382_v27, %v358_v50  ;;  %v366_v14 = vshrl.u32 %v362_v22, 16 }
  0xcc   : > { %v367_v39 = vshll.u32 %v363_v62, 16  ;;  %v368_v13 = vshrl.u32 %v363_v62, 16  ;;  %v387_v0 = vshll.u32 %v384_v15, 16  ;;  %v388_v28 = vshrl.u32 %v384_v15, 16 }
  0xcd   : > { %vm369_vm0 = vc.u32 %v361_v6, %v365_v26  ;;  %v371_v24 = vadd.s32 %v365_v26, %v361_v6  ;;  %v470_v57 = vand.u32 8388607, %v6387_v20  ;;  %v6479_v38 = vmov 0  }
  0xce   : > { %v370_v34 = vsel %vm369_vm0, 1, %v6479_v38  ;;  %v389_v32 = vshll.u32 %v385_v5, 16  ;;  %vm391_vm9 = vc.u32 %v383_v29, %v387_v0  ;;  %v393_v49 = vadd.s32 %v387_v0, %v383_v29 }
  0xcf   : > { %v372_v45 = vadd.s32 %v370_v34, %v364_v60  ;;  %vm373_vm10 = vc.u32 %v371_v24, %v367_v39  ;;  %v392_v53 = vsel %vm391_vm9, 1, %v6479_v38  ;;  %v480_v27 = vshll.u32 %v6476_v55, %v3764_v3 }
  0xd0   : > { %v374_v11 = vsel %vm373_vm10, 1, %v6479_v38  ;;  %v394_v50 = vadd.s32 %v392_v53, %v386_v37  ;;  %vm395_vm12 = vc.u32 %v393_v49, %v389_v32  ;;  %v471_v7 = vor.u32 8388608, %v470_v57 }
  0xd1   : > { %v376_v22 = vadd.s32 %v374_v11, %v372_v45  ;;  %v396_v62 = vsel %vm395_vm12, 1, %v6479_v38  ;;  %v6480_v6 = vmov 2475754826   ;;  %v6481_v24 = vmov 2131351028  }
  0xd2   : > { %v481_v15 = vshrl.u32 %v6480_v6, %v3796_v43  ;;  %v483_v29 = vshll.u32 %v6480_v6, %v3764_v3  ;;  %v398_v39 = vadd.s32 %v396_v62, %v394_v50  ;;  %v484_v60 = vshrl.u32 %v6481_v24, %v3796_v43 }
  0xd3   : > { %v486_v26 = vshll.u32 %v6481_v24, %v3764_v3  ;;  %v487_v37 = vshrl.u32 %v6449_v2, %v3796_v43  ;;  %v377_v57 = vadd.s32 %v376_v22, %v366_v14  ;;  %v390_v45 = vshrl.u32 %v385_v5, 16 }
  0xd4   : > { %v4032_v0 = vadd.s32 %v393_v49, %v389_v32  ;;  %v482_v34 = vor.u32 %v481_v15, %v480_v27  ;;  %v399_v53 = vadd.s32 %v398_v39, %v388_v28  ;;  %v485_v11 = vor.u32 %v484_v60, %v483_v29 }
  0xd5   : > { %v488_v20 = vor.u32 %v487_v37, %v486_v26  ;;  %vm495_vm14 = vcmp.lt.s32.totalorder %v3809_v46, 1  ;;  %v4035_v50 = vadd.s32 %v377_v57, %v368_v13  ;;  %vm496_vm15 = vcmp.lt.s32.totalorder %v3809_v46, 2 }
  0xd6   : > { %vm497_vm0 = vcmp.lt.s32.totalorder %v3809_v46, 3  ;;  %v4039_v3 = vshll.u32 %v471_v7, 8  ;;  %v400_v62 = vadd.s32 %v399_v53, %v390_v45  ;;  %v503_v14 = vsel %vm495_vm14, %v482_v34, %v485_v11 }
  0xd7   : > { %v505_v28 = vsel %vm497_vm0, %v488_v20, %v3896_v33  ;;  %v509_v5 = vsel %vm497_vm0, %v3861_v12, %v3904_v36  ;;  %v4052_v13 = vshrl.u32 %v6447_v16, %v3982_v21  ;;  %v4055_v32 = vadd.s32 1, %v3963_v18 }
  0xd8   : > { %vm403_vm9 = vc.u32 %v4035_v50, %v4032_v0  ;;  %v506_v49 = vsel %vm496_vm15, %v503_v14, %v505_v28  ;;  %v401_v33 = vmul.u32 %v3961_v48, %v4012_v54  ;;  %v404_v27 = vadd.s32 1, %v400_v62 }
  0xd9   : > { %v507_v12 = vsel %vm495_vm14, %v485_v11, %v488_v20  ;;  %v512_v36 = vand.u32 65535, %v4039_v3  ;;  %v513_v18 = vshrl.u32 %v4039_v3, 16  ;;  %v536_v22 = vand.u32 65535, %v506_v49 }
  0xda   : > { %v510_v7 = vsel %vm496_vm15, %v507_v12, %v509_v5  ;;  %v537_v15 = vshrl.u32 %v506_v49, 16  ;;  %v4071_v29 = vshrl.u32 %v6448_v59, %v3982_v21  ;;  %v405_v39 = vsel %vm403_vm9, %v404_v27, %v400_v62 }
  0xdb   : > { %v514_v60 = vand.u32 65535, %v510_v7  ;;  %v515_v48 = vshrl.u32 %v510_v7, 16  ;;  %v6482_v54 = vand.u32 2139095040, %v3956_v56  ;;  %v406_v37 = vadd.s32 %v405_v39, %v401_v33 }
  0xdc   : > { %v539_v57 = vmul.u32 %v537_v15, %v512_v36  ;;  %v540_v45 = vmul.u32 %v536_v22, %v513_v18  ;;  %v4078_v53 = vsub.s32 32, %v4005_v40  ;;  %v479_v14 = vshrl.u32 %v6476_v55, %v3796_v43 }
  0xdd   : > { %v4075_v26 = vshrl.u32 %v6482_v54, 23  ;;  %v517_v28 = vmul.u32 %v515_v48, %v512_v36  ;;  %v518_v5 = vmul.u32 %v514_v60, %v513_v18  ;;  %v407_v49 = vadd.s32 536870912, %v406_v37 }
  0xde   : > { %v500_v62 = vsel %vm498_vm4, %v488_v20, 2102212464  ;;  %v538_v27 = vmul.u32 %v536_v22, %v512_v36  ;;  %v542_v12 = vshll.u32 %v539_v57, 16  ;;  %v516_v7 = vmul.u32 %v514_v60, %v512_v36 }
  0xdf   : > { %6483 = vst [vmem:[#allocation62_spill] sm:$0xff] %v4075_v26  ;;  %v519_v54 = vmul.u32 %v515_v48, %v513_v18  ;;  %v520_v56 = vshll.u32 %v517_v28, 16  ;;  %v541_v33 = vmul.u32 %v537_v15, %v513_v18  ;;  %v4084_v39 = vshrl.u32 %v407_v49, 30 }
  0xe0   : > { %v522_v21 = vshll.u32 %v518_v5, 16  ;;  %v544_v26 = vshll.u32 %v540_v45, 16  ;;  %vm546_vm10 = vc.u32 %v538_v27, %v542_v12  ;;  %v548_v23 = vadd.s32 %v542_v12, %v538_v27 }
  0xe1   : > { %vm524_vm12 = vc.u32 %v516_v7, %v520_v56  ;;  %v526_v42 = vadd.s32 %v520_v56, %v516_v7  ;;  %v547_v43 = vsel %vm546_vm10, 1, %v6479_v38  ;;  %v409_v10 = vshll.u32 %v4084_v39, 30 }
  0xe2   : > { %v499_v20 = vsel %vm495_vm14, %v479_v14, %v482_v34  ;;  %v525_v36 = vsel %vm524_vm12, 1, %v6479_v38  ;;  %v549_v22 = vadd.s32 %v547_v43, %v541_v33  ;;  %v501_v18 = vsel %vm497_vm0, %v485_v11, %v500_v62 }
  0xe3   : > { %v527_v15 = vadd.s32 %v525_v36, %v519_v54  ;;  %vm528_vm4 = vc.u32 %v526_v42, %v522_v21  ;;  %vm550_vm9 = vc.u32 %v548_v23, %v544_v26  ;;  %v4095_v56 = vshll.u32 %v6449_v2, %v4005_v40 }
  0xe4   : > { %v4097_v60 = vsub.s32 %v406_v37, %v409_v10  ;;  %v529_v48 = vsel %vm528_vm4, 1, %v6479_v38  ;;  %v551_v49 = vsel %vm550_vm9, 1, %v6479_v38  ;;  %v521_v34 = vshrl.u32 %v517_v28, 16 }
  0xe5   : > { %v531_v14 = vadd.s32 %v529_v48, %v527_v15  ;;  %v543_v27 = vshrl.u32 %v539_v57, 16  ;;  %v553_v12 = vadd.s32 %v551_v49, %v549_v22  ;;  %v502_v42 = vsel %vm496_vm15, %v499_v20, %v501_v18 }
  0xe6   : > { %vm411_vm14 = vcmp.lt.s32.totalorder %v4097_v60, 0  ;;  %v412_v11 = vsub.s32 0, %v4097_v60  ;;  %v523_v21 = vshrl.u32 %v518_v5, 16  ;;  %v545_v7 = vshrl.u32 %v540_v45, 16 }
  0xe7   : > { %v532_v62 = vadd.s32 %v531_v14, %v521_v34  ;;  %v554_v10 = vadd.s32 %v553_v12, %v543_v27  ;;  %v6396_v37 = vand.u32 2147483647, %v3558_v41  ;;  %v4108_v54 = vor.u32 %v4052_v13, %v3989_v25 }
  0xe8   : > { %v2354_v57 = vor.u32 %v4071_v29, %v3993_v58  ;;  %v4114_v28 = vshll.u32 %v6447_v16, %v4005_v40  ;;  %v413_v46 = vsel %vm411_vm14, %v412_v11, %v4097_v60  ;;  %v4119_v45 = vadd.s32 %v548_v23, %v544_v26 }
  0xe9   : > { %6484 = vst [vmem:[#allocation63_spill] sm:$0xff] %v4108_v54  ;;  %v414_v33 = vclz %v413_v46  ;;  %v4117_v5 = vadd.s32 %v532_v62, %v523_v21  ;;  %v555_v43 = vadd.s32 %v554_v10, %v545_v7  ;;  %v4123_v20 = vshrl.u32 %v6447_v16, %v4078_v53 }
  0xea   : > { %vm2489_vm15 = vcmp.gt.s32.totalorder %v4007_v47, 0  ;;  %vm2644_vm0 = vcmp.gt.s32.totalorder %v4055_v32, 0  ;;  %v556_v25 = vmul.u32 %v4039_v3, %v502_v42  ;;  %v1555_v23 = vand.u32 8388607, %v6396_v37 }
  0xeb   : > { %v3259_v13 = vadd.s32 4294967294, %v414_v33  ;;  %vm558_vm10 = vc.u32 %v4117_v5, %v4119_v45  ;;  %v559_v36 = vadd.s32 1, %v555_v43  ;;  %vm310_vm12 = vcmp.lt.s32.totalorder %v3567_v51, 0 }
  0xec   : > { %v1565_v26 = vshll.u32 %v6476_v55, %v3642_v63  ;;  %v1566_v22 = vshrl.u32 %v6480_v6, %v3663_v19  ;;  %v1568_v18 = vshll.u32 %v6480_v6, %v3642_v63  ;;  %v1569_v3 = vshrl.u32 %v6481_v24, %v3663_v19 }
  0xed   : > { %vm3260_vm4 = vcmp.lt.s32.totalorder %v3259_v13, 0  ;;  %v560_v15 = vsel %vm558_vm10, %v559_v36, %v555_v43  ;;  %v1571_v48 = vshll.u32 %v6481_v24, %v3642_v63  ;;  %v1572_v49 = vshrl.u32 %v6449_v2, %v3663_v19 }
  0xee   : > { %v402_v34 = vadd.s32 %v4032_v0, %v4035_v50  ;;  %v417_v14 = vsel %vm3260_vm4, 0, %v3259_v13  ;;  %v561_v27 = vadd.s32 %v560_v15, %v556_v25  ;;  %v4147_v12 = vor.u32 %v1569_v3, %v1568_v18 }
  0xef   : > { %vm6401_vm9 = vcmp.lt.s32.totalorder %v3951_v31, 4  ;;  %v418_v11 = vsub.s32 32, %v417_v14  ;;  %v422_v42 = vsub.s32 4294967266, %v417_v14  ;;  %v1567_v21 = vor.u32 %v1566_v22, %v1565_v26 }
  0xf0   : > { %v4150_v62 = vor.u32 %v1572_v49, %v1571_v48  ;;  %v4154_v63 = vshrl.u32 %v6448_v59, %v4078_v53  ;;  %v432_v7 = vsub.s32 4, %v4084_v39  ;;  %v562_v10 = vadd.s32 536870912, %v561_v27 }
  0xf1   : > { %v1556_v46 = vor.u32 8388608, %v1555_v23  ;;  %v6485_v0 = vand.u32 2147483647, %v3567_v51  ;;  %v419_v33 = vshll.u32 %v4097_v60, %v417_v14  ;;  %v420_v43 = vshrl.u32 %v402_v34, %v418_v11 }
  0xf2   : > { %v423_v25 = vadd.s32 127, %v422_v42  ;;  %vm1580_vm10 = vcmp.lt.s32.totalorder %v3677_v35, 1  ;;  %v4168_v13 = vsel %vm2489_vm15, %v4007_v47, 0  ;;  %v4170_v36 = vshrl.u32 %v562_v10, 30 }
  0xf3   : > { %vm4159_vm14 = vcmp.le.f32.partialorder %v6485_v0, 0.7853982  ;;  %vm1582_vm4 = vcmp.lt.s32.totalorder %v3677_v35, 3  ;;  %v1592_v23 = vsel %vm1580_vm10, %v4147_v12, %v4150_v62  ;;  %v421_v26 = vor.u32 %v420_v43, %v419_v33 }
  0xf4   : > { %v424_v60 = vshll.u32 %v423_v25, 23  ;;  %v1588_v22 = vsel %vm1580_vm10, %v1567_v21, %v4147_v12  ;;  %v1590_v47 = vsel %vm1582_vm4, %v4150_v62, %v3738_v4  ;;  %v564_v18 = vshll.u32 %v4170_v36, 30 }
  0xf5   : > { %vm1581_vm15 = vcmp.lt.s32.totalorder %v3677_v35, 2  ;;  %v1594_v3 = vsel %vm1582_vm4, %v3709_v8, %v3742_v9  ;;  %v4190_v15 = vshll.u32 %v1556_v46, 8  ;;  %v4195_v48 = vsel %vm2644_vm0, %v4055_v32, 0 }
  0xf6   : > { %v425_v49 = vor.u32 4788187, %v424_v60  ;;  %v4200_v4 = vsel %vm310_vm12, %v432_v7, %v4084_v39  ;;  %v1595_v34 = vsel %vm1581_vm15, %v1592_v23, %v1594_v3  ;;  %v428_v14 = vcvt.s32.f32 %v421_v26 }
  0xf7   : > { %v4204_v11 = vsub.s32 %v561_v27, %v564_v18  ;;  %v4208_v9 = vsel %vm1581_vm15, %v1588_v22, %v1590_v47  ;;  %v1597_v8 = vand.u32 65535, %v4190_v15  ;;  %v1598_v42 = vshrl.u32 %v4190_v15, 16 }
  0xf8   : > { %v426_v32 = vand.u32 2147483647, %v425_v49  ;;  %v1599_v10 = vand.u32 65535, %v1595_v34  ;;  %v1600_v46 = vshrl.u32 %v1595_v34, 16  ;;  %v4215_v39 = vsel %vm6401_vm9, %v4108_v54, 920167782 }
  0xf9   : > { %6488 = vst [vmem:[#allocation64_spill] sm:$0xff] %v4215_v39  ;;  %v4222_v27 = vsel %vm6401_vm9, %v2354_v57, 1326507024  ;;  %vm566_vm0 = vcmp.lt.s32.totalorder %v4204_v11, 0  ;;  %v567_v7 = vsub.s32 0, %v4204_v11  ;;  %v4227_v0 = vshrl.u32 %v4168_v13, 5 }
  0xfa   : > { %6489 = vst [vmem:[#allocation65_spill] sm:$0xff] %v4222_v27  ;;  %v429_v33 = vmul.f32 %v428_v14, %v426_v32  ;;  %v1602_v43 = vmul.u32 %v1600_v46, %v1597_v8  ;;  %v4229_v25 = vmul.u32 %v1599_v10, %v1598_v42  ;;  %v435_v23 = vsel %vm4159_vm14, 0, %v4200_v4 }
  0xfb   : > { %6490 = vst [vmem:[#allocation66_spill] sm:$0xff] %v4227_v0  ;;  %v568_v58 = vsel %vm566_vm0, %v567_v7, %v4204_v11  ;;  %v1564_v29 = vshrl.u32 %v6476_v55, %v3663_v19  ;;  %v1622_v57 = vshrl.u32 %v4208_v9, 16  ;;  %v1601_v22 = vmul.u32 %v1599_v10, %v1597_v8 }
  0xfc   : > { %v430_v26 = vxor.u32 2147483648, %v429_v33  ;;  %v569_v60 = vclz %v568_v58  ;;  %v1605_v47 = vshll.u32 %v1602_v43, 16  ;;  %v557_v18 = vadd.s32 %v4119_v45, %v4117_v5 }
  0xfd   : > { %v1584_v3 = vsel %vm1580_vm10, %v1564_v29, %v1567_v21  ;;  %v1604_v49 = vmul.u32 %v1600_v46, %v1598_v42  ;;  %v1621_v4 = vand.u32 65535, %v4208_v9  ;;  %v1607_v19 = vshll.u32 %v4229_v25, 16 }
  0xfe   : > { %v431_v34 = vsel %vm310_vm12, %v430_v26, %v429_v33  ;;  %v3262_v14 = vadd.s32 4294967294, %v569_v60  ;;  %vm1609_vm0 = vc.u32 %v1601_v22, %v1605_v47  ;;  %v1611_v45 = vadd.s32 %v1605_v47, %v1601_v22 }
  0xff   : > { %v4249_v32 = vsel %vm4159_vm14, %v3567_v51, %v431_v34  ;;  %v1610_v5 = vsel %vm1609_vm0, 1, %v6479_v38  ;;  %v1624_v10 = vmul.u32 %v1622_v57, %v1597_v8  ;;  %vm465_vm10 = vcmp.lt.s32.totalorder %v3602_v30, 0 }
 0x100   : > { %v4254_v21 = vmul.f32 %v4249_v32, %v4249_v32  ;;  %vm3263_vm12 = vcmp.lt.s32.totalorder %v3262_v14, 0  ;;  %v1585_v9 = vsel %vm1583_vm11, %v4150_v62, 2102212464  ;;  %v1612_v46 = vadd.s32 %v1610_v5, %v1604_v49 }
 0x101   : > { %v572_v7 = vsel %vm3263_vm12, 0, %v3262_v14  ;;  %vm1613_vm2 = vc.u32 %v1611_v45, %v1607_v19  ;;  %v1625_v50 = vmul.u32 %v1621_v4, %v1598_v42  ;;  %v1627_v33 = vshll.u32 %v1624_v10, 16 }
 0x102   : > { %v437_v58 = vmul.f32 -0.001358992, %v4254_v21  ;;  %v444_v29 = vmul.f32 -0.00019511016, %v4254_v21  ;;  %v573_v26 = vsub.s32 32, %v572_v7  ;;  %v587_v60 = vsub.s32 4, %v4170_v36 }
 0x103   : > { %v574_v22 = vshll.u32 %v4204_v11, %v572_v7  ;;  %v577_v47 = vsub.s32 4294967266, %v572_v7  ;;  %v1614_v34 = vsel %vm1613_vm2, 1, %v6479_v38  ;;  %v1623_v37 = vmul.u32 %v1621_v4, %v1597_v8 }
 0x104   : > { %v438_v39 = vadd.f32 0.041655596, %v437_v58  ;;  %v445_v62 = vadd.f32 0.008332121, %v444_v29  ;;  %v575_v49 = vshrl.u32 %v557_v18, %v573_v26  ;;  %v1616_v14 = vadd.s32 %v1614_v34, %v1612_v46 }
 0x105   : > { %v578_v19 = vadd.s32 127, %v577_v47  ;;  %v1629_v5 = vshll.u32 %v1625_v50, 16  ;;  %vm1631_vm11 = vc.u32 %v1623_v37, %v1627_v33  ;;  %v1633_v45 = vadd.s32 %v1627_v33, %v1623_v37 }
 0x106   : > { %v446_v54 = vmul.f32 %v445_v62, %v4254_v21  ;;  %v1586_v27 = vsel %vm1582_vm4, %v4147_v12, %v1585_v9  ;;  %v1606_v31 = vshrl.u32 %v1602_v43, 16  ;;  %v1626_v11 = vmul.u32 %v1622_v57, %v1598_v42 }
 0x107   : > { %v576_v7 = vor.u32 %v575_v49, %v574_v22  ;;  %v579_v0 = vshll.u32 %v578_v19, 23  ;;  %v1632_v8 = vsel %vm1631_vm11, 1, %v6479_v38  ;;  %vm1635_vm2 = vc.u32 %v1633_v45, %v1629_v5 }
 0x108   : > { %v439_v18 = vmul.f32 %v438_v39, %v4254_v21  ;;  %v447_v4 = vadd.f32 -0.16666654, %v446_v54  ;;  %v6491_v46 = vand.u32 2147483647, %v3602_v30  ;;  %v1617_v33 = vadd.s32 %v1616_v14, %v1606_v31 }
 0x109   : > { %v580_v58 = vor.u32 4788187, %v579_v0  ;;  %v588_v12 = vsel %vm465_vm10, %v587_v60, %v4170_v36  ;;  %v1634_v42 = vadd.s32 %v1632_v8, %v1626_v11  ;;  %v1636_v43 = vsel %vm1635_vm2, 1, %v6479_v38 }
 0x10a   : > { %vm4273_vm14 = vcmp.le.f32.partialorder %v6491_v46, 0.7853982  ;;  %v448_v57 = vmul.f32 %v447_v4, %v4254_v21  ;;  %v452_v9 = vadd.s32 3, %v435_v23  ;;  %v1587_v54 = vsel %vm1581_vm15, %v1584_v3, %v1586_v27 }
 0x10b   : > { %v1608_v39 = vshrl.u32 %v4229_v25, 16  ;;  %v581_v29 = vand.u32 2147483647, %v580_v58  ;;  %v583_v26 = vcvt.s32.f32 %v576_v7  ;;  %v1628_v22 = vshrl.u32 %v1624_v10, 16 }
 0x10c   : > { %v1638_v31 = vadd.s32 %v1636_v43, %v1634_v42  ;;  %v440_v0 = vadd.f32 -0.4999988, %v439_v18  ;;  %v590_v47 = vsel %vm4273_vm14, 0, %v588_v12  ;;  %v1703_v60 = vand.u32 2147483647, %v3575_v61 }
 0x10d   : > { %v4287_v36 = vadd.s32 %v1617_v33, %v1608_v39  ;;  %v449_v34 = vadd.f32 1.0, %v448_v57  ;;  %v584_v62 = vmul.f32 %v583_v26, %v581_v29  ;;  %v1630_v23 = vshrl.u32 %v1625_v50, 16 }
 0x10e   : > { %v1639_v49 = vadd.s32 %v1638_v31, %v1628_v22  ;;  %v4292_v35 = vor.u32 %v4123_v20, %v4095_v56  ;;  %v4295_v27 = vand.u32 31, %v4168_v13  ;;  %v4297_v25 = vand.u32 3, %v452_v9 }
 0x10f   : > { %v4299_v3 = vadd.s32 %v1633_v45, %v1629_v5  ;;  %v585_v10 = vxor.u32 2147483648, %v584_v62  ;;  %v607_v14 = vadd.s32 3, %v590_v47  ;;  %v1641_v11 = vmul.u32 %v4190_v15, %v1587_v54 }
 0x110   : > { %v1640_v19 = vadd.s32 %v1639_v49, %v1630_v23  ;;  %v441_v7 = vmul.f32 %v440_v0, %v4254_v21  ;;  %v1710_v56 = vand.u32 8388607, %v1703_v60  ;;  %v1724_v20 = vshrl.u32 %v6481_v24, %v3729_v44  ;;  %v6494_v0 = vld [vmem:[#allocation39_spill] sm:$0xff] }
 0x111   : > { %vm1643_vm4 = vc.u32 %v4287_v36, %v4299_v3  ;;  %v450_v13 = vmul.f32 %v449_v34, %v4249_v32  ;;  %v586_v50 = vsel %vm465_vm10, %v585_v10, %v584_v62  ;;  %v1727_v15 = vshrl.u32 %v6449_v2, %v3729_v44 }
 0x112   : > { %v1644_v5 = vadd.s32 1, %v1640_v19  ;;  %v4317_v21 = vsel %vm4273_vm14, %v3602_v30, %v586_v50  ;;  %v1721_v45 = vshrl.u32 %v6480_v6, %v3729_v44  ;;  %v1723_v8 = vshll.u32 %v6480_v6, %v3707_v1 }
 0x113   : > { %v1726_v32 = vshll.u32 %v6481_v24, %v3707_v1  ;;  %vm455_vm15 = vcmp.eq.s32.totalorder %v4297_v25, 0  ;;  %v591_v18 = vmul.f32 %v4317_v21, %v4317_v21  ;;  %v1720_v46 = vshll.u32 %v6476_v55, %v3707_v1 }
 0x114   : > { %v1645_v4 = vsel %vm1643_vm4, %v1644_v5, %v1640_v19  ;;  %v1711_v33 = vor.u32 8388608, %v1710_v56  ;;  %v4330_v58 = vor.u32 %v1724_v20, %v1723_v8  ;;  %v442_v42 = vadd.f32 1.0, %v441_v7 }
 0x115   : > { %v1646_v37 = vadd.s32 %v1645_v4, %v1641_v11  ;;  %v4332_v12 = vor.u32 %v1727_v15, %v1726_v32  ;;  %v592_v43 = vmul.f32 -0.001358992, %v591_v18  ;;  %v599_v57 = vmul.f32 -0.00019511016, %v591_v18  ;;  %v6495_v11 = vld [vmem:[#allocation43_spill] sm:$0xff] }
 0x116   : > { %v4334_v9 = vand.u32 3, %v607_v14  ;;  %vm454_vm0 = vcmp.lt.s32.totalorder %v4297_v25, 2  ;;  %v456_v54 = vxor.u32 2147483648, %v450_v13  ;;  %v1722_v29 = vor.u32 %v1721_v45, %v1720_v46 }
 0x117   : > { %v1647_v39 = vadd.s32 536870912, %v1646_v37  ;;  %vm1735_vm10 = vcmp.lt.s32.totalorder %v3766_v52, 1  ;;  %v593_v26 = vadd.f32 0.041655596, %v592_v43  ;;  %v600_v1 = vadd.f32 0.008332121, %v599_v57 }
 0x118   : > { %vm1736_vm12 = vcmp.lt.s32.totalorder %v3766_v52, 2  ;;  %vm1737_vm11 = vcmp.lt.s32.totalorder %v3766_v52, 3  ;;  %v1747_v31 = vsel %vm1735_vm10, %v4330_v58, %v4332_v12  ;;  %v4350_v34 = vshll.u32 %v1711_v33, 8 }
 0x119   : > { %v4340_v22 = vshrl.u32 %v1647_v39, 30  ;;  %v1749_v47 = vsel %vm1737_vm11, %v6494_v0, %v3840_v17  ;;  %vm451_vm2 = vweird.f32 %v3567_v51  ;;  %vm458_vm14 = vcmp.eq.s32.totalorder %v4297_v25, 2 }
 0x11a   : > { %v594_v62 = vmul.f32 %v593_v26, %v591_v18  ;;  %v601_v23 = vmul.f32 %v600_v1, %v591_v18  ;;  %v1750_v49 = vsel %vm1736_vm12, %v1747_v31, %v1749_v47  ;;  %v459_v10 = vxor.u32 2147483648, %v442_v42 }
 0x11b   : > { %v1649_v14 = vshll.u32 %v4340_v22, 30  ;;  %v1743_v19 = vsel %vm1735_vm10, %v1722_v29, %v4330_v58  ;;  %v1745_v17 = vsel %vm1737_vm11, %v4332_v12, %v6495_v11  ;;  %vm613_vm4 = vcmp.eq.s32.totalorder %v4334_v9, 2 }
 0x11c   : > { %v595_v7 = vadd.f32 -0.4999988, %v594_v62  ;;  %v602_v56 = vadd.f32 -0.16666654, %v601_v23  ;;  %v1754_v20 = vand.u32 65535, %v1750_v49  ;;  %v1755_v50 = vshrl.u32 %v1750_v49, 16 }
 0x11d   : > { %v457_v5 = vsel %vm455_vm15, %v442_v42, %v456_v54  ;;  %vm610_vm9 = vcmp.eq.s32.totalorder %v4334_v9, 0  ;;  %v4368_v15 = vsub.s32 %v1646_v37, %v1649_v14  ;;  %v1719_v45 = vshrl.u32 %v6476_v55, %v3729_v44 }
 0x11e   : > { %v1752_v8 = vand.u32 65535, %v4350_v34  ;;  %v596_v32 = vmul.f32 %v595_v7, %v591_v18  ;;  %v603_v4 = vmul.f32 %v602_v56, %v591_v18  ;;  %vm609_vm8 = vcmp.lt.s32.totalorder %v4334_v9, 2 }
 0x11f   : > { %v1746_v46 = vsel %vm1736_vm12, %v1743_v19, %v1745_v17  ;;  %v1753_v33 = vshrl.u32 %v4350_v34, 16  ;;  %v460_v42 = vsel %vm458_vm14, %v459_v10, %v450_v13  ;;  %vm606_vm15 = vweird.f32 %v3602_v30 }
 0x120   : > { %vm1651_vm13 = vcmp.lt.s32.totalorder %v4368_v15, 0  ;;  %v1652_v44 = vsub.s32 0, %v4368_v15  ;;  %v1757_v37 = vmul.u32 %v1755_v50, %v1752_v8  ;;  %v461_v18 = vsel %vm454_vm0, %v457_v5, %v460_v42 }
 0x121   : > { %v597_v43 = vadd.f32 1.0, %v596_v32  ;;  %v604_v57 = vadd.f32 1.0, %v603_v4  ;;  %v4384_v54 = vmul.u32 %v1754_v20, %v1753_v33  ;;  %v1776_v1 = vand.u32 65535, %v1746_v46 }
 0x122   : > { %v1653_v39 = vsel %vm1651_vm13, %v1652_v44, %v4368_v15  ;;  %v1760_v26 = vshll.u32 %v1757_v37, 16  ;;  %v1777_v31 = vshrl.u32 %v1746_v46, 16  ;;  %v1756_v62 = vmul.u32 %v1754_v20, %v1752_v8 }
 0x123   : > { %v605_v13 = vmul.f32 %v604_v57, %v4317_v21  ;;  %v614_v0 = vxor.u32 2147483648, %v597_v43  ;;  %v1654_v47 = vclz %v1653_v39  ;;  %v462_v23 = vsel %vm451_vm2, nan, %v461_v18 }
 0x124   : > { %v1642_v25 = vadd.s32 %v4299_v3, %v4287_v36  ;;  %v1739_v49 = vsel %vm1735_vm10, %v1719_v45, %v1722_v29  ;;  %v1759_v10 = vmul.u32 %v1755_v50, %v1753_v33  ;;  %v1762_v11 = vshll.u32 %v4384_v54, 16 }
 0x125   : > { %v611_v14 = vxor.u32 2147483648, %v605_v13  ;;  %v3283_v19 = vadd.s32 4294967294, %v1654_v47  ;;  %vm1764_vm13 = vc.u32 %v1756_v62, %v1760_v26  ;;  %v615_v21 = vsel %vm613_vm4, %v614_v0, %v605_v13 }
 0x126   : > { %v1765_v17 = vsel %vm1764_vm13, 1, %v6479_v38  ;;  %v1766_v7 = vadd.s32 %v1760_v26, %v1756_v62  ;;  %v1779_v51 = vmul.u32 %v1777_v31, %v1752_v8  ;;  %v1780_v3 = vmul.u32 %v1776_v1, %v1753_v33 }
 0x127   : > { %v612_v56 = vsel %vm610_vm9, %v597_v43, %v611_v14  ;;  %vm3284_vm0 = vcmp.lt.s32.totalorder %v3283_v19, 0  ;;  %v1767_v36 = vadd.s32 %v1765_v17, %v1759_v10  ;;  %v1740_v4 = vsel %vm1738_vm1, %v4332_v12, 2102212464 }
 0x128   : > { %v616_v29 = vsel %vm609_vm8, %v612_v56, %v615_v21  ;;  %v1657_v20 = vsel %vm3284_vm0, 0, %v3283_v19  ;;  %vm1768_vm10 = vc.u32 %v1766_v7, %v1762_v11  ;;  %v1782_v50 = vshll.u32 %v1779_v51, 16 }
 0x129   : > { %v617_v5 = vsel %vm606_vm15, nan, %v616_v29  ;;  %v1658_v45 = vsub.s32 32, %v1657_v20  ;;  %v1662_v32 = vsub.s32 4294967266, %v1657_v20  ;;  %v1761_v42 = vshrl.u32 %v1757_v37, 16  ;;  %v6498_v29 = vld [vmem:[#allocation42_spill] sm:$0xff] }
 0x12a   : > { %v2788_v46 = vpack.c.bf16 %v617_v5, %v462_v23  ;;  %v1769_v44 = vsel %vm1768_vm10, 1, %v6479_v38  ;;  %v1778_v18 = vmul.u32 %v1776_v1, %v1752_v8  ;;  %v1659_v9 = vshll.u32 %v4368_v15, %v1657_v20  ;;  %v6496_v15 = vld [vmem:[#allocation16_spill] sm:$0xff]  ;;  %v6499_v5 = vld [vmem:[#allocation35_spill] sm:$0xff] }
 0x12b   : > { %v1660_v43 = vshrl.u32 %v1642_v25, %v1658_v45  ;;  %v1663_v57 = vadd.s32 127, %v1662_v32  ;;  %v1771_v39 = vadd.s32 %v1769_v44, %v1767_v36  ;;  %v1781_v26 = vmul.u32 %v1777_v31, %v1753_v33 }
 0x12c   : > { %2885 = vmatmul.bf16.vlgmr.msra.gmra.mxu0 %v2788_v46  ;;  %v1784_v30 = vshll.u32 %v1780_v3, 16  ;;  %vm1786_vm8 = vc.u32 %v1778_v18, %v1782_v50  ;;  %v1788_v13 = vadd.s32 %v1782_v50, %v1778_v18  ;;  %v1741_v37 = vsel %vm1737_vm11, %v4330_v58, %v1740_v4 }
 0x12d   : > { %v1661_v0 = vor.u32 %v1660_v43, %v1659_v9  ;;  %v1664_v47 = vshll.u32 %v1663_v57, 23  ;;  %v1772_v62 = vadd.s32 %v1771_v39, %v1761_v42  ;;  %v1787_v12 = vsel %vm1786_vm8, 1, %v6479_v38 }
 0x12e   : > { %v1789_v8 = vadd.s32 %v1787_v12, %v1781_v26  ;;  %vm1790_vm1 = vc.u32 %v1788_v13, %v1784_v30  ;;  %v618_v1 = vand.u32 2147483647, %v6496_v15  ;;  %v959_v23 = vor.u32 %v4154_v63, %v4114_v28  ;;  %v6505_v12 = vld [vmem:[#allocation48_spill] sm:$0xff] }
 0x12f   : > { %v1665_v33 = vor.u32 4788187, %v1664_v47  ;;  %v1763_v31 = vshrl.u32 %v4384_v54, 16  ;;  %v1791_v25 = vsel %vm1790_vm1, 1, %v6479_v38  ;;  %v4419_v10 = vshrl.u32 %v4195_v48, 5 }
 0x130   : > { %v1783_v14 = vshrl.u32 %v1779_v51, 16  ;;  %v1793_v19 = vadd.s32 %v1791_v25, %v1789_v8  ;;  %v625_v58 = vand.u32 8388607, %v618_v1  ;;  %v1668_v21 = vcvt.s32.f32 %v1661_v0 }
 0x131   : > { %6497 = vst [vmem:[#allocation39_spill] sm:$0xff] %v4419_v10  ;;  %v1666_v11 = vand.u32 2147483647, %v1665_v33  ;;  %v1742_v17 = vsel %vm1736_vm12, %v1739_v49, %v1741_v37  ;;  %v4425_v7 = vadd.s32 %v1772_v62, %v1763_v31  ;;  %v1785_v56 = vshrl.u32 %v1780_v3, 16  ;;  %v6504_v62 = vld [vmem:[#allocation54_spill] sm:$0xff] }
 0x132   : > { %v4427_v36 = vadd.s32 %v1788_v13, %v1784_v30  ;;  %v1794_v54 = vadd.s32 %v1793_v19, %v1783_v14  ;;  %v636_v20 = vshrl.u32 %v6480_v6, %v6498_v29  ;;  %v626_v51 = vor.u32 8388608, %v625_v58  ;;  %v6503_v13 = vld [vmem:[#allocation46_spill] sm:$0xff]  ;;  %v6506_v14 = vld [vmem:[#allocation53_spill] sm:$0xff] }
 0x133   : > { %v1669_v50 = vmul.f32 %v1668_v21, %v1666_v11  ;;  %v635_v45 = vshll.u32 %v6476_v55, %v6499_v5  ;;  %v639_v32 = vshrl.u32 %v6481_v24, %v6498_v29  ;;  %v638_v52 = vshll.u32 %v6480_v6, %v6499_v5 }
 0x134   : > { %v1795_v4 = vadd.s32 %v1794_v54, %v1785_v56  ;;  %v641_v49 = vshll.u32 %v6481_v24, %v6499_v5  ;;  %v642_v3 = vshrl.u32 %v6449_v2, %v6498_v29  ;;  %vm1550_vm9 = vcmp.lt.s32.totalorder %v3558_v41, 0 }
 0x135   : > { %v1670_v46 = vxor.u32 2147483648, %v1669_v50  ;;  %v1672_v42 = vsub.s32 4, %v4340_v22  ;;  %vm1798_vm12 = vc.u32 %v4425_v7, %v4427_v36  ;;  %v637_v18 = vor.u32 %v636_v20, %v635_v45 }
 0x136   : > { %v1799_v44 = vadd.s32 1, %v1795_v4  ;;  %v640_v9 = vor.u32 %v639_v32, %v638_v52  ;;  %v643_v43 = vor.u32 %v642_v3, %v641_v49  ;;  %v6500_v57 = vand.u32 2147483647, %v3558_v41 }
 0x137   : > { %v1671_v26 = vsel %vm1550_vm9, %v1670_v46, %v1669_v50  ;;  %v1796_v30 = vmul.u32 %v4350_v34, %v1742_v17  ;;  %vm652_vm2 = vcmp.lt.s32.totalorder %v6503_v13, 3  ;;  %v4464_v8 = vshll.u32 %v626_v51, 8 }
 0x138   : > { %vm4447_vm11 = vcmp.le.f32.partialorder %v6500_v57, 0.7853982  ;;  %v1800_v47 = vsel %vm1798_vm12, %v1799_v44, %v1795_v4  ;;  %v664_v37 = vsel %vm652_vm2, %v6505_v12, %v6504_v62  ;;  %v1673_v33 = vsel %vm1550_vm9, %v1672_v42, %v4340_v22 }
 0x139   : > { %v4458_v0 = vsel %vm4447_vm11, %v3558_v41, %v1671_v26  ;;  %v1801_v31 = vadd.s32 %v1800_v47, %v1796_v30  ;;  %vm650_vm14 = vcmp.lt.s32.totalorder %v6503_v13, 1  ;;  %vm651_vm4 = vcmp.lt.s32.totalorder %v6503_v13, 2 }
 0x13a   : > { %v4471_v34 = vmul.f32 %v4458_v0, %v4458_v0  ;;  %v658_v25 = vsel %vm650_vm14, %v637_v18, %v640_v9  ;;  %v660_v19 = vsel %vm652_vm2, %v643_v43, %v6506_v14  ;;  %v662_v58 = vsel %vm650_vm14, %v640_v9, %v643_v43 }
 0x13b   : > { %v1802_v21 = vadd.s32 536870912, %v1801_v31  ;;  %v665_v17 = vsel %vm651_vm4, %v662_v58, %v664_v37  ;;  %v667_v56 = vand.u32 65535, %v4464_v8  ;;  %v4488_v54 = vshrl.u32 %v4464_v8, 16 }
 0x13c   : > { %v1677_v22 = vmul.f32 -0.001358992, %v4471_v34  ;;  %v1684_v11 = vmul.f32 -0.00019511016, %v4471_v34  ;;  %v669_v20 = vand.u32 65535, %v665_v17  ;;  %v670_v50 = vshrl.u32 %v665_v17, 16 }
 0x13d   : > { %v1803_v5 = vshrl.u32 %v1802_v21, 30  ;;  %v634_v45 = vshrl.u32 %v6476_v55, %v6498_v29  ;;  %v655_v32 = vsel %vm653_vm5, %v643_v43, 2102212464  ;;  %v661_v52 = vsel %vm651_vm4, %v658_v25, %v660_v19 }
 0x13e   : > { %v1685_v51 = vadd.f32 0.008332121, %v1684_v11  ;;  %v1678_v4 = vadd.f32 0.041655596, %v1677_v22  ;;  %v672_v49 = vmul.u32 %v670_v50, %v667_v56  ;;  %v4497_v3 = vmul.u32 %v669_v20, %v4488_v54 }
 0x13f   : > { %v4500_v46 = vsub.s32 32, %v4295_v27  ;;  %v4503_v42 = vand.u32 31, %v4195_v48  ;;  %v1804_v29 = vshll.u32 %v1803_v5, 30  ;;  %v1675_v43 = vsel %vm4447_vm11, 0, %v1673_v33 }
 0x140   : > { %v1686_v44 = vmul.f32 %v1685_v51, %v4471_v34  ;;  %v654_v57 = vsel %vm650_vm14, %v634_v45, %v637_v18  ;;  %v671_v26 = vmul.u32 %v669_v20, %v667_v56  ;;  %v675_v30 = vshll.u32 %v672_v49, 16 }
 0x141   : > { %6507 = vst [vmem:[#allocation43_spill] sm:$0xff] %v4503_v42  ;;  %v1805_v47 = vsub.s32 %v1801_v31, %v1804_v29  ;;  %v656_v62 = vsel %vm652_vm2, %v640_v9, %v655_v32  ;;  %v674_v12 = vmul.u32 %v670_v50, %v4488_v54  ;;  %v692_v37 = vshrl.u32 %v661_v52, 16 }
 0x142   : > { %v1679_v48 = vmul.f32 %v1678_v4, %v4471_v34  ;;  %v677_v25 = vshll.u32 %v4497_v3, 16  ;;  %vm679_vm5 = vc.u32 %v671_v26, %v675_v30  ;;  %v681_v14 = vadd.s32 %v675_v30, %v671_v26 }
 0x143   : > { %v1687_v39 = vadd.f32 -0.16666654, %v1686_v44  ;;  %vm1806_vm15 = vcmp.lt.s32.totalorder %v1805_v47, 0  ;;  %v1807_v33 = vsub.s32 0, %v1805_v47  ;;  %v1827_v19 = vsub.s32 4, %v1803_v5 }
 0x144   : > { %v4517_v18 = vshll.u32 %v6449_v2, %v4295_v27  ;;  %v1692_v31 = vadd.s32 3, %v1675_v43  ;;  %v680_v9 = vsel %vm679_vm5, 1, %v6479_v38  ;;  %vm683_vm13 = vc.u32 %v681_v14, %v677_v25 }
 0x145   : > { %v1808_v58 = vsel %vm1806_vm15, %v1807_v33, %v1805_v47  ;;  %v682_v22 = vadd.s32 %v680_v9, %v674_v12  ;;  %v691_v11 = vand.u32 65535, %v661_v52  ;;  %v694_v21 = vmul.u32 %v692_v37, %v667_v56 }
 0x146   : > { %vm1705_vm0 = vcmp.lt.s32.totalorder %v3575_v61, 0  ;;  %v1809_v17 = vclz %v1808_v58  ;;  %v4523_v20 = vsel %vm651_vm4, %v654_v57, %v656_v62  ;;  %v684_v50 = vsel %vm683_vm13, 1, %v6479_v38 }
 0x147   : > { %v1680_v51 = vadd.f32 -0.4999988, %v1679_v48  ;;  %v1688_v45 = vmul.f32 %v1687_v39, %v4471_v34  ;;  %vm4529_vm10 = vcmp.le.f32.partialorder %v1703_v60, 0.7853982  ;;  %v4535_v4 = vsel %vm1705_vm0, %v1827_v19, %v1803_v5 }
 0x148   : > { %v4537_v52 = vand.u32 3, %v1692_v31  ;;  %v1797_v13 = vadd.s32 %v4427_v36, %v4425_v7  ;;  %v3286_v44 = vadd.s32 4294967294, %v1809_v17  ;;  %v686_v29 = vadd.s32 %v684_v50, %v682_v22  ;;  %v6510_v31 = vld [vmem:[#allocation17_spill] sm:$0xff] }
 0x149   : > { %v693_v43 = vmul.u32 %v691_v11, %v667_v56  ;;  %v695_v57 = vmul.u32 %v691_v11, %v4488_v54  ;;  %v697_v26 = vshll.u32 %v694_v21, 16  ;;  %v711_v60 = vmul.u32 %v4464_v8, %v4523_v20 }
 0x14a   : > { %vm3287_vm8 = vcmp.lt.s32.totalorder %v3286_v44, 0  ;;  %v1830_v5 = vsel %vm4529_vm10, 0, %v4535_v4  ;;  %v676_v30 = vshrl.u32 %v672_v49, 16  ;;  %v678_v62 = vshrl.u32 %v4497_v3, 16 }
 0x14b   : > { %v1681_v12 = vmul.f32 %v1680_v51, %v4471_v34  ;;  %v1689_v7 = vadd.f32 1.0, %v1688_v45  ;;  %v1812_v36 = vsel %vm3287_vm8, 0, %v3286_v44  ;;  %vm701_vm1 = vc.u32 %v693_v43, %v697_v26 }
 0x14c   : > { %v1813_v56 = vsub.s32 32, %v1812_v36  ;;  %v1817_v48 = vsub.s32 4294967266, %v1812_v36  ;;  %v687_v25 = vadd.s32 %v686_v29, %v676_v30  ;;  %v696_v14 = vmul.u32 %v692_v37, %v4488_v54 }
 0x14d   : > { %v699_v39 = vshll.u32 %v695_v57, 16  ;;  %v702_v33 = vsel %vm701_vm1, 1, %v6479_v38  ;;  %v703_v19 = vadd.s32 %v697_v26, %v693_v43  ;;  %v773_v9 = vand.u32 2147483647, %v6510_v31  ;;  %v6511_v43 = vld [vmem:[#allocation40_spill] sm:$0xff] }
 0x14e   : > { %v1814_v58 = vshll.u32 %v1805_v47, %v1812_v36  ;;  %v1815_v49 = vshrl.u32 %v1797_v13, %v1813_v56  ;;  %v1818_v22 = vadd.s32 127, %v1817_v48  ;;  %v704_v3 = vadd.s32 %v702_v33, %v696_v14  ;;  %v6512_v26 = vld [vmem:[#allocation44_spill] sm:$0xff] }
 0x14f   : > { %v4552_v11 = vadd.f32 1.0, %v1681_v12  ;;  %v1690_v34 = vmul.f32 %v1689_v7, %v4458_v0  ;;  %vm705_vm9 = vc.u32 %v703_v19, %v699_v39  ;;  %v780_v17 = vand.u32 8388607, %v773_v9 }
 0x150   : > { %v1816_v50 = vor.u32 %v1815_v49, %v1814_v58  ;;  %v1819_v54 = vshll.u32 %v1818_v22, 23  ;;  %v698_v37 = vshrl.u32 %v694_v21, 16  ;;  %v706_v51 = vsel %vm705_vm9, 1, %v6479_v38  ;;  %v6514_v58 = vld [vmem:[#allocation56_spill] sm:$0xff] }
 0x151   : > { %v4558_v45 = vadd.s32 %v687_v25, %v678_v62  ;;  %v700_v4 = vshrl.u32 %v695_v57, 16  ;;  %v4560_v47 = vadd.s32 %v703_v19, %v699_v39  ;;  %v708_v13 = vadd.s32 %v706_v51, %v704_v3  ;;  %v6513_v39 = vld [vmem:[#allocation47_spill] sm:$0xff]  ;;  %v6515_v49 = vld [vmem:[#allocation52_spill] sm:$0xff] }
 0x152   : > { %v1820_v44 = vor.u32 4788187, %v1819_v54  ;;  %v781_v29 = vor.u32 8388608, %v780_v17  ;;  %v790_v0 = vshll.u32 %v6476_v55, %v6511_v43  ;;  %v791_v30 = vshrl.u32 %v6480_v6, %v6512_v26  ;;  %v6516_v51 = vld [vmem:[#allocation55_spill] sm:$0xff] }
 0x153   : > { %vm1695_vm12 = vcmp.eq.s32.totalorder %v4537_v52, 0  ;;  %v1823_v12 = vcvt.s32.f32 %v1816_v50  ;;  %v709_v21 = vadd.s32 %v708_v13, %v698_v37  ;;  %v793_v62 = vshll.u32 %v6480_v6, %v6511_v43 }
 0x154   : > { %v794_v57 = vshrl.u32 %v6481_v24, %v6512_v26  ;;  %v1821_v7 = vand.u32 2147483647, %v1820_v44  ;;  %v792_v36 = vor.u32 %v791_v30, %v790_v0  ;;  %v796_v56 = vshll.u32 %v6481_v24, %v6511_v43 }
 0x155   : > { %v797_v48 = vshrl.u32 %v6449_v2, %v6512_v26  ;;  %v710_v25 = vadd.s32 %v709_v21, %v700_v4  ;;  %vm713_vm11 = vc.u32 %v4558_v45, %v4560_v47  ;;  %vm807_vm2 = vcmp.lt.s32.totalorder %v6513_v39, 3 }
 0x156   : > { %v4577_v14 = vor.u32 %v794_v57, %v793_v62  ;;  %vm1694_vm14 = vcmp.lt.s32.totalorder %v4537_v52, 2  ;;  %v1824_v33 = vmul.f32 %v1823_v12, %v1821_v7  ;;  %vm805_vm4 = vcmp.lt.s32.totalorder %v6513_v39, 1 }
 0x157   : > { %v798_v19 = vor.u32 %v797_v48, %v796_v56  ;;  %v819_v22 = vsel %vm807_vm2, %v6515_v49, %v6514_v58  ;;  %v1696_v3 = vxor.u32 2147483648, %v1690_v34  ;;  %v714_v17 = vadd.s32 1, %v710_v25 }
 0x158   : > { %v813_v50 = vsel %vm805_vm4, %v792_v36, %v4577_v14  ;;  %v4589_v54 = vshll.u32 %v781_v29, 8  ;;  %v1825_v37 = vxor.u32 2147483648, %v1824_v33  ;;  %vm806_vm5 = vcmp.lt.s32.totalorder %v6513_v39, 2 }
 0x159   : > { %v815_v4 = vsel %vm807_vm2, %v798_v19, %v6516_v51  ;;  %v817_v13 = vsel %vm805_vm4, %v4577_v14, %v798_v19  ;;  %v1699_v44 = vxor.u32 2147483648, %v4552_v11  ;;  %v1847_v43 = vadd.s32 3, %v1830_v5 }
 0x15a   : > { %v715_v0 = vsel %vm713_vm11, %v714_v17, %v710_v25  ;;  %v820_v29 = vsel %vm806_vm5, %v817_v13, %v819_v22  ;;  %v1826_v30 = vsel %vm1705_vm0, %v1825_v37, %v1824_v33  ;;  %v4611_v21 = vsel %vm806_vm5, %v813_v50, %v815_v4 }
 0x15b   : > { %v716_v12 = vadd.s32 %v715_v0, %v711_v60  ;;  %v822_v5 = vand.u32 65535, %v4589_v54  ;;  %v4617_v62 = vsel %vm4529_vm10, %v3575_v61, %v1826_v30  ;;  %v4620_v57 = vshrl.u32 %v4589_v54, 16 }
 0x15c   : > { %v824_v7 = vand.u32 65535, %v820_v29  ;;  %v825_v56 = vshrl.u32 %v820_v29, 16  ;;  %v1697_v8 = vsel %vm1695_vm12, %v4552_v11, %v1696_v3  ;;  %vm1698_vm15 = vcmp.eq.s32.totalorder %v4537_v52, 2 }
 0x15d   : > { %v1831_v20 = vmul.f32 %v4617_v62, %v4617_v62  ;;  %v717_v60 = vadd.s32 536870912, %v716_v12  ;;  %v4628_v48 = vand.u32 3, %v1847_v43  ;;  %v847_v33 = vshrl.u32 %v4611_v21, 16 }
 0x15e   : > { %v827_v32 = vmul.u32 %v825_v56, %v822_v5  ;;  %v4631_v25 = vmul.u32 %v824_v7, %v4620_v57  ;;  %v1700_v58 = vsel %vm1698_vm15, %v1699_v44, %v1690_v34  ;;  %v810_v3 = vsel %vm808_vm6, %v798_v19, 2102212464 }
 0x15f   : > { %v1832_v49 = vmul.f32 -0.001358992, %v1831_v20  ;;  %v1839_v22 = vmul.f32 -0.00019511016, %v1831_v20  ;;  %v4634_v17 = vshrl.u32 %v717_v60, 30  ;;  %v4638_v11 = vsel %vm1694_vm14, %v1697_v8, %v1700_v58 }
 0x160   : > { %v826_v50 = vmul.u32 %v824_v7, %v822_v5  ;;  %v830_v37 = vshll.u32 %v827_v32, 16  ;;  %v789_v34 = vshrl.u32 %v6476_v55, %v6512_v26  ;;  %v832_v44 = vshll.u32 %v4631_v25, 16 }
 0x161   : > { %v1833_v51 = vadd.f32 0.041655596, %v1832_v49  ;;  %v1840_v4 = vadd.f32 0.008332121, %v1839_v22  ;;  %v719_v13 = vshll.u32 %v4634_v17, 30  ;;  %v4646_v0 = vmul.u32 %v847_v33, %v822_v5 }
 0x162   : > { %vm834_vm13 = vc.u32 %v826_v50, %v830_v37  ;;  %v836_v43 = vadd.s32 %v830_v37, %v826_v50  ;;  %v846_v19 = vand.u32 65535, %v4611_v21  ;;  %vm1853_vm6 = vcmp.eq.s32.totalorder %v4628_v48, 2 }
 0x163   : > { %v1834_v52 = vmul.f32 %v1833_v51, %v1831_v20  ;;  %v1841_v29 = vmul.f32 %v1840_v4, %v1831_v20  ;;  %v4648_v30 = vsub.s32 %v716_v12, %v719_v13  ;;  %v809_v7 = vsel %vm805_vm4, %v789_v34, %v792_v36 }
 0x164   : > { %v829_v8 = vmul.u32 %v825_v56, %v4620_v57  ;;  %v835_v26 = vsel %vm834_vm13, 1, %v6479_v38  ;;  %vm838_vm0 = vc.u32 %v836_v43, %v832_v44  ;;  %vm1850_vm8 = vcmp.eq.s32.totalorder %v4628_v48, 0 }
 0x165   : > { %v1835_v60 = vadd.f32 -0.4999988, %v1834_v52  ;;  %v1842_v58 = vadd.f32 -0.16666654, %v1841_v29  ;;  %vm721_vm10 = vcmp.lt.s32.totalorder %v4648_v30, 0  ;;  %v722_v49 = vsub.s32 0, %v4648_v30 }
 0x166   : > { %v811_v12 = vsel %vm807_vm2, %v4577_v14, %v810_v3  ;;  %v837_v21 = vadd.s32 %v835_v26, %v829_v8  ;;  %v839_v36 = vsel %vm838_vm0, 1, %v6479_v38  ;;  %v852_v56 = vshll.u32 %v4646_v0, 16 }
 0x167   : > { %v1836_v22 = vmul.f32 %v1835_v60, %v1831_v20  ;;  %v1843_v50 = vmul.f32 %v1842_v58, %v1831_v20  ;;  %vm1849_vm1 = vcmp.lt.s32.totalorder %v4628_v48, 2  ;;  %v723_v37 = vsel %vm721_vm10, %v722_v49, %v4648_v30 }
 0x168   : > { %v848_v51 = vmul.u32 %v846_v19, %v822_v5  ;;  %vm1691_vm9 = vweird.f32 %v3558_v41  ;;  %vm1846_vm12 = vweird.f32 %v3575_v61  ;;  %v712_v4 = vadd.s32 %v4560_v47, %v4558_v45 }
 0x169   : > { %v724_v14 = vclz %v723_v37  ;;  %v841_v3 = vadd.s32 %v839_v36, %v837_v21  ;;  %v850_v13 = vmul.u32 %v846_v19, %v4620_v57  ;;  %v1837_v34 = vadd.f32 1.0, %v1836_v22  ;;  %v6517_v36 = vld [vmem:[#allocation2_spill] sm:$0xff]  ;;  %v6518_v22 = vld [vmem:[#allocation61_spill] sm:$0xff] }
 0x16a   : > { %v1844_v44 = vadd.f32 1.0, %v1843_v50  ;;  %v831_v43 = vshrl.u32 %v827_v32, 16  ;;  %vm856_vm11 = vc.u32 %v848_v51, %v852_v56  ;;  %v4673_v52 = vsel %vm806_vm5, %v809_v7, %v811_v12 }
 0x16b   : > { %v3265_v20 = vadd.s32 4294967294, %v724_v14  ;;  %v833_v5 = vshrl.u32 %v4631_v25, 16  ;;  %v851_v29 = vmul.u32 %v847_v33, %v4620_v57  ;;  %v1854_v45 = vxor.u32 2147483648, %v1837_v34 }
 0x16c   : > { %v1845_v8 = vmul.f32 %v1844_v44, %v4617_v62  ;;  %v842_v47 = vadd.s32 %v841_v3, %v831_v43  ;;  %v857_v26 = vsel %vm856_vm11, 1, %v6479_v38  ;;  %v854_v19 = vshll.u32 %v850_v13, 16 }
 0x16d   : > { %vm3266_vm2 = vcmp.lt.s32.totalorder %v3265_v20, 0  ;;  %v858_v60 = vadd.s32 %v852_v56, %v848_v51  ;;  %v859_v32 = vadd.s32 %v857_v26, %v851_v29  ;;  %v853_v49 = vshrl.u32 %v4646_v0, 16  ;;  %v6519_v29 = vld [vmem:[#allocation6_spill] sm:$0xff]  ;;  %v6520_v26 = vld [vmem:[#allocation7_spill] sm:$0xff] }
 0x16e   : > { %v1851_v58 = vxor.u32 2147483648, %v1845_v8  ;;  %v1855_v39 = vsel %vm1853_vm6, %v1854_v45, %v1845_v8  ;;  %v727_v7 = vsel %vm3266_vm2, 0, %v3265_v20  ;;  %v4682_v57 = vadd.s32 %v842_v47, %v833_v5 }
 0x16f   : > { %v728_v25 = vsub.s32 32, %v727_v7  ;;  %v732_v12 = vsub.s32 4294967266, %v727_v7  ;;  %vm860_vm14 = vc.u32 %v858_v60, %v854_v19  ;;  %v729_v33 = vshll.u32 %v4648_v30, %v727_v7 }
 0x170   : > { %v1852_v62 = vsel %vm1850_vm8, %v1837_v34, %v1851_v58  ;;  %v861_v21 = vsel %vm860_vm14, 1, %v6479_v38  ;;  %v6405_v56 = vand.u32 2147483647, %v6517_v36  ;;  %vm963_vm4 = vcmp.lt.s32.totalorder %v6518_v22, 4 }
 0x171   : > { %v1856_v50 = vsel %vm1849_vm1, %v1852_v62, %v1855_v39  ;;  %v730_v0 = vshrl.u32 %v712_v4, %v728_v25  ;;  %v733_v37 = vadd.s32 127, %v732_v12  ;;  %v863_v51 = vadd.s32 %v861_v21, %v859_v32 }
 0x172   : > { %v1702_v14 = vsel %vm1691_vm9, nan, %v4638_v11  ;;  %v1857_v3 = vsel %vm1846_vm12, nan, %v1856_v50  ;;  %v855_v30 = vshrl.u32 %v850_v13, 16  ;;  %v4697_v34 = vadd.s32 %v858_v60, %v854_v19  ;;  %v6522_v50 = vld [vmem:[#allocation22_spill] sm:$0xff] }
 0x173   : > { %v2792_v44 = vpack.c.bf16 %v1857_v3, %v1702_v14  ;;  %v731_v43 = vor.u32 %v730_v0, %v729_v33  ;;  %v734_v20 = vshll.u32 %v733_v37, 23  ;;  %v864_v5 = vadd.s32 %v863_v51, %v853_v49  ;;  %v6521_v49 = vld [vmem:[#allocation9_spill] sm:$0xff]  ;;  %v6523_v0 = vld [vmem:[#allocation12_spill] sm:$0xff] }
 0x174   : > { %v4701_v48 = vshll.u32 %v6447_v16, %v4295_v27  ;;  %v742_v4 = vsub.s32 4, %v4634_v17  ;;  %v866_v41 = vmul.u32 %v4589_v54, %v4673_v52  ;;  %v1865_v61 = vand.u32 8388607, %v6405_v56 }
 0x175   : > { %2905 = vmatmul.bf16.vlgmr.msra.gmra.mxu2 %v2792_v44  ;;  %v735_v11 = vor.u32 4788187, %v734_v20  ;;  %v865_v13 = vadd.s32 %v864_v5, %v855_v30  ;;  %vm868_vm5 = vc.u32 %v4682_v57, %v4697_v34  ;;  %v1875_v8 = vshll.u32 %v6476_v55, %v6519_v29 }
 0x176   : > { %v1866_v45 = vor.u32 8388608, %v1865_v61  ;;  %v1878_v47 = vshll.u32 %v6480_v6, %v6519_v29  ;;  %v1879_v19 = vshrl.u32 %v6481_v24, %v6520_v26  ;;  %v1881_v54 = vshll.u32 %v6481_v24, %v6519_v29 }
 0x177   : > { %v736_v52 = vand.u32 2147483647, %v735_v11  ;;  %v738_v60 = vcvt.s32.f32 %v731_v43  ;;  %v869_v32 = vadd.s32 1, %v865_v13  ;;  %v1882_v58 = vshrl.u32 %v6449_v2, %v6520_v26 }
 0x178   : > { %v1876_v39 = vshrl.u32 %v6480_v6, %v6520_v26  ;;  %v4722_v7 = vor.u32 %v1879_v19, %v1878_v47  ;;  %vm1890_vm15 = vcmp.lt.s32.totalorder %v6521_v49, 1  ;;  %vm1892_vm13 = vcmp.lt.s32.totalorder %v6521_v49, 3  ;;  %v6527_v19 = vld [vmem:[#allocation19_spill] sm:$0xff] }
 0x179   : > { %v739_v25 = vmul.f32 %v738_v60, %v736_v52  ;;  %v870_v12 = vsel %vm868_vm5, %v869_v32, %v865_v13  ;;  %v1883_v62 = vor.u32 %v1882_v58, %v1881_v54  ;;  %vm1891_vm6 = vcmp.lt.s32.totalorder %v6521_v49, 2 }
 0x17a   : > { %v4730_v33 = vsel %vm963_vm4, %v4292_v35, 920167782  ;;  %v871_v21 = vadd.s32 %v870_v12, %v866_v41  ;;  %v1904_v37 = vsel %vm1892_vm13, %v6523_v0, %v6522_v50  ;;  %v4736_v51 = vshll.u32 %v1866_v45, 8 }
 0x17b   : > { %v4743_v14 = vsel %vm963_vm4, %v959_v23, 1326507024  ;;  %vm620_vm0 = vcmp.lt.s32.totalorder %v6496_v15, 0  ;;  %v740_v3 = vxor.u32 2147483648, %v739_v25  ;;  %v1902_v30 = vsel %vm1890_vm15, %v4722_v7, %v1883_v62 }
 0x17c   : > { %v743_v44 = vsel %vm620_vm0, %v742_v4, %v4634_v17  ;;  %v872_v43 = vadd.s32 536870912, %v871_v21  ;;  %v1877_v20 = vor.u32 %v1876_v39, %v1875_v8  ;;  %v1905_v5 = vsel %vm1891_vm6, %v1902_v30, %v1904_v37 }
 0x17d   : > { %vm4754_vm10 = vcmp.le.f32.partialorder %v618_v1, 0.7853982  ;;  %v741_v63 = vsel %vm620_vm0, %v740_v3, %v739_v25  ;;  %v1907_v23 = vand.u32 65535, %v4736_v51  ;;  %v4760_v41 = vshrl.u32 %v4736_v51, 16 }
 0x17e   : > { %v4765_v17 = vsel %vm4754_vm10, %v6496_v15, %v741_v63  ;;  %v873_v4 = vshrl.u32 %v872_v43, 30  ;;  %v1909_v61 = vand.u32 65535, %v1905_v5  ;;  %v1910_v11 = vshrl.u32 %v1905_v5, 16 }
 0x17f   : > { %v4768_v13 = vsub.s32 32, %v4503_v42  ;;  %v4772_v1 = vshll.u32 %v6449_v2, %v4503_v42  ;;  %v745_v29 = vsel %vm4754_vm10, 0, %v743_v44  ;;  %v746_v8 = vmul.f32 %v4765_v17, %v4765_v17 }
 0x180   : > { %v874_v45 = vshll.u32 %v873_v4, 30  ;;  %v1898_v47 = vsel %vm1890_vm15, %v1877_v20, %v4722_v7  ;;  %v1900_v54 = vsel %vm1892_vm13, %v1883_v62, %v6527_v19  ;;  %v1912_v52 = vmul.u32 %v1910_v11, %v1907_v23 }
 0x181   : > { %6526 = vst [vmem:[#allocation16_spill] sm:$0xff] %v4772_v1  ;;  %v747_v60 = vmul.f32 -0.001358992, %v746_v8  ;;  %v754_v32 = vmul.f32 -0.00019511016, %v746_v8  ;;  %v1911_v58 = vmul.u32 %v1909_v61, %v1907_v23  ;;  %v4785_v39 = vmul.u32 %v1909_v61, %v4760_v41 }
 0x182   : > { %v762_v25 = vadd.s32 3, %v745_v29  ;;  %v875_v12 = vsub.s32 %v871_v21, %v874_v45  ;;  %v1874_v50 = vshrl.u32 %v6476_v55, %v6520_v26  ;;  %v1915_v0 = vshll.u32 %v1912_v52, 16 }
 0x183   : > { %v748_v37 = vadd.f32 0.041655596, %v747_v60  ;;  %v755_v3 = vadd.f32 0.008332121, %v754_v32  ;;  %v1901_v30 = vsel %vm1891_vm6, %v1898_v47, %v1900_v54  ;;  %v1914_v44 = vmul.u32 %v1910_v11, %v4760_v41 }
 0x184   : > { %vm876_vm8 = vcmp.lt.s32.totalorder %v875_v12, 0  ;;  %v877_v43 = vsub.s32 0, %v875_v12  ;;  %v1895_v5 = vsel %vm1893_vm3, %v1883_v62, 2102212464  ;;  %v1917_v28 = vshll.u32 %v4785_v39, 16 }
 0x185   : > { %v749_v63 = vmul.f32 %v748_v37, %v746_v8  ;;  %v756_v21 = vmul.f32 %v755_v3, %v746_v8  ;;  %vm1919_vm1 = vc.u32 %v1911_v58, %v1915_v0  ;;  %v1921_v61 = vadd.s32 %v1915_v0, %v1911_v58 }
 0x186   : > { %v878_v26 = vsel %vm876_vm8, %v877_v43, %v875_v12  ;;  %v1920_v29 = vsel %vm1919_vm1, 1, %v6479_v38  ;;  %v1931_v45 = vand.u32 65535, %v1901_v30  ;;  %v1932_v19 = vshrl.u32 %v1901_v30, 16 }
 0x187   : > { %v750_v60 = vadd.f32 -0.4999988, %v749_v63  ;;  %v757_v47 = vadd.f32 -0.16666654, %v756_v21  ;;  %v879_v54 = vclz %v878_v26  ;;  %v1922_v11 = vadd.s32 %v1920_v29, %v1914_v44 }
 0x188   : > { %v4796_v32 = vand.u32 3, %v762_v25  ;;  %vm775_vm9 = vcmp.lt.s32.totalorder %v6510_v31, 0  ;;  %v1894_v62 = vsel %vm1890_vm15, %v1874_v50, %v1877_v20  ;;  %vm1923_vm3 = vc.u32 %v1921_v61, %v1917_v28 }
 0x189   : > { %v758_v37 = vmul.f32 %v757_v47, %v746_v8  ;;  %vm4803_vm12 = vcmp.le.f32.partialorder %v773_v9, 0.7853982  ;;  %v3268_v0 = vadd.s32 4294967294, %v879_v54  ;;  %v897_v3 = vsub.s32 4, %v873_v4 }
 0x18a   : > { %v1924_v30 = vsel %vm1923_vm3, 1, %v6479_v38  ;;  %v751_v44 = vmul.f32 %v750_v60, %v746_v8  ;;  %v1896_v25 = vsel %vm1892_vm13, %v4722_v7, %v1895_v5  ;;  %v1934_v43 = vmul.u32 %v1932_v19, %v1907_v23 }
 0x18b   : > { %v1935_v20 = vmul.u32 %v1931_v45, %v4760_v41  ;;  %vm3269_vm11 = vcmp.lt.s32.totalorder %v3268_v0, 0  ;;  %v1916_v50 = vshrl.u32 %v1912_v52, 16  ;;  %v1926_v28 = vadd.s32 %v1924_v30, %v1922_v11 }
 0x18c   : > { %v1933_v63 = vmul.u32 %v1931_v45, %v1907_v23  ;;  %v759_v9 = vadd.f32 1.0, %v758_v37  ;;  %v867_v21 = vadd.s32 %v4697_v34, %v4682_v57  ;;  %v882_v61 = vsel %vm3269_vm11, 0, %v3268_v0 }
 0x18d   : > { %v1937_v26 = vshll.u32 %v1934_v43, 16  ;;  %v883_v29 = vsub.s32 32, %v882_v61  ;;  %v898_v8 = vsel %vm775_vm9, %v897_v3, %v873_v4  ;;  %v4818_v7 = vsel %vm1891_vm6, %v1894_v62, %v1896_v25 }
 0x18e   : > { %v1936_v5 = vmul.u32 %v1932_v19, %v4760_v41  ;;  %v752_v60 = vadd.f32 1.0, %v751_v44  ;;  %v887_v52 = vsub.s32 4294967266, %v882_v61  ;;  %v1918_v23 = vshrl.u32 %v4785_v39, 16  ;;  %v6530_v19 = vld [vmem:[#allocation3_spill] sm:$0xff] }
 0x18f   : > { %v1939_v45 = vshll.u32 %v1935_v20, 16  ;;  %v884_v47 = vshll.u32 %v875_v12, %v882_v61  ;;  %v885_v54 = vshrl.u32 %v867_v21, %v883_v29  ;;  %v1927_v57 = vadd.s32 %v1926_v28, %v1916_v50  ;;  %v6531_v21 = vld [vmem:[#allocation10_spill] sm:$0xff] }
 0x190   : > { %vm1941_vm2 = vc.u32 %v1933_v63, %v1937_v26  ;;  %v760_v34 = vmul.f32 %v759_v9, %v4765_v17  ;;  %v888_v11 = vadd.s32 127, %v887_v52  ;;  %v1943_v37 = vadd.s32 %v1937_v26, %v1933_v63  ;;  %v6532_v26 = vld [vmem:[#allocation13_spill] sm:$0xff] }
 0x191   : > { %v1942_v4 = vsel %vm1941_vm2, 1, %v6479_v38  ;;  %v886_v49 = vor.u32 %v885_v54, %v884_v47  ;;  %v1951_v41 = vmul.u32 %v4736_v51, %v4818_v7  ;;  %v6404_v0 = vand.u32 2147483647, %v6530_v19 }
 0x192   : > { %v1944_v62 = vadd.s32 %v1942_v4, %v1936_v5  ;;  %v889_v3 = vshll.u32 %v888_v11, 23  ;;  %v900_v39 = vsel %vm4803_vm12, 0, %v898_v8  ;;  %v1938_v12 = vshrl.u32 %v1934_v43, 16  ;;  %v6533_v4 = vld [vmem:[#allocation14_spill] sm:$0xff] }
 0x193   : > { %vm1945_vm14 = vc.u32 %v1943_v37, %v1939_v45  ;;  %vm765_vm5 = vcmp.eq.s32.totalorder %v4796_v32, 0  ;;  %vm768_vm15 = vcmp.eq.s32.totalorder %v4796_v32, 2  ;;  %v769_v17 = vxor.u32 2147483648, %v752_v60 }
 0x194   : > { %v4831_v30 = vadd.s32 %v1927_v57, %v1918_v23  ;;  %v1940_v44 = vshrl.u32 %v1935_v20, 16  ;;  %v1946_v25 = vsel %vm1945_vm14, 1, %v6479_v38  ;;  %v766_v50 = vxor.u32 2147483648, %v760_v34 }
 0x195   : > { %v890_v51 = vor.u32 4788187, %v889_v3  ;;  %v4834_v28 = vadd.s32 %v1943_v37, %v1939_v45  ;;  %v1948_v63 = vadd.s32 %v1946_v25, %v1944_v62  ;;  %v893_v9 = vcvt.s32.f32 %v886_v49 }
 0x196   : > { %v2020_v43 = vand.u32 8388607, %v6404_v0  ;;  %v2030_v61 = vshll.u32 %v6476_v55, %v6531_v21  ;;  %v2031_v29 = vshrl.u32 %v6480_v6, %v6532_v26  ;;  %vm764_vm13 = vcmp.lt.s32.totalorder %v4796_v32, 2 }
 0x197   : > { %v891_v20 = vand.u32 2147483647, %v890_v51  ;;  %v1949_v8 = vadd.s32 %v1948_v63, %v1938_v12  ;;  %v2033_v7 = vshll.u32 %v6480_v6, %v6531_v21  ;;  %v2034_v5 = vshrl.u32 %v6481_v24, %v6532_v26  ;;  %v6534_v12 = vld [vmem:[#allocation25_spill] sm:$0xff]  ;;  %v6536_v63 = vld [vmem:[#allocation24_spill] sm:$0xff] }
 0x198   : > { %v2021_v52 = vor.u32 8388608, %v2020_v43  ;;  %v4847_v23 = vor.u32 %v2031_v29, %v2030_v61  ;;  %v2036_v45 = vshll.u32 %v6481_v24, %v6531_v21  ;;  %v2037_v47 = vshrl.u32 %v6449_v2, %v6532_v26 }
 0x199   : > { %v894_v54 = vmul.f32 %v893_v9, %v891_v20  ;;  %v1950_v57 = vadd.s32 %v1949_v8, %v1940_v44  ;;  %v4853_v11 = vor.u32 %v2034_v5, %v2033_v7  ;;  %vm2045_vm6 = vcmp.lt.s32.totalorder %v6533_v4, 1  ;;  %v6535_v44 = vld [vmem:[#allocation20_spill] sm:$0xff] }
 0x19a   : > { %vm1953_vm0 = vc.u32 %v4831_v30, %v4834_v28  ;;  %v2038_v37 = vor.u32 %v2037_v47, %v2036_v45  ;;  %vm2046_vm10 = vcmp.lt.s32.totalorder %v6533_v4, 2  ;;  %vm2047_vm8 = vcmp.lt.s32.totalorder %v6533_v4, 3 }
 0x19b   : > { %v895_v49 = vxor.u32 2147483648, %v894_v54  ;;  %v1954_v62 = vadd.s32 1, %v1950_v57  ;;  %v2053_v3 = vsel %vm2045_vm6, %v4847_v23, %v4853_v11  ;;  %v2059_v25 = vsel %vm2047_vm8, %v6535_v44, %v6534_v12 }
 0x19c   : > { %v917_v51 = vadd.s32 3, %v900_v39  ;;  %v2055_v9 = vsel %vm2047_vm8, %v2038_v37, %v6536_v63  ;;  %v2057_v43 = vsel %vm2045_vm6, %v4853_v11, %v2038_v37  ;;  %v4874_v21 = vshll.u32 %v2021_v52, 8 }
 0x19d   : > { %v767_v61 = vsel %vm765_vm5, %v752_v60, %v766_v50  ;;  %v770_v29 = vsel %vm768_vm15, %v769_v17, %v760_v34  ;;  %v896_v20 = vsel %vm775_vm9, %v895_v49, %v894_v54  ;;  %v1955_v39 = vsel %vm1953_vm0, %v1954_v62, %v1950_v57 }
 0x19e   : > { %v4885_v8 = vsel %vm4803_vm12, %v6510_v31, %v896_v20  ;;  %v1956_v7 = vadd.s32 %v1955_v39, %v1951_v41  ;;  %v4889_v5 = vsel %vm2046_vm10, %v2053_v3, %v2055_v9  ;;  %v2060_v60 = vsel %vm2046_vm10, %v2057_v43, %v2059_v25 }
 0x19f   : > { %v901_v34 = vmul.f32 %v4885_v8, %v4885_v8  ;;  %v2062_v17 = vand.u32 65535, %v4874_v21  ;;  %v2063_v50 = vshrl.u32 %v4874_v21, 16  ;;  %v2064_v52 = vand.u32 65535, %v2060_v60 }
 0x1a0   : > { %v4899_v58 = vshrl.u32 %v6447_v16, %v4500_v46  ;;  %v771_v41 = vsel %vm764_vm13, %v767_v61, %v770_v29  ;;  %v1957_v45 = vadd.s32 536870912, %v1956_v7  ;;  %v2065_v47 = vshrl.u32 %v2060_v60, 16 }
 0x1a1   : > { %vm761_vm1 = vweird.f32 %v6496_v15  ;;  %v902_v54 = vmul.f32 -0.001358992, %v901_v34  ;;  %v909_v57 = vmul.f32 -0.00019511016, %v901_v34  ;;  %v4904_v49 = vmul.u32 %v2064_v52, %v2063_v50 }
 0x1a2   : > { %v4906_v62 = vshrl.u32 %v1957_v45, 30  ;;  %v2066_v3 = vmul.u32 %v2064_v52, %v2062_v17  ;;  %v2067_v12 = vmul.u32 %v2065_v47, %v2062_v17  ;;  %v2087_v44 = vshrl.u32 %v4889_v5, 16 }
 0x1a3   : > { %v4909_v25 = vsel %vm761_vm1, nan, %v771_v41  ;;  %v903_v63 = vadd.f32 0.041655596, %v902_v54  ;;  %v910_v9 = vadd.f32 0.008332121, %v909_v57  ;;  %v4911_v32 = vand.u32 3, %v917_v51 }
 0x1a4   : > { %v1959_v43 = vshll.u32 %v4906_v62, 30  ;;  %v2069_v61 = vmul.u32 %v2065_v47, %v2063_v50  ;;  %v2070_v15 = vshll.u32 %v2067_v12, 16  ;;  %v2086_v29 = vand.u32 65535, %v4889_v5 }
 0x1a5   : > { %v904_v20 = vmul.f32 %v903_v63, %v901_v34  ;;  %v911_v39 = vmul.f32 %v910_v9, %v901_v34  ;;  %v2050_v60 = vsel %vm2048_vm7, %v2038_v37, 2102212464  ;;  %v2072_v52 = vshll.u32 %v4904_v49, 16 }
 0x1a6   : > { %v4918_v45 = vsub.s32 %v1956_v7, %v1959_v43  ;;  %vm2074_vm9 = vc.u32 %v2066_v3, %v2070_v15  ;;  %v2076_v41 = vadd.s32 %v2070_v15, %v2066_v3  ;;  %v4920_v54 = vmul.u32 %v2087_v44, %v2062_v17 }
 0x1a7   : > { %v905_v51 = vadd.f32 -0.4999988, %v904_v20  ;;  %v912_v57 = vadd.f32 -0.16666654, %v911_v39  ;;  %vm923_vm3 = vcmp.eq.s32.totalorder %v4911_v32, 2  ;;  %v2029_v5 = vshrl.u32 %v6476_v55, %v6532_v26 }
 0x1a8   : > { %v2075_v47 = vsel %vm2074_vm9, 1, %v6479_v38  ;;  %vm920_vm12 = vcmp.eq.s32.totalorder %v4911_v32, 0  ;;  %vm1961_vm7 = vcmp.lt.s32.totalorder %v4918_v45, 0  ;;  %v1962_v37 = vsub.s32 0, %v4918_v45 }
 0x1a9   : > { %v2077_v7 = vadd.s32 %v2075_v47, %v2069_v61  ;;  %v2088_v63 = vmul.u32 %v2086_v29, %v2062_v17  ;;  %v906_v3 = vmul.f32 %v905_v51, %v901_v34  ;;  %v913_v9 = vmul.f32 %v912_v57, %v901_v34 }
 0x1aa   : > { %vm919_vm11 = vcmp.lt.s32.totalorder %v4911_v32, 2  ;;  %v2071_v43 = vshrl.u32 %v2067_v12, 16  ;;  %vm2078_vm2 = vc.u32 %v2076_v41, %v2072_v52  ;;  %vm916_vm14 = vweird.f32 %v6510_v31 }
 0x1ab   : > { %v1963_v26 = vsel %vm1961_vm7, %v1962_v37, %v4918_v45  ;;  %v2079_v15 = vsel %vm2078_vm2, 1, %v6479_v38  ;;  %v2090_v20 = vmul.u32 %v2086_v29, %v2063_v50  ;;  %v2092_v39 = vshll.u32 %v4920_v54, 16 }
 0x1ac   : > { %v907_v0 = vadd.f32 1.0, %v906_v3  ;;  %v914_v56 = vadd.f32 1.0, %v913_v9  ;;  %v1964_v10 = vclz %v1963_v26  ;;  %v2081_v61 = vadd.s32 %v2079_v15, %v2077_v7 }
 0x1ad   : > { %v1952_v34 = vadd.s32 %v4834_v28, %v4831_v30  ;;  %v2049_v17 = vsel %vm2045_vm6, %v2029_v5, %v4847_v23  ;;  %v2051_v12 = vsel %vm2047_vm8, %v4853_v11, %v2050_v60  ;;  %v2073_v52 = vshrl.u32 %v4904_v49, 16 }
 0x1ae   : > { %v915_v29 = vmul.f32 %v914_v56, %v4885_v8  ;;  %v924_v41 = vxor.u32 2147483648, %v907_v0  ;;  %v3289_v51 = vadd.s32 4294967294, %v1964_v10  ;;  %v2082_v57 = vadd.s32 %v2081_v61, %v2071_v43 }
 0x1af   : > { %v2091_v47 = vmul.u32 %v2087_v44, %v2063_v50  ;;  %v2094_v37 = vshll.u32 %v2090_v20, 16  ;;  %vm2096_vm5 = vc.u32 %v2088_v63, %v2092_v39  ;;  %v2098_v7 = vadd.s32 %v2092_v39, %v2088_v63  ;;  %v6537_v39 = vld [vmem:[#allocation62_spill] sm:$0xff] }
 0x1b0   : > { %v921_v30 = vxor.u32 2147483648, %v915_v29  ;;  %vm3290_vm15 = vcmp.lt.s32.totalorder %v3289_v51, 0  ;;  %v2052_v28 = vsel %vm2046_vm10, %v2049_v17, %v2051_v12  ;;  %v2093_v23 = vshrl.u32 %v4920_v54, 16 }
 0x1b1   : > { %v925_v11 = vsel %vm923_vm3, %v924_v41, %v915_v29  ;;  %v1967_v49 = vsel %vm3290_vm15, 0, %v3289_v51  ;;  %v2097_v56 = vsel %vm2096_vm5, 1, %v6479_v38  ;;  %vm2100_vm13 = vc.u32 %v2098_v7, %v2094_v37 }
 0x1b2   : > { %v922_v10 = vsel %vm920_vm12, %v907_v0, %v921_v30  ;;  %v1968_v8 = vsub.s32 32, %v1967_v49  ;;  %v1972_v50 = vsub.s32 4294967266, %v1967_v49  ;;  %v4952_v44 = vadd.s32 %v2082_v57, %v2073_v52  ;;  %v6538_v52 = vld [vmem:[#allocation37_spill] sm:$0xff] }
 0x1b3   : > { %v926_v4 = vsel %vm919_vm11, %v922_v10, %v925_v11  ;;  %v2099_v60 = vadd.s32 %v2097_v56, %v2091_v47  ;;  %v2101_v54 = vsel %vm2100_vm13, 1, %v6479_v38  ;;  %v4957_v5 = vadd.s32 %v2098_v7, %v2094_v37  ;;  %v6539_v47 = vld [vmem:[#allocation66_spill] sm:$0xff] }
 0x1b4   : > { %v927_v63 = vsel %vm916_vm14, nan, %v926_v4  ;;  %v1969_v3 = vshll.u32 %v4918_v45, %v1967_v49  ;;  %v1970_v9 = vshrl.u32 %v1952_v34, %v1968_v8  ;;  %v1973_v43 = vadd.s32 127, %v1972_v50 }
 0x1b5   : > { %v4964_v0 = vshrl.u32 %v6448_v59, %v4500_v46  ;;  %v2789_v26 = vpack.c.bf16 %v927_v63, %v4909_v25  ;;  %v2095_v32 = vshrl.u32 %v2090_v20, 16  ;;  %v2103_v15 = vadd.s32 %v2101_v54, %v2099_v60 }
 0x1b6   : > { %v3279_v61 = vadd.s32 4294967169, %v6537_v39  ;;  %v1971_v17 = vor.u32 %v1970_v9, %v1969_v3  ;;  %v1974_v12 = vshll.u32 %v1973_v43, 23  ;;  %v6407_v29 = vand.u32 2147483647, %v6538_v52 }
 0x1b7   : > { %v4971_v31 = vor.u32 %v4899_v58, %v4517_v18  ;;  %2890 = vmatmul.bf16.gmra.mxu0 %v2789_v26  ;;  %v2104_v45 = vadd.s32 %v2103_v15, %v2093_v23  ;;  %v2106_v34 = vmul.u32 %v4874_v21, %v2052_v28  ;;  %v946_v41 = vshrl.u32 %v6480_v6, %v4078_v53 }
 0x1b8   : > { %v1975_v25 = vor.u32 4788187, %v1974_v12  ;;  %vm2108_vm6 = vc.u32 %v4952_v44, %v4957_v5  ;;  %v935_v20 = vand.u32 8388607, %v6407_v29  ;;  %v945_v51 = vshll.u32 %v6476_v55, %v4005_v40 }
 0x1b9   : > { %v1978_v57 = vcvt.s32.f32 %v1971_v17  ;;  %v2105_v18 = vadd.s32 %v2104_v45, %v2095_v32  ;;  %v948_v58 = vshll.u32 %v6480_v6, %v4005_v40  ;;  %v949_v21 = vshrl.u32 %v6481_v24, %v4078_v53 }
 0x1ba   : > { %vm2513_vm0 = vcmp.lt.s32.totalorder %v6539_v47, 4  ;;  %v1976_v37 = vand.u32 2147483647, %v1975_v25  ;;  %v936_v7 = vor.u32 8388608, %v935_v20  ;;  %v951_v30 = vshll.u32 %v6481_v24, %v4005_v40 }
 0x1bb   : > { %v952_v28 = vshrl.u32 %v6449_v2, %v4078_v53  ;;  %v1403_v23 = vadd.s32 1, %v3279_v61  ;;  %v2109_v11 = vadd.s32 1, %v2105_v18  ;;  %v4991_v49 = vor.u32 %v946_v41, %v945_v51 }
 0x1bc   : > { %v4993_v56 = vor.u32 %v949_v21, %v948_v58  ;;  %v6540_v10 = vand.u32 2147483647, %v6517_v36  ;;  %v1979_v50 = vmul.f32 %v1978_v57, %v1976_v37  ;;  %vm962_vm8 = vcmp.lt.s32.totalorder %v6518_v22, 3 }
 0x1bd   : > { %v953_v4 = vor.u32 %v952_v28, %v951_v30  ;;  %vm1860_vm1 = vcmp.lt.s32.totalorder %v6517_v36, 0  ;;  %v2110_v40 = vsel %vm2108_vm6, %v2109_v11, %v2105_v18  ;;  %v974_v60 = vsel %vm962_vm8, %v4292_v35, %v4743_v14 }
 0x1be   : > { %vm4997_vm10 = vcmp.le.f32.partialorder %v6540_v10, 0.7853982  ;;  %v5010_v54 = vshll.u32 %v936_v7, 8  ;;  %v1980_v63 = vxor.u32 2147483648, %v1979_v50  ;;  %v1982_v3 = vsub.s32 4, %v4906_v62 }
 0x1bf   : > { %v2111_v9 = vadd.s32 %v2110_v40, %v2106_v34  ;;  %vm960_vm9 = vcmp.lt.s32.totalorder %v6518_v22, 1  ;;  %vm961_vm3 = vcmp.lt.s32.totalorder %v6518_v22, 2  ;;  %v970_v26 = vsel %vm962_vm8, %v953_v4, %v4730_v33 }
 0x1c0   : > { %v968_v43 = vsel %vm960_vm9, %v4991_v49, %v4993_v56  ;;  %v972_v35 = vsel %vm960_vm9, %v4993_v56, %v953_v4  ;;  %v1981_v14 = vsel %vm1860_vm1, %v1980_v63, %v1979_v50  ;;  %v977_v39 = vand.u32 65535, %v5010_v54 }
 0x1c1   : > { %v2112_v32 = vadd.s32 536870912, %v2111_v9  ;;  %v975_v15 = vsel %vm961_vm3, %v972_v35, %v974_v60  ;;  %v5033_v61 = vsel %vm4997_vm10, %v6517_v36, %v1981_v14  ;;  %v5036_v33 = vshrl.u32 %v5010_v54, 16 }
 0x1c2   : > { %v979_v17 = vand.u32 65535, %v975_v15  ;;  %v980_v12 = vshrl.u32 %v975_v15, 16  ;;  %v5040_v45 = vshrl.u32 %v6447_v16, %v4768_v13  ;;  %vm1404_vm12 = vcmp.gt.s32.totalorder %v1403_v23, 0 }
 0x1c3   : > { %v1986_v34 = vmul.f32 %v5033_v61, %v5033_v61  ;;  %v2113_v41 = vshrl.u32 %v2112_v32, 30  ;;  %v5047_v25 = vsel %vm2513_vm0, %v4971_v31, 920167782  ;;  %v971_v20 = vsel %vm961_vm3, %v968_v43, %v970_v26 }
 0x1c4   : > { %6543 = vst [vmem:[#allocation42_spill] sm:$0xff] %v5040_v45  ;;  %v982_v51 = vmul.u32 %v980_v12, %v977_v39  ;;  %v5052_v57 = vmul.u32 %v979_v17, %v5036_v33  ;;  %v5056_v7 = vsel %vm1404_vm12, %v1403_v23, 0  ;;  %v1983_v30 = vsel %vm1860_vm1, %v1982_v3, %v4906_v62 }
 0x1c5   : > { %v1987_v58 = vmul.f32 -0.001358992, %v1986_v34  ;;  %v1994_v21 = vmul.f32 -0.00019511016, %v1986_v34  ;;  %v2114_v37 = vshll.u32 %v2113_v41, 30  ;;  %v981_v28 = vmul.u32 %v979_v17, %v977_v39 }
 0x1c6   : > { %v985_v11 = vshll.u32 %v982_v51, 16  ;;  %v1002_v60 = vshrl.u32 %v971_v20, 16  ;;  %v984_v63 = vmul.u32 %v980_v12, %v5036_v33  ;;  %v987_v43 = vshll.u32 %v5052_v57, 16 }
 0x1c7   : > { %v1988_v10 = vadd.f32 0.041655596, %v1987_v58  ;;  %v1995_v50 = vadd.f32 0.008332121, %v1994_v21  ;;  %v2115_v40 = vsub.s32 %v2111_v9, %v2114_v37  ;;  %v5064_v32 = vand.u32 31, %v5056_v7 }
 0x1c8   : > { %vm989_vm7 = vc.u32 %v981_v28, %v985_v11  ;;  %v991_v26 = vadd.s32 %v985_v11, %v981_v28  ;;  %v1985_v62 = vsel %vm4997_vm10, 0, %v1983_v30  ;;  %v1001_v17 = vand.u32 65535, %v971_v20 }
 0x1c9   : > { %v1989_v35 = vmul.f32 %v1988_v10, %v1986_v34  ;;  %v1996_v14 = vmul.f32 %v1995_v50, %v1986_v34  ;;  %vm2116_vm11 = vcmp.lt.s32.totalorder %v2115_v40, 0  ;;  %v2117_v23 = vsub.s32 0, %v2115_v40 }
 0x1ca   : > { %v990_v3 = vsel %vm989_vm7, 1, %v6479_v38  ;;  %vm993_vm2 = vc.u32 %v991_v26, %v987_v43  ;;  %v1004_v12 = vmul.u32 %v1002_v60, %v977_v39  ;;  %vm2015_vm14 = vcmp.lt.s32.totalorder %v6530_v19, 0 }
 0x1cb   : > { %v2118_v9 = vsel %vm2116_vm11, %v2117_v23, %v2115_v40  ;;  %v992_v15 = vadd.s32 %v990_v3, %v984_v63  ;;  %v965_v21 = vsel %vm963_vm4, %v953_v4, 2102212464  ;;  %v994_v37 = vsel %vm993_vm2, 1, %v6479_v38 }
 0x1cc   : > { %v2119_v58 = vclz %v2118_v9  ;;  %v1990_v28 = vadd.f32 -0.4999988, %v1989_v35  ;;  %v1997_v11 = vadd.f32 -0.16666654, %v1996_v14  ;;  %v2137_v10 = vsub.s32 4, %v2113_v41 }
 0x1cd   : > { %v944_v8 = vshrl.u32 %v6476_v55, %v4078_v53  ;;  %v2002_v30 = vadd.s32 3, %v1985_v62  ;;  %v6544_v50 = vand.u32 2147483647, %v6530_v19  ;;  %v2107_v63 = vadd.s32 %v4957_v5, %v4952_v44 }
 0x1ce   : > { %v3292_v43 = vadd.s32 4294967294, %v2119_v58  ;;  %v996_v26 = vadd.s32 %v994_v37, %v992_v15  ;;  %v1005_v35 = vmul.u32 %v1001_v17, %v5036_v33  ;;  %v1007_v14 = vshll.u32 %v1004_v12, 16 }
 0x1cf   : > { %vm5077_vm5 = vcmp.le.f32.partialorder %v6544_v50, 0.7853982  ;;  %v964_v4 = vsel %vm960_vm9, %v944_v8, %v4991_v49  ;;  %v966_v53 = vsel %vm962_vm8, %v4993_v56, %v965_v21  ;;  %v986_v23 = vshrl.u32 %v982_v51, 16 }
 0x1d0   : > { %vm3293_vm4 = vcmp.lt.s32.totalorder %v3292_v43, 0  ;;  %v1003_v62 = vmul.u32 %v1001_v17, %v977_v39  ;;  %v1991_v3 = vmul.f32 %v1990_v28, %v1986_v34  ;;  %v1998_v9 = vmul.f32 %v1997_v11, %v1986_v34 }
 0x1d1   : > { %v2122_v50 = vsel %vm3293_vm4, 0, %v3292_v43  ;;  %v2138_v44 = vsel %vm2015_vm14, %v2137_v10, %v2113_v41  ;;  %v1006_v49 = vmul.u32 %v1002_v60, %v5036_v33  ;;  %v997_v15 = vadd.s32 %v996_v26, %v986_v23  ;;  %v6549_v23 = vld [vmem:[#allocation26_spill] sm:$0xff] }
 0x1d2   : > { %v2123_v5 = vsub.s32 32, %v2122_v50  ;;  %v2127_v58 = vsub.s32 4294967266, %v2122_v50  ;;  %vm1011_vm15 = vc.u32 %v1003_v62, %v1007_v14  ;;  %v1009_v37 = vshll.u32 %v1005_v35, 16 }
 0x1d3   : > { %v1012_v8 = vsel %vm1011_vm15, 1, %v6479_v38  ;;  %v1013_v18 = vadd.s32 %v1007_v14, %v1003_v62  ;;  %v2124_v29 = vshll.u32 %v2115_v40, %v2122_v50  ;;  %v5094_v17 = vand.u32 3, %v2002_v30  ;;  %v6548_v14 = vld [vmem:[#allocation21_spill] sm:$0xff] }
 0x1d4   : > { %v2125_v56 = vshrl.u32 %v2107_v63, %v2123_v5  ;;  %v2128_v51 = vadd.s32 127, %v2127_v58  ;;  %v1014_v39 = vadd.s32 %v1012_v8, %v1006_v49  ;;  %v967_v34 = vsel %vm961_vm3, %v964_v4, %v966_v53  ;;  %v6547_v4 = vld [vmem:[#allocation5_spill] sm:$0xff] }
 0x1d5   : > { %v988_v41 = vshrl.u32 %v5052_v57, 16  ;;  %vm1015_vm13 = vc.u32 %v1013_v18, %v1009_v37  ;;  %v2140_v60 = vsel %vm5077_vm5, 0, %v2138_v44  ;;  %v5102_v11 = vadd.f32 1.0, %v1991_v3 }
 0x1d6   : > { %v2126_v21 = vor.u32 %v2125_v56, %v2124_v29  ;;  %v2129_v33 = vshll.u32 %v2128_v51, 23  ;;  %v1016_v28 = vsel %vm1015_vm13, 1, %v6479_v38  ;;  %v1999_v40 = vadd.f32 1.0, %v1998_v9 }
 0x1d7   : > { %v1008_v10 = vshrl.u32 %v1004_v12, 16  ;;  %v1018_v63 = vadd.s32 %v1016_v28, %v1014_v39  ;;  %v5104_v43 = vadd.s32 %v997_v15, %v988_v41  ;;  %v1010_v22 = vshrl.u32 %v1005_v35, 16  ;;  %v6552_v28 = vld [vmem:[#allocation31_spill] sm:$0xff] }
 0x1d8   : > { %v2130_v30 = vor.u32 4788187, %v2129_v33  ;;  %v6408_v26 = vand.u32 2147483647, %v6547_v4  ;;  %v5107_v57 = vadd.s32 %v1013_v18, %v1009_v37  ;;  %v1100_v53 = vshll.u32 %v6476_v55, %v6548_v14  ;;  %v6551_v33 = vld [vmem:[#allocation38_spill] sm:$0xff] }
 0x1d9   : > { %v1019_v29 = vadd.s32 %v1018_v63, %v1008_v10  ;;  %v1101_v62 = vshrl.u32 %v6480_v6, %v6549_v23  ;;  %v2133_v50 = vcvt.s32.f32 %v2126_v21  ;;  %v1103_v9 = vshll.u32 %v6480_v6, %v6548_v14 }
 0x1da   : > { %v2131_v3 = vand.u32 2147483647, %v2130_v30  ;;  %v1090_v12 = vand.u32 8388607, %v6408_v26  ;;  %v2000_v35 = vmul.f32 %v1999_v40, %v5033_v61  ;;  %v1104_v18 = vshrl.u32 %v6481_v24, %v6549_v23  ;;  %v6550_v61 = vld [vmem:[#allocation28_spill] sm:$0xff] }
 0x1db   : > { %v1020_v44 = vadd.s32 %v1019_v29, %v1010_v22  ;;  %v1106_v5 = vshll.u32 %v6481_v24, %v6548_v14  ;;  %vm1023_vm6 = vc.u32 %v5104_v43, %v5107_v57  ;;  %v1107_v15 = vshrl.u32 %v6449_v2, %v6549_v23 }
 0x1dc   : > { %v2134_v58 = vmul.f32 %v2133_v50, %v2131_v3  ;;  %v1091_v49 = vor.u32 8388608, %v1090_v12  ;;  %v5126_v8 = vor.u32 %v1101_v62, %v1100_v53  ;;  %v5128_v56 = vor.u32 %v1104_v18, %v1103_v9  ;;  %v6553_v3 = vld [vmem:[#allocation34_spill] sm:$0xff] }
 0x1dd   : > { %v1024_v37 = vadd.s32 1, %v1020_v44  ;;  %vm1117_vm10 = vcmp.lt.s32.totalorder %v6550_v61, 3  ;;  %vm2005_vm8 = vcmp.eq.s32.totalorder %v5094_v17, 0  ;;  %v1021_v39 = vmul.u32 %v5010_v54, %v967_v34 }
 0x1de   : > { %v2135_v51 = vxor.u32 2147483648, %v2134_v58  ;;  %v5133_v41 = vor.u32 %v1107_v15, %v1106_v5  ;;  %vm1115_vm1 = vcmp.lt.s32.totalorder %v6550_v61, 1  ;;  %vm1116_vm9 = vcmp.lt.s32.totalorder %v6550_v61, 2 }
 0x1df   : > { %v1025_v21 = vsel %vm1023_vm6, %v1024_v37, %v1020_v44  ;;  %v1129_v40 = vsel %vm1117_vm10, %v6552_v28, %v6551_v33  ;;  %v5141_v10 = vshll.u32 %v1091_v49, 8  ;;  %v2009_v63 = vxor.u32 2147483648, %v5102_v11 }
 0x1e0   : > { %v2136_v30 = vsel %vm2015_vm14, %v2135_v51, %v2134_v58  ;;  %v2157_v54 = vadd.s32 3, %v2140_v60  ;;  %v1026_v34 = vadd.s32 %v1025_v21, %v1021_v39  ;;  %v2006_v22 = vxor.u32 2147483648, %v2000_v35 }
 0x1e1   : > { %v5149_v29 = vsel %vm5077_vm5, %v6530_v19, %v2136_v30  ;;  %v1123_v14 = vsel %vm1115_vm1, %v5126_v8, %v5128_v56  ;;  %v1127_v53 = vsel %vm1115_vm1, %v5128_v56, %v5133_v41  ;;  %vm2004_vm3 = vcmp.lt.s32.totalorder %v5094_v17, 2 }
 0x1e2   : > { %v2141_v60 = vmul.f32 %v5149_v29, %v5149_v29  ;;  %v1027_v62 = vadd.s32 536870912, %v1026_v34  ;;  %v1125_v20 = vsel %vm1117_vm10, %v5133_v41, %v6553_v3  ;;  %v1130_v50 = vsel %vm1116_vm9, %v1127_v53, %v1129_v40 }
 0x1e3   : > { %v1132_v12 = vand.u32 65535, %v5141_v10  ;;  %v5170_v9 = vshrl.u32 %v5141_v10, 16  ;;  %v1134_v44 = vand.u32 65535, %v1130_v50  ;;  %v1135_v18 = vshrl.u32 %v1130_v50, 16 }
 0x1e4   : > { %vm2008_vm12 = vcmp.eq.s32.totalorder %v5094_v17, 2  ;;  %v2142_v5 = vmul.f32 -0.001358992, %v2141_v60  ;;  %v2149_v58 = vmul.f32 -0.00019511016, %v2141_v60  ;;  %v5173_v49 = vshrl.u32 %v1027_v62, 30 }
 0x1e5   : > { %v5175_v15 = vand.u32 3, %v2157_v54  ;;  %v1136_v37 = vmul.u32 %v1134_v44, %v1132_v12  ;;  %v1137_v51 = vmul.u32 %v1135_v18, %v1132_v12  ;;  %v5178_v39 = vmul.u32 %v1134_v44, %v5170_v9 }
 0x1e6   : > { %vm2001_vm7 = vweird.f32 %v6517_v36  ;;  %v2143_v21 = vadd.f32 0.041655596, %v2142_v5  ;;  %v2150_v33 = vadd.f32 0.008332121, %v2149_v58  ;;  %v1029_v28 = vshll.u32 %v5173_v49, 30 }
 0x1e7   : > { %v1126_v40 = vsel %vm1116_vm9, %v1123_v14, %v1125_v20  ;;  %v2007_v30 = vsel %vm2005_vm8, %v5102_v11, %v2006_v22  ;;  %v2010_v54 = vsel %vm2008_vm12, %v2009_v63, %v2000_v35  ;;  %v1140_v53 = vshll.u32 %v1137_v51, 16 }
 0x1e8   : > { %v1142_v62 = vshll.u32 %v5178_v39, 16  ;;  %v2144_v3 = vmul.f32 %v2143_v21, %v2141_v60  ;;  %v2151_v50 = vmul.f32 %v2150_v33, %v2141_v60  ;;  %v5188_v44 = vsub.s32 %v1026_v34, %v1029_v28 }
 0x1e9   : > { %v1139_v5 = vmul.u32 %v1135_v18, %v5170_v9  ;;  %vm1144_vm11 = vc.u32 %v1136_v37, %v1140_v53  ;;  %v1146_v58 = vadd.s32 %v1140_v53, %v1136_v37  ;;  %v1156_v26 = vand.u32 65535, %v1126_v40 }
 0x1ea   : > { %v1157_v42 = vshrl.u32 %v1126_v40, 16  ;;  %v2145_v45 = vadd.f32 -0.4999988, %v2144_v3  ;;  %v2152_v14 = vadd.f32 -0.16666654, %v2151_v50  ;;  %vm1031_vm2 = vcmp.lt.s32.totalorder %v5188_v44, 0 }
 0x1eb   : > { %v1032_v11 = vsub.s32 0, %v5188_v44  ;;  %v2011_v35 = vsel %vm2004_vm3, %v2007_v30, %v2010_v54  ;;  %vm2160_vm14 = vcmp.eq.s32.totalorder %v5175_v15, 0  ;;  %v1099_v63 = vshrl.u32 %v6476_v55, %v6549_v23 }
 0x1ec   : > { %v1145_v34 = vsel %vm1144_vm11, 1, %v6479_v38  ;;  %vm1148_vm5 = vc.u32 %v1146_v58, %v1142_v62  ;;  %v2146_v22 = vmul.f32 %v2145_v45, %v2141_v60  ;;  %v2153_v20 = vmul.f32 %v2152_v14, %v2141_v60 }
 0x1ed   : > { %vm2159_vm4 = vcmp.lt.s32.totalorder %v5175_v15, 2  ;;  %v1033_v18 = vsel %vm1031_vm2, %v1032_v11, %v5188_v44  ;;  %v1147_v37 = vadd.s32 %v1145_v34, %v1139_v5  ;;  %vm2156_vm15 = vweird.f32 %v6530_v19 }
 0x1ee   : > { %vm2163_vm13 = vcmp.eq.s32.totalorder %v5175_v15, 2  ;;  %v1034_v17 = vclz %v1033_v18  ;;  %v1149_v21 = vsel %vm1148_vm5, 1, %v6479_v38  ;;  %v1159_v33 = vmul.u32 %v1157_v42, %v1132_v12 }
 0x1ef   : > { %v2147_v28 = vadd.f32 1.0, %v2146_v22  ;;  %v2154_v23 = vadd.f32 1.0, %v2153_v20  ;;  %vm6554_vm6 = vcmp.lt.s32.totalorder %v6550_v61, 4  ;;  %v1160_v60 = vmul.u32 %v1156_v26, %v5170_v9 }
 0x1f0   : > { %v1120_v45 = vsel %vm6554_vm6, %v5133_v41, 2102212464  ;;  %v2012_v40 = vsel %vm2001_vm7, nan, %v2011_v35  ;;  %v1022_v30 = vadd.s32 %v5107_v57, %v5104_v43  ;;  %v3271_v54 = vadd.s32 4294967294, %v1034_v17 }
 0x1f1   : > { %v1151_v53 = vadd.s32 %v1149_v21, %v1147_v37  ;;  %v2155_v62 = vmul.f32 %v2154_v23, %v5149_v29  ;;  %v2164_v3 = vxor.u32 2147483648, %v2147_v28  ;;  %v1119_v50 = vsel %vm1115_vm1, %v1099_v63, %v5126_v8 }
 0x1f2   : > { %v1158_v5 = vmul.u32 %v1156_v26, %v1132_v12  ;;  %vm3272_vm8 = vcmp.lt.s32.totalorder %v3271_v54, 0  ;;  %v1121_v41 = vsel %vm1117_vm10, %v5128_v56, %v1120_v45  ;;  %v1141_v36 = vshrl.u32 %v1137_v51, 16  ;;  %v6555_v45 = vld [vmem:[#allocation4_spill] sm:$0xff] }
 0x1f3   : > { %v1162_v58 = vshll.u32 %v1159_v33, 16  ;;  %v2161_v14 = vxor.u32 2147483648, %v2155_v62  ;;  %v1037_v11 = vsel %vm3272_vm8, 0, %v3271_v54  ;;  %v1161_v43 = vmul.u32 %v1157_v42, %v5170_v9 }
 0x1f4   : > { %v1164_v57 = vshll.u32 %v1160_v60, 16  ;;  %v2165_v29 = vsel %vm2163_vm13, %v2164_v3, %v2155_v62  ;;  %v1038_v35 = vsub.s32 32, %v1037_v11  ;;  %v1042_v34 = vsub.s32 4294967266, %v1037_v11 }
 0x1f5   : > { %v1152_v22 = vadd.s32 %v1151_v53, %v1141_v36  ;;  %v2162_v26 = vsel %vm2160_vm14, %v2147_v28, %v2161_v14  ;;  %v1039_v8 = vshll.u32 %v5188_v44, %v1037_v11  ;;  %vm1166_vm1 = vc.u32 %v1158_v5, %v1162_v58 }
 0x1f6   : > { %v1168_v56 = vadd.s32 %v1162_v58, %v1158_v5  ;;  %v2166_v12 = vsel %vm2159_vm4, %v2162_v26, %v2165_v29  ;;  %v1040_v51 = vshrl.u32 %v1022_v30, %v1038_v35  ;;  %v1043_v63 = vadd.s32 127, %v1042_v34  ;;  %v6556_v5 = vld [vmem:[#allocation11_spill] sm:$0xff]  ;;  %v6558_v35 = vld [vmem:[#allocation18_spill] sm:$0xff] }
 0x1f7   : > { %v1167_v42 = vsel %vm1166_vm1, 1, %v6479_v38  ;;  %v2167_v9 = vsel %vm2156_vm15, nan, %v2166_v12  ;;  %v1143_v20 = vshrl.u32 %v5178_v39, 16  ;;  %v1163_v15 = vshrl.u32 %v1159_v33, 16  ;;  %v6557_v58 = vld [vmem:[#allocation15_spill] sm:$0xff]  ;;  %v6559_v12 = vld [vmem:[#allocation29_spill] sm:$0xff] }
 0x1f8   : > { %v1169_v18 = vadd.s32 %v1167_v42, %v1161_v43  ;;  %vm1170_vm10 = vc.u32 %v1168_v56, %v1164_v57  ;;  %v2793_v37 = vpack.c.bf16 %v2167_v9, %v2012_v40  ;;  %v1041_v17 = vor.u32 %v1040_v51, %v1039_v8  ;;  %v6560_v51 = vld [vmem:[#allocation23_spill] sm:$0xff] }
 0x1f9   : > { %v1044_v21 = vshll.u32 %v1043_v63, 23  ;;  %v1171_v44 = vsel %vm1170_vm10, 1, %v6479_v38  ;;  %v5232_v28 = vadd.s32 %v1152_v22, %v1143_v20  ;;  %v6411_v30 = vand.u32 2147483647, %v6555_v45 }
 0x1fa   : > { %v1173_v23 = vadd.s32 %v1171_v44, %v1169_v18  ;;  %2910 = vmatmul.bf16.gmra.mxu2 %v2793_v37  ;;  %v1122_v19 = vsel %vm1116_vm9, %v1119_v50, %v1121_v41  ;;  %v1165_v53 = vshrl.u32 %v1160_v60, 16  ;;  %v5237_v39 = vadd.s32 %v1168_v56, %v1164_v57 }
 0x1fb   : > { %v1045_v54 = vor.u32 4788187, %v1044_v21  ;;  %v1048_v62 = vcvt.s32.f32 %v1041_v17  ;;  %v2175_v3 = vand.u32 8388607, %v6411_v30  ;;  %v2185_v36 = vshll.u32 %v6476_v55, %v6556_v5 }
 0x1fc   : > { %v1174_v40 = vadd.s32 %v1173_v23, %v1163_v15  ;;  %v2186_v14 = vshrl.u32 %v6480_v6, %v6557_v58  ;;  %v2188_v11 = vshll.u32 %v6480_v6, %v6556_v5  ;;  %v2189_v61 = vshrl.u32 %v6481_v24, %v6557_v58  ;;  %v6564_v15 = vld [vmem:[#allocation27_spill] sm:$0xff] }
 0x1fd   : > { %v1046_v33 = vand.u32 2147483647, %v1045_v54  ;;  %vm1178_vm9 = vc.u32 %v5232_v28, %v5237_v39  ;;  %v2191_v50 = vshll.u32 %v6481_v24, %v6556_v5  ;;  %v2192_v41 = vshrl.u32 %v6449_v2, %v6557_v58 }
 0x1fe   : > { %v1175_v60 = vadd.s32 %v1174_v40, %v1165_v53  ;;  %v5255_v57 = vor.u32 %v2186_v14, %v2185_v36  ;;  %v5257_v29 = vor.u32 %v2189_v61, %v2188_v11  ;;  %vm2200_vm3 = vcmp.lt.s32.totalorder %v6558_v35, 1 }
 0x1ff   : > { %v1049_v43 = vmul.f32 %v1048_v62, %v1046_v33  ;;  %v2176_v22 = vor.u32 8388608, %v2175_v3  ;;  %v2193_v26 = vor.u32 %v2192_v41, %v2191_v50  ;;  %vm2202_vm12 = vcmp.lt.s32.totalorder %v6558_v35, 3 }
 0x200   : > { %v1179_v34 = vadd.s32 1, %v1175_v60  ;;  %v1176_v56 = vmul.u32 %v5141_v10, %v1122_v19  ;;  %vm2201_vm7 = vcmp.lt.s32.totalorder %v6558_v35, 2  ;;  %v2214_v63 = vsel %vm2202_vm12, %v6560_v51, %v6559_v12 }
 0x201   : > { %v1050_v8 = vxor.u32 2147483648, %v1049_v43  ;;  %vm930_vm11 = vcmp.lt.s32.totalorder %v6538_v52, 0  ;;  %v1052_v42 = vsub.s32 4, %v5173_v49  ;;  %v2212_v20 = vsel %vm2200_vm3, %v5257_v29, %v2193_v26 }
 0x202   : > { %v1180_v9 = vsel %vm1178_vm9, %v1179_v34, %v1175_v60  ;;  %v6561_v10 = vand.u32 2147483647, %v6538_v52  ;;  %v2208_v21 = vsel %vm2200_vm3, %v5255_v57, %v5257_v29  ;;  %v2210_v23 = vsel %vm2202_vm12, %v2193_v26, %v6564_v15 }
 0x203   : > { %v1051_v37 = vsel %vm930_vm11, %v1050_v8, %v1049_v43  ;;  %v1181_v17 = vadd.s32 %v1180_v9, %v1176_v56  ;;  %v2215_v54 = vsel %vm2201_vm7, %v2212_v20, %v2214_v63  ;;  %v5297_v19 = vshll.u32 %v2176_v22, 8 }
 0x204   : > { %vm5277_vm2 = vcmp.le.f32.partialorder %v6561_v10, 0.7853982  ;;  %v2219_v40 = vand.u32 65535, %v2215_v54  ;;  %v2220_v3 = vshrl.u32 %v2215_v54, 16  ;;  %v5304_v5 = vsub.s32 32, %v5064_v32 }
 0x205   : > { %v5290_v44 = vsel %vm5277_vm2, %v6538_v52, %v1051_v37  ;;  %v1182_v62 = vadd.s32 536870912, %v1181_v17  ;;  %v1053_v36 = vsel %vm930_vm11, %v1052_v42, %v5173_v49  ;;  %v2217_v33 = vand.u32 65535, %v5297_v19 }
 0x206   : > { %v5301_v53 = vmul.f32 %v5290_v44, %v5290_v44  ;;  %v2218_v14 = vshrl.u32 %v5297_v19, 16  ;;  %v5312_v11 = vshrl.u32 %v5056_v7, 5  ;;  %v2211_v41 = vsel %vm2201_vm7, %v2208_v21, %v2210_v23 }
 0x207   : > { %v1183_v50 = vshrl.u32 %v1182_v62, 30  ;;  %v2221_v43 = vmul.u32 %v2219_v40, %v2217_v33  ;;  %v2222_v34 = vmul.u32 %v2220_v3, %v2217_v33  ;;  %v1419_v49 = vshll.u32 %v6449_v2, %v5064_v32 }
 0x208   : > { %v1057_v61 = vmul.f32 -0.001358992, %v5301_v53  ;;  %v1064_v60 = vmul.f32 -0.00019511016, %v5301_v53  ;;  %v5318_v22 = vmul.u32 %v2219_v40, %v2218_v14  ;;  %v5324_v8 = vshll.u32 %v6447_v16, %v5064_v32 }
 0x209   : > { %v1055_v7 = vsel %vm5277_vm2, 0, %v1053_v36  ;;  %v1184_v56 = vshll.u32 %v1183_v50, 30  ;;  %v1420_v12 = vshrl.u32 %v6447_v16, %v5304_v5  ;;  %v2225_v63 = vshll.u32 %v2222_v34, 16 }
 0x20a   : > { %v1058_v51 = vadd.f32 0.041655596, %v1057_v61  ;;  %v2227_v42 = vshll.u32 %v5318_v22, 16  ;;  %v1065_v9 = vadd.f32 0.008332121, %v1064_v60  ;;  %v2224_v10 = vmul.u32 %v2220_v3, %v2218_v14 }
 0x20b   : > { %v1185_v20 = vsub.s32 %v1181_v17, %v1184_v56  ;;  %v2242_v37 = vshrl.u32 %v2211_v41, 16  ;;  %v5333_v21 = vshrl.u32 %v6448_v59, %v5304_v5  ;;  %v1072_v15 = vadd.s32 3, %v1055_v7 }
 0x20c   : > { %vm2229_vm14 = vc.u32 %v2221_v43, %v2225_v63  ;;  %v2231_v18 = vadd.s32 %v2225_v63, %v2221_v43  ;;  %v2184_v54 = vshrl.u32 %v6476_v55, %v6557_v58  ;;  %v2241_v62 = vand.u32 65535, %v2211_v41 }
 0x20d   : > { %vm1186_vm5 = vcmp.lt.s32.totalorder %v1185_v20, 0  ;;  %v1187_v23 = vsub.s32 0, %v1185_v20  ;;  %v1059_v40 = vmul.f32 %v1058_v51, %v5301_v53  ;;  %vm6565_vm4 = vcmp.lt.s32.totalorder %v6558_v35, 4 }
 0x20e   : > { %v2205_v17 = vsel %vm6565_vm4, %v2193_v26, 2102212464  ;;  %v2230_v3 = vsel %vm2229_vm14, 1, %v6479_v38  ;;  %vm2233_vm15 = vc.u32 %v2231_v18, %v2227_v42  ;;  %v1066_v36 = vmul.f32 %v1065_v9, %v5301_v53 }
 0x20f   : > { %v1188_v61 = vsel %vm1186_vm5, %v1187_v23, %v1185_v20  ;;  %v2232_v60 = vadd.s32 %v2230_v3, %v2224_v10  ;;  %v2244_v7 = vmul.u32 %v2242_v37, %v2217_v33  ;;  %v5342_v43 = vor.u32 %v1420_v12, %v1419_v49 }
 0x210   : > { %vm1085_vm13 = vcmp.lt.s32.totalorder %v6547_v4, 0  ;;  %v1189_v56 = vclz %v1188_v61  ;;  %v2234_v58 = vsel %vm2233_vm15, 1, %v6479_v38  ;;  %v6566_v41 = vand.u32 2147483647, %v6547_v4 }
 0x211   : > { %v1207_v26 = vsub.s32 4, %v1183_v50  ;;  %v2204_v63 = vsel %vm2200_vm3, %v2184_v54, %v5255_v57  ;;  %v2206_v49 = vsel %vm2202_vm12, %v5257_v29, %v2205_v17  ;;  %v2245_v12 = vmul.u32 %v2241_v62, %v2218_v14 }
 0x212   : > { %vm5348_vm6 = vcmp.le.f32.partialorder %v6566_v41, 0.7853982  ;;  %v1060_v42 = vadd.f32 -0.4999988, %v1059_v40  ;;  %v5358_v9 = vand.u32 3, %v1072_v15  ;;  %v3274_v10 = vadd.s32 4294967294, %v1189_v56 }
 0x213   : > { %v2243_v18 = vmul.u32 %v2241_v62, %v2217_v33  ;;  %v1067_v23 = vadd.f32 -0.16666654, %v1066_v36  ;;  %v2226_v3 = vshrl.u32 %v2222_v34, 16  ;;  %v2236_v61 = vadd.s32 %v2234_v58, %v2232_v60 }
 0x214   : > { %v2247_v41 = vshll.u32 %v2244_v7, 16  ;;  %v1177_v30 = vadd.s32 %v5237_v39, %v5232_v28  ;;  %vm3275_vm8 = vcmp.lt.s32.totalorder %v3274_v10, 0  ;;  %v5364_v57 = vsel %vm2201_vm7, %v2204_v63, %v2206_v49 }
 0x215   : > { %v2246_v54 = vmul.u32 %v2242_v37, %v2218_v14  ;;  %v1192_v29 = vsel %vm3275_vm8, 0, %v3274_v10  ;;  %v1208_v15 = vsel %vm1085_vm13, %v1207_v26, %v1183_v50  ;;  %v2228_v40 = vshrl.u32 %v5318_v22, 16  ;;  %v6569_v22 = vld [vmem:[#allocation33_spill] sm:$0xff] }
 0x216   : > { %v2249_v33 = vshll.u32 %v2245_v12, 16  ;;  %v1061_v34 = vmul.f32 %v1060_v42, %v5301_v53  ;;  %v1193_v62 = vsub.s32 32, %v1192_v29  ;;  %v1197_v17 = vsub.s32 4294967266, %v1192_v29 }
 0x217   : > { %vm2251_vm1 = vc.u32 %v2243_v18, %v2247_v41  ;;  %v1068_v28 = vmul.f32 %v1067_v23, %v5301_v53  ;;  %v2237_v39 = vadd.s32 %v2236_v61, %v2226_v3  ;;  %v2253_v36 = vadd.s32 %v2247_v41, %v2243_v18 }
 0x218   : > { %v2252_v35 = vsel %vm2251_vm1, 1, %v6479_v38  ;;  %v1194_v60 = vshll.u32 %v1185_v20, %v1192_v29  ;;  %v1195_v14 = vshrl.u32 %v1177_v30, %v1193_v62  ;;  %v1198_v37 = vadd.s32 127, %v1197_v17  ;;  %v6571_v29 = vld [vmem:[#allocation60_spill] sm:$0xff] }
 0x219   : > { %v2254_v56 = vadd.s32 %v2252_v35, %v2246_v54  ;;  %v2248_v58 = vshrl.u32 %v2244_v7, 16  ;;  %vm2255_vm10 = vc.u32 %v2253_v36, %v2249_v33  ;;  %v2261_v50 = vmul.u32 %v5297_v19, %v5364_v57  ;;  %v6570_v57 = vld [vmem:[#allocation58_spill] sm:$0xff] }
 0x21a   : > { %v6412_v26 = vand.u32 2147483647, %v6569_v22  ;;  %v1196_v63 = vor.u32 %v1195_v14, %v1194_v60  ;;  %v1199_v49 = vshll.u32 %v1198_v37, 23  ;;  %v1210_v53 = vsel %vm5348_vm6, 0, %v1208_v15 }
 0x21b   : > { %v2256_v42 = vsel %vm2255_vm10, 1, %v6479_v38  ;;  %v1062_v10 = vadd.f32 1.0, %v1061_v34  ;;  %v1069_v18 = vadd.f32 1.0, %v1068_v28  ;;  %v2250_v20 = vshrl.u32 %v2245_v12, 16 }
 0x21c   : > { %v2258_v30 = vadd.s32 %v2256_v42, %v2254_v56  ;;  %v1200_v23 = vor.u32 4788187, %v1199_v49  ;;  %v5378_v3 = vadd.s32 %v2237_v39, %v2228_v40  ;;  %v5380_v7 = vadd.s32 %v2253_v36, %v2249_v33  ;;  %v6572_v56 = vld [vmem:[#allocation57_spill] sm:$0xff]  ;;  %v6574_v42 = vld [vmem:[#allocation63_spill] sm:$0xff] }
 0x21d   : > { %v2330_v19 = vand.u32 8388607, %v6412_v26  ;;  %v1203_v61 = vcvt.s32.f32 %v1196_v63  ;;  %v2340_v54 = vshll.u32 %v6476_v55, %v6570_v57  ;;  %v2341_v15 = vshrl.u32 %v6480_v6, %v6571_v29  ;;  %v6573_v49 = vld [vmem:[#allocation65_spill] sm:$0xff] }
 0x21e   : > { %v2259_v41 = vadd.s32 %v2258_v30, %v2248_v58  ;;  %v1201_v34 = vand.u32 2147483647, %v1200_v23  ;;  %v2343_v12 = vshll.u32 %v6480_v6, %v6570_v57  ;;  %v2344_v40 = vshrl.u32 %v6481_v24, %v6571_v29  ;;  %v6575_v30 = vld [vmem:[#allocation64_spill] sm:$0xff] }
 0x21f   : > { %v2331_v62 = vor.u32 8388608, %v2330_v19  ;;  %v5392_v17 = vor.u32 %v2341_v15, %v2340_v54  ;;  %v2346_v28 = vshll.u32 %v6481_v24, %v6570_v57  ;;  %v2347_v39 = vshrl.u32 %v6449_v2, %v6571_v29 }
 0x220   : > { %v2260_v33 = vadd.s32 %v2259_v41, %v2250_v20  ;;  %v1070_v35 = vmul.f32 %v1069_v18, %v5290_v44  ;;  %vm1075_vm9 = vcmp.eq.s32.totalorder %v5358_v9, 0  ;;  %v1204_v36 = vmul.f32 %v1203_v61, %v1201_v34 }
 0x221   : > { %vm2263_vm3 = vc.u32 %v5378_v3, %v5380_v7  ;;  %v5402_v60 = vor.u32 %v2344_v40, %v2343_v12  ;;  %v2348_v37 = vor.u32 %v2347_v39, %v2346_v28  ;;  %vm2355_vm12 = vcmp.lt.s32.totalorder %v6572_v56, 1 }
 0x222   : > { %v2264_v14 = vadd.s32 1, %v2260_v33  ;;  %vm2357_vm7 = vcmp.lt.s32.totalorder %v6572_v56, 3  ;;  %v1205_v58 = vxor.u32 2147483648, %v1204_v36  ;;  %v1227_v63 = vadd.s32 3, %v1210_v53 }
 0x223   : > { %v2363_v44 = vsel %vm2355_vm12, %v5392_v17, %v5402_v60  ;;  %v2369_v18 = vsel %vm2357_vm7, %v6574_v42, %v6573_v49  ;;  %v2365_v23 = vsel %vm2357_vm7, %v2348_v37, %v6575_v30  ;;  %v2367_v19 = vsel %vm2355_vm12, %v5402_v60, %v2348_v37 }
 0x224   : > { %v2265_v20 = vsel %vm2263_vm3, %v2264_v14, %v2260_v33  ;;  %v5420_v53 = vshll.u32 %v2331_v62, 8  ;;  %v1079_v61 = vxor.u32 2147483648, %v1062_v10  ;;  %v1206_v41 = vsel %vm1085_vm13, %v1205_v58, %v1204_v36 }
 0x225   : > { %v2266_v57 = vadd.s32 %v2265_v20, %v2261_v50  ;;  %vm2356_vm11 = vcmp.lt.s32.totalorder %v6572_v56, 2  ;;  %v1076_v54 = vxor.u32 2147483648, %v1070_v35  ;;  %vm1078_vm2 = vcmp.eq.s32.totalorder %v5358_v9, 2 }
 0x226   : > { %v5429_v15 = vsel %vm5348_vm6, %v6547_v4, %v1206_v41  ;;  %v2370_v34 = vsel %vm2356_vm11, %v2367_v19, %v2369_v18  ;;  %vm1074_vm14 = vcmp.lt.s32.totalorder %v5358_v9, 2  ;;  %v5438_v50 = vsel %vm2356_vm11, %v2363_v44, %v2365_v23 }
 0x227   : > { %v1211_v62 = vmul.f32 %v5429_v15, %v5429_v15  ;;  %v2267_v12 = vadd.s32 536870912, %v2266_v57  ;;  %v2374_v40 = vand.u32 65535, %v2370_v34  ;;  %v5440_v33 = vand.u32 3, %v1227_v63 }
 0x228   : > { %v2372_v51 = vand.u32 65535, %v5420_v53  ;;  %v2373_v28 = vshrl.u32 %v5420_v53, 16  ;;  %v2375_v39 = vshrl.u32 %v2370_v34, 16  ;;  %v1080_v36 = vsel %vm1078_vm2, %v1079_v61, %v1070_v35 }
 0x229   : > { %v1212_v14 = vmul.f32 -0.001358992, %v1211_v62  ;;  %v1219_v58 = vmul.f32 -0.00019511016, %v1211_v62  ;;  %v5444_v49 = vshrl.u32 %v2267_v12, 30  ;;  %v1077_v42 = vsel %vm1075_vm9, %v1062_v10, %v1076_v54 }
 0x22a   : > { %v2377_v18 = vmul.u32 %v2375_v39, %v2372_v51  ;;  %v5448_v20 = vmul.u32 %v2374_v40, %v2373_v28  ;;  %v2397_v44 = vshrl.u32 %v5438_v50, 16  ;;  %vm1071_vm5 = vweird.f32 %v6538_v52 }
 0x22b   : > { %v1213_v63 = vadd.f32 0.041655596, %v1212_v14  ;;  %v1220_v30 = vadd.f32 0.008332121, %v1219_v58  ;;  %v2269_v23 = vshll.u32 %v5444_v49, 30  ;;  %v2339_v35 = vshrl.u32 %v6476_v55, %v6571_v29 }
 0x22c   : > { %vm6576_vm4 = vcmp.lt.s32.totalorder %v6572_v56, 4  ;;  %v2376_v61 = vmul.u32 %v2374_v40, %v2372_v51  ;;  %v2380_v41 = vshll.u32 %v2377_v18, 16  ;;  %v2396_v10 = vand.u32 65535, %v5438_v50 }
 0x22d   : > { %v2360_v19 = vsel %vm6576_vm4, %v2348_v37, 2102212464  ;;  %v1214_v54 = vmul.f32 %v1213_v63, %v1211_v62  ;;  %v1221_v34 = vmul.f32 %v1220_v30, %v1211_v62  ;;  %v5458_v12 = vsub.s32 %v2266_v57, %v2269_v23 }
 0x22e   : > { %v2379_v26 = vmul.u32 %v2375_v39, %v2373_v28  ;;  %v2382_v14 = vshll.u32 %v5448_v20, 16  ;;  %vm2384_vm15 = vc.u32 %v2376_v61, %v2380_v41  ;;  %v2386_v58 = vadd.s32 %v2380_v41, %v2376_v61 }
 0x22f   : > { %v5461_v16 = vmul.u32 %v2397_v44, %v2372_v51  ;;  %v1215_v1 = vadd.f32 -0.4999988, %v1214_v54  ;;  %v1222_v29 = vadd.f32 -0.16666654, %v1221_v34  ;;  %vm2271_vm13 = vcmp.lt.s32.totalorder %v5458_v12, 0 }
 0x230   : > { %v2272_v37 = vsub.s32 0, %v5458_v12  ;;  %v1081_v50 = vsel %vm1074_vm14, %v1077_v42, %v1080_v36  ;;  %vm1230_vm6 = vcmp.eq.s32.totalorder %v5440_v33, 0  ;;  %v2359_v57 = vsel %vm2355_vm12, %v2339_v35, %v5392_v17 }
 0x231   : > { %v2385_v40 = vsel %vm2384_vm15, 1, %v6479_v38  ;;  %vm2388_vm8 = vc.u32 %v2386_v58, %v2382_v14  ;;  %v1216_v39 = vmul.f32 %v1215_v1, %v1211_v62  ;;  %v1223_v63 = vmul.f32 %v1222_v29, %v1211_v62 }
 0x232   : > { %vm1229_vm1 = vcmp.lt.s32.totalorder %v5440_v33, 2  ;;  %v2273_v30 = vsel %vm2271_vm13, %v2272_v37, %v5458_v12  ;;  %v2387_v23 = vadd.s32 %v2385_v40, %v2379_v26  ;;  %vm1226_vm10 = vweird.f32 %v6547_v4 }
 0x233   : > { %v2274_v9 = vclz %v2273_v30  ;;  %v2361_v36 = vsel %vm2357_vm7, %v5402_v60, %v2360_v19  ;;  %v2389_v42 = vsel %vm2388_vm8, 1, %v6479_v38  ;;  %v2400_v17 = vmul.u32 %v2396_v10, %v2373_v28 }
 0x234   : > { %v1217_v35 = vadd.f32 1.0, %v1216_v39  ;;  %v1224_v61 = vadd.f32 1.0, %v1223_v63  ;;  %v2391_v41 = vadd.s32 %v2389_v42, %v2387_v23  ;;  %v2402_v1 = vshll.u32 %v5461_v16, 16  ;;  %v6577_v63 = vld [vmem:[#allocation8_spill] sm:$0xff] }
 0x235   : > { %v1082_v62 = vsel %vm1071_vm5, nan, %v1081_v50  ;;  %vm1233_vm9 = vcmp.eq.s32.totalorder %v5440_v33, 2  ;;  %v3295_v26 = vadd.s32 4294967294, %v2274_v9  ;;  %v2398_v54 = vmul.u32 %v2396_v10, %v2372_v51 }
 0x236   : > { %v1225_v34 = vmul.f32 %v1224_v61, %v5429_v15  ;;  %v1234_v14 = vxor.u32 2147483648, %v1217_v35  ;;  %v2262_v60 = vadd.s32 %v5380_v7, %v5378_v3  ;;  %v2381_v19 = vshrl.u32 %v2377_v18, 16 }
 0x237   : > { %vm3296_vm3 = vcmp.lt.s32.totalorder %v3295_v26, 0  ;;  %v5488_v58 = vsel %vm2356_vm11, %v2359_v57, %v2361_v36  ;;  %v2401_v29 = vmul.u32 %v2397_v44, %v2373_v28  ;;  %vm2406_vm12 = vc.u32 %v2398_v54, %v2402_v1 }
 0x238   : > { %v1231_v52 = vxor.u32 2147483648, %v1225_v34  ;;  %v2277_v37 = vsel %vm3296_vm3, 0, %v3295_v26  ;;  %v2392_v50 = vadd.s32 %v2391_v41, %v2381_v19  ;;  %v2404_v40 = vshll.u32 %v2400_v17, 16 }
 0x239   : > { %v1235_v39 = vsel %vm1233_vm9, %v1234_v14, %v1225_v34  ;;  %v2278_v51 = vsub.s32 32, %v2277_v37  ;;  %v2282_v10 = vsub.s32 4294967266, %v2277_v37  ;;  %v2407_v15 = vsel %vm2406_vm12, 1, %v6479_v38 }
 0x23a   : > { %v1232_v3 = vsel %vm1230_vm6, %v1217_v35, %v1231_v52  ;;  %v2408_v7 = vadd.s32 %v2402_v1, %v2398_v54  ;;  %v2409_v18 = vadd.s32 %v2407_v15, %v2401_v29  ;;  %v1238_v56 = vand.u32 2147483647, %v6577_v63 }
 0x23b   : > { %v1236_v28 = vsel %vm1229_vm1, %v1232_v3, %v1235_v39  ;;  %v2279_v44 = vshll.u32 %v5458_v12, %v2277_v37  ;;  %v2280_v57 = vshrl.u32 %v2262_v60, %v2278_v51  ;;  %v2283_v30 = vadd.s32 127, %v2282_v10  ;;  %v6579_v60 = vld [vmem:[#allocation32_spill] sm:$0xff] }
 0x23c   : > { %v1237_v23 = vsel %vm1226_vm10, nan, %v1236_v28  ;;  %v2383_v9 = vshrl.u32 %v5448_v20, 16  ;;  %v2403_v36 = vshrl.u32 %v5461_v16, 16  ;;  %vm2410_vm7 = vc.u32 %v2408_v7, %v2404_v40  ;;  %v6578_v20 = vld [vmem:[#allocation30_spill] sm:$0xff]  ;;  %v6580_v51 = vld [vmem:[#allocation36_spill] sm:$0xff] }
 0x23d   : > { %v2790_v42 = vpack.c.bf16 %v1237_v23, %v1082_v62  ;;  %v2281_v35 = vor.u32 %v2280_v57, %v2279_v44  ;;  %v2284_v61 = vshll.u32 %v2283_v30, 23  ;;  %v2411_v41 = vsel %vm2410_vm7, 1, %v6479_v38  ;;  %v6581_v28 = vld [vmem:[#allocation50_spill] sm:$0xff]  ;;  %v6582_v44 = vld [vmem:[#allocation41_spill] sm:$0xff] }
 0x23e   : > { %v5502_v1 = vadd.s32 %v2392_v50, %v2383_v9  ;;  %v2405_v33 = vshrl.u32 %v2400_v17, 16  ;;  %v2413_v26 = vadd.s32 %v2411_v41, %v2409_v18  ;;  %v1245_v12 = vand.u32 8388607, %v1238_v56  ;;  %v6583_v9 = vld [vmem:[#allocation45_spill] sm:$0xff] }
 0x23f   : > { %2895 = vmatmul.bf16.gmra.mxu0 %v2790_v42  ;;  %v2285_v4 = vor.u32 4788187, %v2284_v61  ;;  %v2288_v54 = vcvt.s32.f32 %v2281_v35  ;;  %v5506_v34 = vadd.s32 %v2408_v7, %v2404_v40  ;;  %v1255_v16 = vshll.u32 %v6476_v55, %v6578_v20 }
 0x240   : > { %v2414_v62 = vadd.s32 %v2413_v26, %v2403_v36  ;;  %v1246_v14 = vor.u32 8388608, %v1245_v12  ;;  %v1256_v19 = vshrl.u32 %v6480_v6, %v6579_v60  ;;  %v1258_v17 = vshll.u32 %v6480_v6, %v6578_v20 }
 0x241   : > { %v2286_v29 = vand.u32 2147483647, %v2285_v4  ;;  %v1259_v52 = vshrl.u32 %v6481_v24, %v6579_v60  ;;  %v1261_v37 = vshll.u32 %v6481_v24, %v6578_v20  ;;  %v1262_v50 = vshrl.u32 %v6449_v2, %v6579_v60 }
 0x242   : > { %v2415_v40 = vadd.s32 %v2414_v62, %v2405_v33  ;;  %vm2418_vm11 = vc.u32 %v5502_v1, %v5506_v34  ;;  %v5522_v39 = vor.u32 %v1256_v19, %v1255_v16  ;;  %vm1270_vm2 = vcmp.lt.s32.totalorder %v6580_v51, 1 }
 0x243   : > { %v2289_v10 = vmul.f32 %v2288_v54, %v2286_v29  ;;  %v5525_v15 = vor.u32 %v1259_v52, %v1258_v17  ;;  %v1263_v3 = vor.u32 %v1262_v50, %v1261_v37  ;;  %vm1272_vm14 = vcmp.lt.s32.totalorder %v6580_v51, 3 }
 0x244   : > { %v2416_v7 = vmul.u32 %v5420_v53, %v5488_v58  ;;  %v2419_v18 = vadd.s32 1, %v2415_v40  ;;  %vm1271_vm5 = vcmp.lt.s32.totalorder %v6580_v51, 2  ;;  %v1284_v57 = vsel %vm1272_vm14, %v6582_v44, %v6581_v28 }
 0x245   : > { %v2290_v30 = vxor.u32 2147483648, %v2289_v10  ;;  %v1278_v23 = vsel %vm1270_vm2, %v5522_v39, %v5525_v15  ;;  %v1280_v36 = vsel %vm1272_vm14, %v1263_v3, %v6583_v9  ;;  %v5542_v42 = vshll.u32 %v1246_v14, 8 }
 0x246   : > { %vm2170_vm4 = vcmp.lt.s32.totalorder %v6555_v45, 0  ;;  %v2292_v53 = vsub.s32 4, %v5444_v49  ;;  %v2420_v58 = vsel %vm2418_vm11, %v2419_v18, %v2415_v40  ;;  %v1282_v35 = vsel %vm1270_vm2, %v5525_v15, %v1263_v3 }
 0x247   : > { %v6584_v61 = vand.u32 2147483647, %v6555_v45  ;;  %v2291_v33 = vsel %vm2170_vm4, %v2290_v30, %v2289_v10  ;;  %v2421_v26 = vadd.s32 %v2420_v58, %v2416_v7  ;;  %v1285_v12 = vsel %vm1271_vm5, %v1282_v35, %v1284_v57 }
 0x248   : > { %v1424_v4 = vor.u32 %v5333_v21, %v5324_v8  ;;  %v5571_v20 = vsel %vm1271_vm5, %v1278_v23, %v1280_v36  ;;  %v1289_v16 = vand.u32 65535, %v1285_v12  ;;  %v1287_v19 = vand.u32 65535, %v5542_v42 }
 0x249   : > { %vm5554_vm15 = vcmp.le.f32.partialorder %v6584_v61, 0.7853982  ;;  %v2422_v14 = vadd.s32 536870912, %v2421_v26  ;;  %v1290_v17 = vshrl.u32 %v1285_v12, 16  ;;  %v6587_v8 = vor.u32 %v4964_v0, %v4701_v48 }
 0x24a   : > { %v5567_v54 = vsel %vm5554_vm15, %v6555_v45, %v2291_v33  ;;  %vm1428_vm13 = vcmp.lt.s32.totalorder %v5312_v11, 4  ;;  %v2293_v29 = vsel %vm2170_vm4, %v2292_v53, %v5444_v49  ;;  %v1288_v52 = vshrl.u32 %v5542_v42, 16 }
 0x24b   : > { %v5575_v62 = vmul.f32 %v5567_v54, %v5567_v54  ;;  %v5583_v21 = vsel %vm2513_vm0, %v6587_v8, 1326507024  ;;  %v2423_v40 = vshrl.u32 %v2422_v14, 30  ;;  %v1292_v10 = vmul.u32 %v1290_v17, %v1287_v19 }
 0x24c   : > { %v5595_v48 = vsel %vm1428_vm13, %v5342_v43, 920167782  ;;  %v5599_v0 = vsel %vm1428_vm13, %v1424_v4, 1326507024  ;;  %v1293_v7 = vmul.u32 %v1289_v16, %v1288_v52  ;;  %v1312_v49 = vshrl.u32 %v5571_v20, 16 }
 0x24d   : > { %v2297_v37 = vmul.f32 -0.001358992, %v5575_v62  ;;  %v2304_v50 = vmul.f32 -0.00019511016, %v5575_v62  ;;  %v5604_v18 = vshrl.u32 %v6448_v59, %v4768_v13  ;;  %v2424_v57 = vshll.u32 %v2423_v40, 30 }
 0x24e   : > { %v2295_v30 = vsel %vm5554_vm15, 0, %v2293_v29  ;;  %v1254_v23 = vshrl.u32 %v6476_v55, %v6579_v60  ;;  %v1291_v9 = vmul.u32 %v1289_v16, %v1287_v19  ;;  %v1295_v36 = vshll.u32 %v1292_v10, 16 }
 0x24f   : > { %v2298_v28 = vadd.f32 0.041655596, %v2297_v37  ;;  %v2305_v44 = vadd.f32 0.008332121, %v2304_v50  ;;  %v2425_v58 = vsub.s32 %v2421_v26, %v2424_v57  ;;  %vm6588_vm6 = vcmp.lt.s32.totalorder %v6580_v51, 4 }
 0x250   : > { %v1275_v35 = vsel %vm6588_vm6, %v1263_v3, 2102212464  ;;  %v1311_v59 = vand.u32 65535, %v5571_v20  ;;  %v1297_v61 = vshll.u32 %v1293_v7, 16  ;;  %vm1299_vm8 = vc.u32 %v1291_v9, %v1295_v36 }
 0x251   : > { %v2306_v53 = vmul.f32 %v2305_v44, %v5575_v62  ;;  %v1301_v33 = vadd.s32 %v1295_v36, %v1291_v9  ;;  %v1314_v12 = vmul.u32 %v1312_v49, %v1287_v19  ;;  %v2299_v41 = vmul.f32 %v2298_v28, %v5575_v62 }
 0x252   : > { %vm2426_vm1 = vcmp.lt.s32.totalorder %v2425_v58, 0  ;;  %v2427_v4 = vsub.s32 0, %v2425_v58  ;;  %v1294_v14 = vmul.u32 %v1290_v17, %v1288_v52  ;;  %v2312_v60 = vadd.s32 3, %v2295_v30 }
 0x253   : > { %vm2325_vm10 = vcmp.lt.s32.totalorder %v6569_v22, 0  ;;  %v1300_v16 = vsel %vm1299_vm8, 1, %v6479_v38  ;;  %vm1303_vm9 = vc.u32 %v1301_v33, %v1297_v61  ;;  %v2307_v26 = vadd.f32 -0.16666654, %v2306_v53 }
 0x254   : > { %v2428_v8 = vsel %vm2426_vm1, %v2427_v4, %v2425_v58  ;;  %v1274_v3 = vsel %vm1270_vm2, %v1254_v23, %v5522_v39  ;;  %v1302_v20 = vadd.s32 %v1300_v16, %v1294_v14  ;;  %v6589_v29 = vand.u32 2147483647, %v6569_v22 }
 0x255   : > { %v2429_v17 = vclz %v2428_v8  ;;  %v1276_v50 = vsel %vm1272_vm14, %v5525_v15, %v1275_v35  ;;  %v1304_v28 = vsel %vm1303_vm9, 1, %v6479_v38  ;;  %v1317_v44 = vshll.u32 %v1314_v12, 16 }
 0x256   : > { %vm5622_vm3 = vcmp.le.f32.partialorder %v6589_v29, 0.7853982  ;;  %v2300_v57 = vadd.f32 -0.4999988, %v2299_v41  ;;  %v1296_v30 = vshrl.u32 %v1292_v10, 16  ;;  %v1306_v9 = vadd.s32 %v1304_v28, %v1302_v20 }
 0x257   : > { %v1315_v36 = vmul.u32 %v1311_v59, %v1288_v52  ;;  %v5630_v39 = vand.u32 3, %v2312_v60  ;;  %v3298_v23 = vadd.s32 4294967294, %v2429_v17  ;;  %v2447_v53 = vsub.s32 4, %v2423_v40 }
 0x258   : > { %v1313_v61 = vmul.u32 %v1311_v59, %v1287_v19  ;;  %v2308_v33 = vmul.f32 %v2307_v26, %v5575_v62  ;;  %v2417_v4 = vadd.s32 %v5506_v34, %v5502_v1  ;;  %v1277_v15 = vsel %vm1271_vm5, %v1274_v3, %v1276_v50 }
 0x259   : > { %v1307_v35 = vadd.s32 %v1306_v9, %v1296_v30  ;;  %vm3299_vm12 = vcmp.lt.s32.totalorder %v3298_v23, 0  ;;  %v1298_v14 = vshrl.u32 %v1293_v7, 16  ;;  %v2301_v41 = vmul.f32 %v2300_v57, %v5575_v62  ;;  %v6592_v57 = vld [vmem:[#allocation59_spill] sm:$0xff] }
 0x25a   : > { %vm1321_vm7 = vc.u32 %v1313_v61, %v1317_v44  ;;  %v1323_v10 = vadd.s32 %v1317_v44, %v1313_v61  ;;  %v2432_v60 = vsel %vm3299_vm12, 0, %v3298_v23  ;;  %v1316_v16 = vmul.u32 %v1312_v49, %v1288_v52 }
 0x25b   : > { %v1319_v8 = vshll.u32 %v1315_v36, 16  ;;  %v2433_v20 = vsub.s32 32, %v2432_v60  ;;  %v2437_v19 = vsub.s32 4294967266, %v2432_v60  ;;  %v2448_v59 = vsel %vm2325_vm10, %v2447_v53, %v2423_v40 }
 0x25c   : > { %v1322_v1 = vsel %vm1321_vm7, 1, %v6479_v38  ;;  %v2309_v34 = vadd.f32 1.0, %v2308_v33  ;;  %v5641_v51 = vadd.s32 %v1307_v35, %v1298_v14  ;;  %v2434_v7 = vshll.u32 %v2425_v58, %v2432_v60 }
 0x25d   : > { %v1324_v26 = vadd.s32 %v1322_v1, %v1316_v16  ;;  %vm1325_vm11 = vc.u32 %v1323_v10, %v1319_v8  ;;  %v2435_v3 = vshrl.u32 %v2417_v4, %v2433_v20  ;;  %v2438_v29 = vadd.s32 127, %v2437_v19 }
 0x25e   : > { %v1326_v62 = vsel %vm1325_vm11, 1, %v6479_v38  ;;  %v5644_v17 = vadd.f32 1.0, %v2301_v41  ;;  %v2450_v52 = vsel %vm5622_vm3, 0, %v2448_v59  ;;  %v1318_v49 = vshrl.u32 %v1314_v12, 16 }
 0x25f   : > { %v1328_v50 = vadd.s32 %v1326_v62, %v1324_v26  ;;  %v2436_v40 = vor.u32 %v2435_v3, %v2434_v7  ;;  %v2439_v28 = vshll.u32 %v2438_v29, 23  ;;  %v5648_v44 = vadd.s32 %v1323_v10, %v1319_v8 }
 0x260   : > { %v1393_v30 = vand.u32 2147483647, %v6592_v57  ;;  %v2310_v9 = vmul.f32 %v2309_v34, %v5567_v54  ;;  %v1320_v58 = vshrl.u32 %v1315_v36, 16  ;;  %v1411_v53 = vshrl.u32 %v6480_v6, %v5304_v5 }
 0x261   : > { %v1329_v23 = vadd.s32 %v1328_v50, %v1318_v49  ;;  %v2440_v61 = vor.u32 4788187, %v2439_v28  ;;  %vm1333_vm2 = vc.u32 %v5641_v51, %v5648_v44  ;;  %v1410_v33 = vshll.u32 %v6476_v55, %v5064_v32 }
 0x262   : > { %v1400_v12 = vand.u32 8388607, %v1393_v30  ;;  %v2443_v4 = vcvt.s32.f32 %v2436_v40  ;;  %v1413_v54 = vshll.u32 %v6480_v6, %v5064_v32  ;;  %v1414_v36 = vshrl.u32 %v6481_v24, %v5304_v5 }
 0x263   : > { %v1330_v35 = vadd.s32 %v1329_v23, %v1320_v58  ;;  %v2441_v14 = vand.u32 2147483647, %v2440_v61  ;;  %v1416_v41 = vshll.u32 %v6481_v24, %v5064_v32  ;;  %v1417_v60 = vshrl.u32 %v6449_v2, %v5304_v5 }
 0x264   : > { %v1401_v10 = vor.u32 8388608, %v1400_v12  ;;  %v1331_v16 = vmul.u32 %v5542_v42, %v1277_v15  ;;  %v5669_v20 = vor.u32 %v1411_v53, %v1410_v33  ;;  %v5671_v19 = vor.u32 %v1414_v36, %v1413_v54 }
 0x265   : > { %v1334_v8 = vadd.s32 1, %v1330_v35  ;;  %v2444_v59 = vmul.f32 %v2443_v4, %v2441_v14  ;;  %v2467_v1 = vadd.s32 3, %v2450_v52  ;;  %v5673_v34 = vor.u32 %v1417_v60, %v1416_v41 }
 0x266   : > { %vm1427_vm14 = vcmp.lt.s32.totalorder %v5312_v11, 3  ;;  %vm2314_vm5 = vcmp.lt.s32.totalorder %v5630_v39, 2  ;;  %v2319_v32 = vxor.u32 2147483648, %v5644_v17  ;;  %v5685_v15 = vshll.u32 %v1401_v10, 8 }
 0x267   : > { %v1335_v26 = vsel %vm1333_vm2, %v1334_v8, %v1330_v35  ;;  %v1439_v42 = vsel %vm1427_vm14, %v5342_v43, %v5599_v0  ;;  %v2316_v7 = vxor.u32 2147483648, %v2310_v9  ;;  %v2445_v3 = vxor.u32 2147483648, %v2444_v59 }
 0x268   : > { %v1336_v29 = vadd.s32 %v1335_v26, %v1331_v16  ;;  %vm1425_vm4 = vcmp.lt.s32.totalorder %v5312_v11, 1  ;;  %vm1426_vm15 = vcmp.lt.s32.totalorder %v5312_v11, 2  ;;  %v1435_v52 = vsel %vm1427_vm14, %v5673_v34, %v5595_v48 }
 0x269   : > { %v1433_v62 = vsel %vm1425_vm4, %v5669_v20, %v5671_v19  ;;  %v1437_v43 = vsel %vm1425_vm4, %v5671_v19, %v5673_v34  ;;  %v2446_v0 = vsel %vm2325_vm10, %v2445_v3, %v2444_v59  ;;  %v5706_v40 = vand.u32 65535, %v5685_v15 }
 0x26a   : > { %v1337_v49 = vadd.s32 536870912, %v1336_v29  ;;  %v1440_v50 = vsel %vm1426_vm15, %v1437_v43, %v1439_v42  ;;  %v5711_v28 = vsel %vm5622_vm3, %v6569_v22, %v2446_v0  ;;  %v5714_v48 = vshrl.u32 %v5685_v15, 16 }
 0x26b   : > { %v1444_v58 = vand.u32 65535, %v1440_v50  ;;  %v1445_v23 = vshrl.u32 %v1440_v50, 16  ;;  %vm2311_vm6 = vweird.f32 %v6555_v45  ;;  %vm2315_vm8 = vcmp.eq.s32.totalorder %v5630_v39, 0 }
 0x26c   : > { %v2451_v53 = vmul.f32 %v5711_v28, %v5711_v28  ;;  %v5720_v61 = vshrl.u32 %v1337_v49, 30  ;;  %v5724_v12 = vsel %vm1426_vm15, %v1433_v62, %v1435_v52  ;;  %v2317_v37 = vsel %vm2315_vm8, %v5644_v17, %v2316_v7 }
 0x26d   : > { %vm2318_vm1 = vcmp.eq.s32.totalorder %v5630_v39, 2  ;;  %v1447_v33 = vmul.u32 %v1445_v23, %v5706_v40  ;;  %v5730_v4 = vmul.u32 %v1444_v58, %v5714_v48  ;;  %v5732_v36 = vand.u32 3, %v2467_v1 }
 0x26e   : > { %v2452_v35 = vmul.f32 -0.001358992, %v2451_v53  ;;  %v2459_v54 = vmul.f32 -0.00019511016, %v2451_v53  ;;  %v1339_v14 = vshll.u32 %v5720_v61, 30  ;;  %v2320_v10 = vsel %vm2318_vm1, %v2319_v32, %v2310_v9 }
 0x26f   : > { %v1446_v41 = vmul.u32 %v1444_v58, %v5706_v40  ;;  %v1450_v60 = vshll.u32 %v1447_v33, 16  ;;  %v1467_v16 = vshrl.u32 %v5724_v12, 16  ;;  %v2321_v17 = vsel %vm2314_vm5, %v2317_v37, %v2320_v10 }
 0x270   : > { %v2453_v8 = vadd.f32 0.041655596, %v2452_v35  ;;  %v2460_v59 = vadd.f32 0.008332121, %v2459_v54  ;;  %v5739_v26 = vsub.s32 %v1336_v29, %v1339_v14  ;;  %v1449_v42 = vmul.u32 %v1445_v23, %v5714_v48 }
 0x271   : > { %v1452_v1 = vshll.u32 %v5730_v4, 16  ;;  %vm1454_vm10 = vc.u32 %v1446_v41, %v1450_v60  ;;  %v1456_v7 = vadd.s32 %v1450_v60, %v1446_v41  ;;  %v1466_v39 = vand.u32 65535, %v5724_v12 }
 0x272   : > { %v2454_v3 = vmul.f32 %v2453_v8, %v2451_v53  ;;  %v2461_v9 = vmul.f32 %v2460_v59, %v2451_v53  ;;  %vm1341_vm9 = vcmp.lt.s32.totalorder %v5739_v26, 0  ;;  %v1342_v32 = vsub.s32 0, %v5739_v26 }
 0x273   : > { %v1455_v62 = vsel %vm1454_vm10, 1, %v6479_v38  ;;  %vm1458_vm3 = vc.u32 %v1456_v7, %v1452_v1  ;;  %v5748_v29 = vmul.u32 %v1467_v16, %v5706_v40  ;;  %v2322_v50 = vsel %vm2311_vm6, nan, %v2321_v17 }
 0x274   : > { %v2455_v52 = vadd.f32 -0.4999988, %v2454_v3  ;;  %v2462_v43 = vadd.f32 -0.16666654, %v2461_v9  ;;  %v1343_v0 = vsel %vm1341_vm9, %v1342_v32, %v5739_v26  ;;  %v1457_v49 = vadd.s32 %v1455_v62, %v1449_v42 }
 0x275   : > { %vm2470_vm12 = vcmp.eq.s32.totalorder %v5732_v36, 0  ;;  %vm2473_vm7 = vcmp.eq.s32.totalorder %v5732_v36, 2  ;;  %v1344_v58 = vclz %v1343_v0  ;;  %v1409_v23 = vshrl.u32 %v6476_v55, %v5304_v5 }
 0x276   : > { %v1459_v12 = vsel %vm1458_vm3, 1, %v6479_v38  ;;  %v2456_v37 = vmul.f32 %v2455_v52, %v2451_v53  ;;  %v2463_v35 = vmul.f32 %v2462_v43, %v2451_v53  ;;  %vm2469_vm11 = vcmp.lt.s32.totalorder %v5732_v36, 2 }
 0x277   : > { %v1430_v54 = vsel %vm1428_vm13, %v5673_v34, 2102212464  ;;  %v1461_v45 = vadd.s32 %v1459_v12, %v1457_v49  ;;  %vm2466_vm2 = vweird.f32 %v6569_v22  ;;  %v1332_v14 = vadd.s32 %v5648_v44, %v5641_v51 }
 0x278   : > { %v3277_v10 = vadd.s32 4294967294, %v1344_v58  ;;  %v1429_v5 = vsel %vm1425_vm4, %v1409_v23, %v5669_v20  ;;  %v1451_v41 = vshrl.u32 %v1447_v33, 16  ;;  %v2457_v60 = vadd.f32 1.0, %v2456_v37 }
 0x279   : > { %v2464_v53 = vadd.f32 1.0, %v2463_v35  ;;  %v1470_v17 = vmul.u32 %v1466_v39, %v5714_v48  ;;  %v1472_v8 = vshll.u32 %v5748_v29, 16  ;;  %v1431_v34 = vsel %vm1427_vm14, %v5671_v19, %v1430_v54 }
 0x27a   : > { %vm3278_vm5 = vcmp.lt.s32.totalorder %v3277_v10, 0  ;;  %v1453_v59 = vshrl.u32 %v5730_v4, 16  ;;  %v1468_v51 = vmul.u32 %v1466_v39, %v5706_v40  ;;  %v2474_v42 = vxor.u32 2147483648, %v2457_v60 }
 0x27b   : > { %v2465_v44 = vmul.f32 %v2464_v53, %v5711_v28  ;;  %v1347_v20 = vsel %vm3278_vm5, 0, %v3277_v10  ;;  %v1462_v33 = vadd.s32 %v1461_v45, %v1451_v41  ;;  %v1471_v3 = vmul.u32 %v1467_v16, %v5714_v48 }
 0x27c   : > { %v1348_v1 = vsub.s32 32, %v1347_v20  ;;  %v1352_v7 = vsub.s32 4294967266, %v1347_v20  ;;  %vm1476_vm13 = vc.u32 %v1468_v51, %v1472_v8  ;;  %v1474_v32 = vshll.u32 %v1470_v17, 16 }
 0x27d   : > { %v2471_v9 = vxor.u32 2147483648, %v2465_v44  ;;  %v1477_v62 = vsel %vm1476_vm13, 1, %v6479_v38  ;;  %v1478_v52 = vadd.s32 %v1472_v8, %v1468_v51  ;;  %v1349_v19 = vshll.u32 %v5739_v26, %v1347_v20 }
 0x27e   : > { %v1350_v4 = vshrl.u32 %v1332_v14, %v1348_v1  ;;  %v1353_v43 = vadd.s32 127, %v1352_v7  ;;  %v1479_v40 = vadd.s32 %v1477_v62, %v1471_v3  ;;  %v2475_v39 = vsel %vm2473_vm7, %v2474_v42, %v2465_v44  ;;  %v6593_v14 = vld [vmem:[#allocation49_spill] sm:$0xff] }
 0x27f   : > { %v2472_v28 = vsel %vm2470_vm12, %v2457_v60, %v2471_v9  ;;  %v5783_v0 = vadd.s32 %v1462_v33, %v1453_v59  ;;  %vm1480_vm14 = vc.u32 %v1478_v52, %v1474_v32  ;;  %v1473_v23 = vshrl.u32 %v5748_v29, 16 }
 0x280   : > { %v2476_v48 = vsel %vm2469_vm11, %v2472_v28, %v2475_v39  ;;  %v1351_v16 = vor.u32 %v1350_v4, %v1349_v19  ;;  %v1354_v49 = vshll.u32 %v1353_v43, 23  ;;  %v1481_v58 = vsel %vm1480_vm14, 1, %v6479_v38 }
 0x281   : > { %v2477_v26 = vsel %vm2466_vm2, nan, %v2476_v48  ;;  %v5791_v12 = vadd.s32 %v1478_v52, %v1474_v32  ;;  %v1483_v37 = vadd.s32 %v1481_v58, %v1479_v40  ;;  %v1432_v45 = vsel %vm1426_vm15, %v1429_v5, %v1431_v34  ;;  %v6597_v58 = vld [vmem:[#allocation42_spill] sm:$0xff] }
 0x282   : > { %v2794_v35 = vpack.c.bf16 %v2477_v26, %v2322_v50  ;;  %v1355_v54 = vor.u32 4788187, %v1354_v49  ;;  %v2478_v36 = vand.u32 2147483647, %v6593_v14  ;;  %v1362_v10 = vsub.s32 4, %v5720_v61  ;;  %v6596_v49 = vld [vmem:[#allocation16_spill] sm:$0xff] }
 0x283   : > { %v1475_v41 = vshrl.u32 %v1470_v17, 16  ;;  %v1484_v60 = vadd.s32 %v1483_v37, %v1473_v23  ;;  %vm1488_vm4 = vc.u32 %v5783_v0, %v5791_v12  ;;  %v1358_v29 = vcvt.s32.f32 %v1351_v16 }
 0x284   : > { %2915 = vmatmul.bf16.gmra.mxu2 %v2794_v35  ;;  %v1356_v22 = vand.u32 2147483647, %v1355_v54  ;;  %v2485_v53 = vand.u32 8388607, %v2478_v36  ;;  %v2496_v50 = vshrl.u32 %v6480_v6, %v4500_v46  ;;  %v2495_v5 = vshll.u32 %v6476_v55, %v4295_v27  ;;  %v6598_v35 = vld [vmem:[#allocation43_spill] sm:$0xff] }
 0x285   : > { %v1485_v11 = vadd.s32 %v1484_v60, %v1475_v41  ;;  %v2498_v17 = vshll.u32 %v6480_v6, %v4295_v27  ;;  %v2499_v8 = vshrl.u32 %v6481_v24, %v4500_v46  ;;  %v2501_v51 = vshll.u32 %v6481_v24, %v4295_v27  ;;  %v6600_v60 = vld [vmem:[#allocation39_spill] sm:$0xff] }
 0x286   : > { %v1359_v34 = vmul.f32 %v1358_v29, %v1356_v22  ;;  %v2486_v59 = vor.u32 8388608, %v2485_v53  ;;  %v2502_v44 = vshrl.u32 %v6449_v2, %v4500_v46  ;;  %vm1240_vm15 = vcmp.lt.s32.totalorder %v6577_v63, 0 }
 0x287   : > { %v1489_v42 = vadd.s32 1, %v1485_v11  ;;  %v5814_v20 = vor.u32 %v2496_v50, %v2495_v5  ;;  %v5816_v33 = vor.u32 %v2499_v8, %v2498_v17  ;;  %v1486_v7 = vmul.u32 %v5685_v15, %v1432_v45 }
 0x288   : > { %v1360_v1 = vxor.u32 2147483648, %v1359_v34  ;;  %v2503_v3 = vor.u32 %v2502_v44, %v2501_v51  ;;  %vm2512_vm6 = vcmp.lt.s32.totalorder %v6539_v47, 3  ;;  %vm5822_vm8 = vcmp.le.f32.partialorder %v1238_v56, 0.7853982 }
 0x289   : > { %v1490_v9 = vsel %vm1488_vm4, %v1489_v42, %v1485_v11  ;;  %v2524_v32 = vsel %vm2512_vm6, %v4971_v31, %v5583_v21  ;;  %v5833_v62 = vshll.u32 %v2486_v59, 8  ;;  %v1363_v52 = vsel %vm1240_vm15, %v1362_v10, %v5720_v61 }
 0x28a   : > { %v1361_v15 = vsel %vm1240_vm15, %v1360_v1, %v1359_v34  ;;  %v1491_v19 = vadd.s32 %v1490_v9, %v1486_v7  ;;  %vm2510_vm1 = vcmp.lt.s32.totalorder %v6539_v47, 1  ;;  %vm2511_vm10 = vcmp.lt.s32.totalorder %v6539_v47, 2 }
 0x28b   : > { %v5840_v56 = vsel %vm5822_vm8, %v6577_v63, %v1361_v15  ;;  %v2518_v31 = vsel %vm2510_vm1, %v5814_v20, %v5816_v33  ;;  %v2522_v21 = vsel %vm2510_vm1, %v5816_v33, %v2503_v3  ;;  %v2520_v43 = vsel %vm2512_vm6, %v2503_v3, %v5047_v25 }
 0x28c   : > { %v5852_v61 = vmul.f32 %v5840_v56, %v5840_v56  ;;  %v1492_v4 = vadd.s32 536870912, %v1491_v19  ;;  %v2525_v40 = vsel %vm2511_vm10, %v2522_v21, %v2524_v32  ;;  %v2527_v28 = vand.u32 65535, %v5833_v62 }
 0x28d   : > { %v5861_v39 = vshrl.u32 %v5833_v62, 16  ;;  %v2529_v48 = vand.u32 65535, %v2525_v40  ;;  %v2530_v16 = vshrl.u32 %v2525_v40, 16  ;;  %v5865_v26 = vor.u32 %v6597_v58, %v6596_v49 }
 0x28e   : > { %v1367_v23 = vmul.f32 -0.001358992, %v5852_v61  ;;  %v1493_v37 = vshrl.u32 %v1492_v4, 30  ;;  %v6599_v54 = vmov 920167782   ;;  %v1365_v45 = vsel %vm5822_vm8, 0, %v1363_v52 }
 0x28f   : > { %v2662_v25 = vshll.u32 %v6599_v54, %v6598_v35  ;;  %v2532_v10 = vmul.u32 %v2530_v16, %v2527_v28  ;;  %v5873_v41 = vmul.u32 %v2529_v48, %v5861_v39  ;;  %vm2668_vm9 = vcmp.lt.s32.totalorder %v6600_v60, 4 }
 0x290   : > { %v1374_v22 = vmul.f32 -0.00019511016, %v5852_v61  ;;  %v1494_v29 = vshll.u32 %v1493_v37, 30  ;;  %v2521_v53 = vsel %vm2511_vm10, %v2518_v31, %v2520_v43  ;;  %v1368_v11 = vadd.f32 0.041655596, %v1367_v23 }
 0x291   : > { %v2664_v50 = vor.u32 %v5604_v18, %v2662_v25  ;;  %v2531_v5 = vmul.u32 %v2529_v48, %v2527_v28  ;;  %v2535_v17 = vshll.u32 %v2532_v10, 16  ;;  %v5883_v8 = vsel %vm2668_vm9, %v5865_v26, 920167782 }
 0x292   : > { %v1382_v34 = vadd.s32 3, %v1365_v45  ;;  %v1495_v59 = vsub.s32 %v1491_v19, %v1494_v29  ;;  %v2515_v51 = vsel %vm2513_vm0, %v2503_v3, 2102212464  ;;  %v2537_v44 = vshll.u32 %v5873_v41, 16 }
 0x293   : > { %vm2539_vm3 = vc.u32 %v2531_v5, %v2535_v17  ;;  %v2541_v42 = vadd.s32 %v2535_v17, %v2531_v5  ;;  %v2552_v1 = vshrl.u32 %v2521_v53, 16  ;;  %v1375_v7 = vadd.f32 0.008332121, %v1374_v22 }
 0x294   : > { %vm1496_vm12 = vcmp.lt.s32.totalorder %v1495_v59, 0  ;;  %v1497_v18 = vsub.s32 0, %v1495_v59  ;;  %v2534_v27 = vmul.u32 %v2530_v16, %v5861_v39  ;;  %v1369_v9 = vmul.f32 %v1368_v11, %v5852_v61 }
 0x295   : > { %v1517_v32 = vsub.s32 4, %v1493_v37  ;;  %v2540_v15 = vsel %vm2539_vm3, 1, %v6479_v38  ;;  %vm2543_vm7 = vc.u32 %v2541_v42, %v2537_v44  ;;  %v2494_v3 = vshrl.u32 %v6476_v55, %v4500_v46 }
 0x296   : > { %v1498_v52 = vsel %vm1496_vm12, %v1497_v18, %v1495_v59  ;;  %v2542_v19 = vadd.s32 %v2540_v15, %v2534_v27  ;;  %v2551_v31 = vand.u32 65535, %v2521_v53  ;;  %v5895_v21 = vsel %vm2668_vm9, %v2664_v50, 1326507024 }
 0x297   : > { %v1499_v4 = vclz %v1498_v52  ;;  %v2544_v43 = vsel %vm2543_vm7, 1, %v6479_v38  ;;  %v2554_v40 = vmul.u32 %v2552_v1, %v2527_v28  ;;  %v1376_v48 = vmul.f32 %v1375_v7, %v5852_v61 }
 0x298   : > { %vm1395_vm0 = vcmp.lt.s32.totalorder %v6592_v57, 0  ;;  %v2514_v16 = vsel %vm2510_vm1, %v2494_v3, %v5814_v20  ;;  %v2516_v46 = vsel %vm2512_vm6, %v5816_v33, %v2515_v51  ;;  %v1370_v49 = vadd.f32 -0.4999988, %v1369_v9  ;;  %v6603_v3 = vld [vmem:[#allocation51_spill] sm:$0xff] }
 0x299   : > { %v3280_v58 = vadd.s32 4294967294, %v1499_v4  ;;  %v1518_v23 = vsel %vm1395_vm0, %v1517_v32, %v1493_v37  ;;  %v2546_v54 = vadd.s32 %v2544_v43, %v2542_v19  ;;  %v5908_v25 = vand.u32 3, %v1382_v34 }
 0x29a   : > { %vm5912_vm11 = vcmp.le.f32.partialorder %v1393_v30, 0.7853982  ;;  %v1487_v20 = vadd.s32 %v5791_v12, %v5783_v0  ;;  %v2555_v22 = vmul.u32 %v2551_v31, %v5861_v39  ;;  %v5921_v33 = vsel %vm2511_vm10, %v2514_v16, %v2516_v46 }
 0x29b   : > { %vm3281_vm2 = vcmp.lt.s32.totalorder %v3280_v58, 0  ;;  %v2536_v37 = vshrl.u32 %v2532_v10, 16  ;;  %v2557_v29 = vshll.u32 %v2554_v40, 16  ;;  %v1377_v53 = vadd.f32 -0.16666654, %v1376_v48 }
 0x29c   : > { %v1502_v50 = vsel %vm3281_vm2, 0, %v3280_v58  ;;  %v1520_v30 = vsel %vm5912_vm11, 0, %v1518_v23  ;;  %v2553_v11 = vmul.u32 %v2551_v31, %v2527_v28  ;;  %v1371_v5 = vmul.f32 %v1370_v49, %v5852_v61 }
 0x29d   : > { %v1503_v17 = vsub.s32 32, %v1502_v50  ;;  %v1507_v34 = vsub.s32 4294967266, %v1502_v50  ;;  %v2547_v0 = vadd.s32 %v2546_v54, %v2536_v37  ;;  %v2556_v12 = vmul.u32 %v2552_v1, %v5861_v39 }
 0x29e   : > { %v2559_v51 = vshll.u32 %v2555_v22, 16  ;;  %vm2561_vm5 = vc.u32 %v2553_v11, %v2557_v29  ;;  %v2563_v47 = vadd.s32 %v2557_v29, %v2553_v11  ;;  %v1504_v44 = vshll.u32 %v1495_v59, %v1502_v50 }
 0x29f   : > { %v1505_v42 = vshrl.u32 %v1487_v20, %v1503_v17  ;;  %v1508_v10 = vadd.s32 127, %v1507_v34  ;;  %v2562_v7 = vsel %vm2561_vm5, 1, %v6479_v38  ;;  %v5928_v18 = vadd.s32 3, %v1520_v30 }
 0x2a0   : > { %v2538_v27 = vshrl.u32 %v5873_v41, 16  ;;  %v2564_v28 = vadd.s32 %v2562_v7, %v2556_v12  ;;  %vm2565_vm13 = vc.u32 %v2563_v47, %v2559_v51  ;;  %v1378_v9 = vmul.f32 %v1377_v53, %v5852_v61 }
 0x2a1   : > { %v1506_v32 = vor.u32 %v1505_v42, %v1504_v44  ;;  %v1509_v15 = vshll.u32 %v1508_v10, 23  ;;  %v2566_v39 = vsel %vm2565_vm13, 1, %v6479_v38  ;;  %v5933_v1 = vadd.f32 1.0, %v1371_v5 }
 0x2a2   : > { %v2558_v52 = vshrl.u32 %v2554_v40, 16  ;;  %v2568_v59 = vadd.s32 %v2566_v39, %v2564_v28  ;;  %v2633_v19 = vand.u32 2147483647, %v6603_v3  ;;  %v5936_v4 = vadd.s32 %v2547_v0, %v2538_v27 }
 0x2a3   : > { %v1510_v31 = vor.u32 4788187, %v1509_v15  ;;  %v2560_v43 = vshrl.u32 %v2555_v22, 16  ;;  %v5938_v48 = vadd.s32 %v2563_v47, %v2559_v51  ;;  %v1513_v41 = vcvt.s32.f32 %v1506_v32 }
 0x2a4   : > { %v2569_v16 = vadd.s32 %v2568_v59, %v2558_v52  ;;  %v2640_v61 = vand.u32 8388607, %v2633_v19  ;;  %v2650_v46 = vshll.u32 %v6476_v55, %v6598_v35  ;;  %v2651_v40 = vshrl.u32 %v6480_v6, %v4768_v13 }
 0x2a5   : > { %v1511_v49 = vand.u32 2147483647, %v1510_v31  ;;  %v2653_v58 = vshll.u32 %v6480_v6, %v6598_v35  ;;  %v2654_v23 = vshrl.u32 %v6481_v24, %v4768_v13  ;;  %v1379_v54 = vadd.f32 1.0, %v1378_v9 }
 0x2a6   : > { %v2570_v20 = vadd.s32 %v2569_v16, %v2560_v43  ;;  %v2656_v22 = vshll.u32 %v6481_v24, %v6598_v35  ;;  %v2657_v37 = vshrl.u32 %v6449_v2, %v4768_v13  ;;  %vm2573_vm14 = vc.u32 %v5936_v4, %v5938_v48 }
 0x2a7   : > { %v1514_v29 = vmul.f32 %v1513_v41, %v1511_v49  ;;  %v5956_v53 = vor.u32 %v2651_v40, %v2650_v46  ;;  %v5958_v50 = vor.u32 %v2654_v23, %v2653_v58  ;;  %v2641_v30 = vor.u32 8388608, %v2640_v61 }
 0x2a8   : > { %v2574_v6 = vadd.s32 1, %v2570_v20  ;;  %v5960_v11 = vor.u32 %v2657_v37, %v2656_v22  ;;  %vm2667_vm4 = vcmp.lt.s32.totalorder %v6600_v60, 3  ;;  %v2571_v24 = vmul.u32 %v5833_v62, %v5921_v33 }
 0x2a9   : > { %v1515_v5 = vxor.u32 2147483648, %v1514_v29  ;;  %vm2665_vm15 = vcmp.lt.s32.totalorder %v6600_v60, 1  ;;  %v2679_v2 = vsel %vm2667_vm4, %v5865_v26, %v5895_v21  ;;  %v1380_v35 = vmul.f32 %v1379_v54, %v5840_v56 }
 0x2aa   : > { %v1389_v17 = vxor.u32 2147483648, %v5933_v1  ;;  %v2575_v34 = vsel %vm2573_vm14, %v2574_v6, %v2570_v20  ;;  %v2677_v0 = vsel %vm2665_vm15, %v5958_v50, %v5960_v11  ;;  %vm2666_vm6 = vcmp.lt.s32.totalorder %v6600_v60, 2  ;;  %v3384_v60 = vld [vmem:[%s6299_s2 + $0x60] sm:$0xff] }
 0x2ab   : > { %v1516_v62 = vsel %vm1395_vm0, %v1515_v5, %v1514_v29  ;;  %v2576_v33 = vadd.s32 %v2575_v34, %v2571_v24  ;;  %v2673_v26 = vsel %vm2665_vm15, %v5956_v53, %v5958_v50  ;;  %v2675_v21 = vsel %vm2667_vm4, %v5960_v11, %v5883_v8 }
 0x2ac   : > { %v5986_v56 = vsel %vm5912_vm11, %v6592_v57, %v1516_v62  ;;  %v2680_v12 = vsel %vm2666_vm6, %v2677_v0, %v2679_v2  ;;  %v5994_v51 = vshll.u32 %v2641_v30, 8  ;;  %vm1384_vm8 = vcmp.lt.s32.totalorder %v5908_v25, 2 }
 0x2ad   : > { %v1521_v47 = vmul.f32 %v5986_v56, %v5986_v56  ;;  %v2577_v44 = vadd.s32 536870912, %v2576_v33  ;;  %v2684_v42 = vand.u32 65535, %v2680_v12  ;;  %v2685_v45 = vshrl.u32 %v2680_v12, 16 }
 0x2ae   : > { %vm1385_vm1 = vcmp.eq.s32.totalorder %v5908_v25, 0  ;;  %v1386_v10 = vxor.u32 2147483648, %v1380_v35  ;;  %v2682_v7 = vand.u32 65535, %v5994_v51  ;;  %v2683_v8 = vshrl.u32 %v5994_v51, 16 }
 0x2af   : > { %v1522_v27 = vmul.f32 -0.001358992, %v1521_v47  ;;  %v1529_v28 = vmul.f32 -0.00019511016, %v1521_v47  ;;  %v6002_v9 = vshrl.u32 %v2577_v44, 30  ;;  %v2676_v32 = vsel %vm2666_vm6, %v2673_v26, %v2675_v21 }
 0x2b0   : > { %vm1388_vm10 = vcmp.eq.s32.totalorder %v5908_v25, 2  ;;  %v6008_v15 = vand.u32 3, %v5928_v18  ;;  %v2687_v39 = vmul.u32 %v2685_v45, %v2682_v7  ;;  %v6010_v52 = vmul.u32 %v2684_v42, %v2683_v8 }
 0x2b1   : > { %vm1381_vm3 = vweird.f32 %v6577_v63  ;;  %v1390_v59 = vsel %vm1388_vm10, %v1389_v17, %v1380_v35  ;;  %v1523_v31 = vadd.f32 0.041655596, %v1522_v27  ;;  %v1530_v43 = vadd.f32 0.008332121, %v1529_v28 }
 0x2b2   : > { %v2579_v41 = vshll.u32 %v6002_v9, 30  ;;  %v1387_v16 = vsel %vm1385_vm1, %v5933_v1, %v1386_v10  ;;  %v2686_v61 = vmul.u32 %v2684_v42, %v2682_v7  ;;  %v2690_v46 = vshll.u32 %v2687_v39, 16 }
 0x2b3   : > { %v2707_v49 = vshrl.u32 %v2676_v32, 16  ;;  %v1524_v40 = vmul.f32 %v1523_v31, %v1521_v47  ;;  %v1531_v18 = vmul.f32 %v1530_v43, %v1521_v47  ;;  %v2706_v23 = vand.u32 65535, %v2676_v32 }
 0x2b4   : > { %v2580_v58 = vsub.s32 %v2576_v33, %v2579_v41  ;;  %v2689_v54 = vmul.u32 %v2685_v45, %v2683_v8  ;;  %v2692_v20 = vshll.u32 %v6010_v52, 16  ;;  %vm2694_vm12 = vc.u32 %v2686_v61, %v2690_v46 }
 0x2b5   : > { %v2696_v22 = vadd.s32 %v2690_v46, %v2686_v61  ;;  %v1525_v37 = vadd.f32 -0.4999988, %v1524_v40  ;;  %v1532_v29 = vadd.f32 -0.16666654, %v1531_v18  ;;  %v1391_v30 = vsel %vm1384_vm8, %v1387_v16, %v1390_v59 }
 0x2b6   : > { %vm2581_vm7 = vcmp.lt.s32.totalorder %v2580_v58, 0  ;;  %v2582_v6 = vsub.s32 0, %v2580_v58  ;;  %v2695_v1 = vsel %vm2694_vm12, 1, %v6479_v38  ;;  %v2709_v5 = vmul.u32 %v2707_v49, %v2682_v7 }
 0x2b7   : > { %vm2698_vm0 = vc.u32 %v2696_v22, %v2692_v20  ;;  %v1526_v24 = vmul.f32 %v1525_v37, %v1521_v47  ;;  %v1533_v2 = vmul.f32 %v1532_v29, %v1521_v47  ;;  %v2697_v17 = vadd.s32 %v2695_v1, %v2689_v54 }
 0x2b8   : > { %v2583_v35 = vsel %vm2581_vm7, %v2582_v6, %v2580_v58  ;;  %vm1536_vm11 = vweird.f32 %v6592_v57  ;;  %vm1539_vm2 = vcmp.lt.s32.totalorder %v6008_v15, 2  ;;  %vm1540_vm5 = vcmp.eq.s32.totalorder %v6008_v15, 0 }
 0x2b9   : > { %v2584_v34 = vclz %v2583_v35  ;;  %v2699_v0 = vsel %vm2698_vm0, 1, %v6479_v38  ;;  %v1527_v62 = vadd.f32 1.0, %v1526_v24  ;;  %v1534_v25 = vadd.f32 1.0, %v1533_v2 }
 0x2ba   : > { %v2701_v33 = vadd.s32 %v2699_v0, %v2697_v17  ;;  %v2710_v26 = vmul.u32 %v2706_v23, %v2683_v8  ;;  %v1392_v21 = vsel %vm1381_vm3, nan, %v1391_v30  ;;  %vm1543_vm13 = vcmp.eq.s32.totalorder %v6008_v15, 2 }
 0x2bb   : > { %v2572_v12 = vadd.s32 %v5938_v48, %v5936_v4  ;;  %v3301_v47 = vadd.s32 4294967294, %v2584_v34  ;;  %v1535_v44 = vmul.f32 %v1534_v25, %v5986_v56  ;;  %v1544_v42 = vxor.u32 2147483648, %v1527_v62 }
 0x2bc   : > { %v2691_v45 = vshrl.u32 %v2687_v39, 16  ;;  %v2712_v10 = vshll.u32 %v2709_v5, 16  ;;  %v2649_v27 = vshrl.u32 %v6476_v55, %v4768_v13  ;;  %v2708_v28 = vmul.u32 %v2706_v23, %v2682_v7 }
 0x2bd   : > { %vm3302_vm14 = vcmp.lt.s32.totalorder %v3301_v47, 0  ;;  %v2711_v32 = vmul.u32 %v2707_v49, %v2683_v8  ;;  %v1541_v59 = vxor.u32 2147483648, %v1535_v44  ;;  %v2714_v43 = vshll.u32 %v2710_v26, 16 }
 0x2be   : > { %v2587_v63 = vsel %vm3302_vm14, 0, %v3301_v47  ;;  %v2702_v31 = vadd.s32 %v2701_v33, %v2691_v45  ;;  %v1545_v41 = vsel %vm1543_vm13, %v1544_v42, %v1535_v44  ;;  %vm2716_vm8 = vc.u32 %v2708_v28, %v2712_v10 }
 0x2bf   : > { %v2588_v16 = vsub.s32 32, %v2587_v63  ;;  %v2592_v61 = vsub.s32 4294967266, %v2587_v63  ;;  %v1542_v4 = vsel %vm1540_vm5, %v1527_v62, %v1541_v59  ;;  %v2589_v48 = vshll.u32 %v2580_v58, %v2587_v63 }
 0x2c0   : > { %v2717_v56 = vsel %vm2716_vm8, 1, %v6479_v38  ;;  %v2718_v39 = vadd.s32 %v2712_v10, %v2708_v28  ;;  %v1546_v55 = vsel %vm1539_vm2, %v1542_v4, %v1545_v41  ;;  %v2670_v49 = vsel %vm2668_vm9, %v5960_v11, 2102212464 }
 0x2c1   : > { %v2590_v13 = vshrl.u32 %v2572_v12, %v2588_v16  ;;  %v2593_v7 = vadd.s32 127, %v2592_v61  ;;  %v2719_v8 = vadd.s32 %v2717_v56, %v2711_v32  ;;  %v1547_v46 = vsel %vm1536_vm11, nan, %v1546_v55  ;;  %v6076_v56 = vld [vmem:[%s6298_s1 + $0x2] ss:$0 sm:$0xff]  ;;  %v3387_v55 = vld [vmem:[%s6299_s2 + $0x78] sm:$0xff] }
 0x2c2   : > { %v2693_v40 = vshrl.u32 %v6010_v52, 16  ;;  %vm2720_vm1 = vc.u32 %v2718_v39, %v2714_v43  ;;  %v2791_v18 = vpack.c.bf16 %v1547_v46, %v1392_v21  ;;  %v2713_v15 = vshrl.u32 %v2709_v5, 16  ;;  %3127 = vmatpush.bf16.msra.mxu1 %v3387_v55  ;;  %3396 = vmatpush.bf16.msra.mxu3 %v3387_v55 }
 0x2c3   : > { %v2591_v58 = vor.u32 %v2590_v13, %v2589_v48  ;;  %v2594_v23 = vshll.u32 %v2593_v7, 23  ;;  %v2721_v54 = vsel %vm2720_vm1, 1, %v6479_v38  ;;  %v2669_v57 = vsel %vm2665_vm15, %v2649_v27, %v5956_v53  ;;  %v2906_v13 = vpop.f32.mrf.mxu2 }
 0x2c4   : > { %v2723_v20 = vadd.s32 %v2721_v54, %v2719_v8  ;;  %2900 = vmatmul.bf16.gmra.mxu0 %v2791_v18  ;;  %v2671_v11 = vsel %vm2667_vm4, %v5958_v50, %v2670_v49  ;;  %v2703_v37 = vadd.s32 %v2702_v31, %v2693_v40  ;;  %v2715_v52 = vshrl.u32 %v2710_v26, 16 }
 0x2c5   : > { %v2595_v22 = vor.u32 4788187, %v2594_v23  ;;  %v2598_v30 = vcvt.s32.f32 %v2591_v58  ;;  %v2722_v1 = vadd.s32 %v2718_v39, %v2714_v43  ;;  %v2672_v38 = vsel %vm2666_vm6, %v2669_v57, %v2671_v11  ;;  %v2886_v39 = vpop.f32.mrf.mxu0  ;;  %v3386_v58 = vld [vmem:[%s6299_s2 + $0x70] sm:$0xff] }
 0x2c6   : > { %v2724_v29 = vadd.s32 %v2723_v20, %v2713_v15  ;;  %v2726_v35 = vmul.u32 %v5994_v51, %v2672_v38  ;;  %vm2480_vm4 = vcmp.lt.s32.totalorder %v6593_v14, 0  ;;  %vm6061_vm15 = vcmp.le.f32.partialorder %v2478_v36, 0.7853982  ;;  %3128 = vmatpush.bf16.msra.mxu1 %v3386_v58  ;;  %3397 = vmatpush.bf16.msra.mxu3 %v3386_v58 }
 0x2c7   : > { %v2596_v6 = vand.u32 2147483647, %v2595_v22  ;;  %vm2728_vm9 = vc.u32 %v2703_v37, %v2722_v1  ;;  %v2727_v10 = vadd.s32 %v2722_v1, %v2703_v37  ;;  %v2602_v7 = vsub.s32 4, %v6002_v9 }
 0x2c8   : > { %v2725_v5 = vadd.s32 %v2724_v29, %v2715_v52  ;;  %v6083_v40 = vadd.f32 %v6076_v56, %v2886_v39  ;;  %v6086_v18 = vadd.f32 %v6076_v56, %v2906_v13  ;;  %vm2635_vm3 = vcmp.lt.s32.totalorder %v6603_v3, 0 }
 0x2c9   : > { %v2599_v24 = vmul.f32 %v2598_v30, %v2596_v6  ;;  %v2603_v22 = vsel %vm2480_vm4, %v2602_v7, %v6002_v9  ;;  %v3385_v6 = vld [vmem:[%s6299_s2 + $0x68] sm:$0xff]  ;;  %vm6107_vm12 = vcmp.le.f32.partialorder %v2633_v19, 0.7853982  ;;  %v3382_v7 = vld [vmem:[%s6299_s2 + $0x50] sm:$0xff]  ;;  %vm2621_vm2 = vweird.f32 %v6593_v14 }
 0x2ca   : > { %v2729_v2 = vadd.s32 1, %v2725_v5  ;;  %v2926_v15 = vmul.f32 %v6083_v40, %v6083_v40  ;;  %v2934_v20 = vmul.f32 %v6086_v18, %v6086_v18  ;;  %3129 = vmatpush.bf16.msra.mxu1 %v3385_v6  ;;  %3398 = vmatpush.bf16.msra.mxu3 %v3385_v6  ;;  %vm2776_vm8 = vweird.f32 %v6603_v3 }
 0x2cb   : > { %v2600_v17 = vxor.u32 2147483648, %v2599_v24  ;;  %vm3176_vm1 = vcmask 261120  }
 0x2cc   : > { %v2730_v53 = vsel %vm2728_vm9, %v2729_v2, %v2725_v5  ;;  %v2942_v52 = vmul.f32 %v2926_v15, %v6083_v40  ;;  %v2950_v29 = vmul.f32 %v2934_v20, %v6086_v18  ;;  %v2908_v2 = vpop.f32.mrf.mxu2 }
 0x2cd   : > { %v2731_v34 = vadd.s32 %v2730_v53, %v2726_v35  ;;  %v2601_v50 = vsel %vm2480_vm4, %v2600_v17, %v2599_v24  ;;  %v2888_v24 = vpop.f32.mrf.mxu0  ;;  %v2605_v35 = vsel %vm6061_vm15, 0, %v2603_v22  ;;  %v6126_v17 = vadd.f32 %v6076_v56, %v2908_v2 }
 0x2ce   : > { %v6069_v51 = vsel %vm6061_vm15, %v6593_v14, %v2601_v50  ;;  %v2958_v5 = vmul.f32 0.044715, %v2942_v52  ;;  %v6123_v53 = vadd.f32 %v6076_v56, %v2888_v24  ;;  %3130 = vmatpush.bf16.msra.mxu1 %v3384_v60  ;;  %3399 = vmatpush.bf16.msra.mxu3 %v3384_v60 }
 0x2cf   : > { %v2732_v0 = vadd.s32 536870912, %v2731_v34  ;;  %v2606_v26 = vmul.f32 %v6069_v51, %v6069_v51 }
 0x2d0   : > { %v2974_v50 = vadd.f32 %v2958_v5, %v6083_v40  ;;  %v3380_v5 = vld [vmem:[%s6299_s2 + $0x40] sm:$0xff] }
 0x2d1   : > { %v6057_v62 = vshrl.u32 %v2732_v0, 30  ;;  %v2614_v44 = vmul.f32 -0.00019511016, %v2606_v26  ;;  %v2607_v32 = vmul.f32 -0.001358992, %v2606_v26 }
 0x2d3   : > { %v2734_v25 = vshll.u32 %v6057_v62, 30  ;;  %v2615_v42 = vadd.f32 0.008332121, %v2614_v44  ;;  %v2608_v61 = vadd.f32 0.041655596, %v2607_v32  ;;  %v2757_v37 = vsub.s32 4, %v6057_v62 }
 0x2d4   : > { %v2990_v44 = vmul.f32 0.7978846, %v2974_v50 }
 0x2d5   : > { %v2735_v33 = vsub.s32 %v2731_v34, %v2734_v25  ;;  %v2616_v43 = vmul.f32 %v2615_v42, %v2606_v26  ;;  %v2609_v49 = vmul.f32 %v2608_v61, %v2606_v26  ;;  %v2758_v0 = vsel %vm2635_vm3, %v2757_v37, %v6057_v62 }
 0x2d6   : > { %v2966_v25 = vmul.f32 0.044715, %v2950_v29  ;;  %v2622_v62 = vadd.s32 3, %v2605_v35  ;;  %3426 = vtanh.f32 %v2990_v44 }
 0x2d7   : > { %vm2736_vm6 = vcmp.lt.s32.totalorder %v2735_v33, 0  ;;  %v2737_v21 = vsub.s32 0, %v2735_v33  ;;  %v2617_v48 = vadd.f32 -0.16666654, %v2616_v43  ;;  %v2610_v11 = vadd.f32 -0.4999988, %v2609_v49 }
 0x2d8   : > { %v2982_v32 = vadd.f32 %v2966_v25, %v6086_v18 }
 0x2d9   : > { %v2738_v12 = vsel %vm2736_vm6, %v2737_v21, %v2735_v33  ;;  %v2618_v54 = vmul.f32 %v2617_v48, %v2606_v26  ;;  %v2611_v34 = vmul.f32 %v2610_v11, %v2606_v26  ;;  %v2935_v26 = vmul.f32 %v6126_v17, %v6126_v17  ;;  %v3381_v11 = vld [vmem:[%s6299_s2 + $0x48] sm:$0xff] }
 0x2da   : > { %v2739_v47 = vclz %v2738_v12  ;;  %v2927_v12 = vmul.f32 %v6123_v53, %v6123_v53 }
 0x2db   : > { %v2619_v1 = vadd.f32 1.0, %v2618_v54 }
 0x2dc   : > { %v3304_v36 = vadd.s32 4294967294, %v2739_v47  ;;  %v3427_v54 = vpop.eup %3426 }
 0x2dd   : > { %v2620_v47 = vmul.f32 %v2619_v1, %v6069_v51  ;;  %v3022_v9 = vadd.f32 1.0, %v3427_v54 }
 0x2de   : > { %vm3305_vm10 = vcmp.lt.s32.totalorder %v3304_v36, 0 }
 0x2df   : > { %v2742_v45 = vsel %vm3305_vm10, 0, %v3304_v36  ;;  %v3038_v14 = vmul.f32 0.5, %v3022_v9 }
 0x2e0   : > { %v2743_v27 = vsub.s32 32, %v2742_v45  ;;  %v2747_v28 = vsub.s32 4294967266, %v2742_v45  ;;  %v2744_v59 = vshll.u32 %v2735_v33, %v2742_v45  ;;  %v2943_v45 = vmul.f32 %v2927_v12, %v6123_v53 }
 0x2e2   : > { %v2745_v63 = vshrl.u32 %v2727_v10, %v2743_v27  ;;  %v2748_v31 = vadd.s32 127, %v2747_v28  ;;  %v2951_v10 = vmul.f32 %v2935_v26, %v6126_v17  ;;  %v2612_v27 = vadd.f32 1.0, %v2611_v34 }
 0x2e3   : > { %v2760_v28 = vsel %vm6107_vm12, 0, %v2758_v0 }
 0x2e4   : > { %v2746_v41 = vor.u32 %v2745_v63, %v2744_v59  ;;  %v2749_v16 = vshll.u32 %v2748_v31, 23  ;;  %v3383_v59 = vld [vmem:[%s6299_s2 + $0x58] sm:$0xff]  ;;  %v2959_v31 = vmul.f32 0.044715, %v2943_v45  ;;  %v2967_v43 = vmul.f32 0.044715, %v2951_v10 }
 0x2e5   : > { %v2629_v55 = vxor.u32 2147483648, %v2612_v27  ;;  %v2777_v13 = vadd.s32 3, %v2760_v28  ;;  %3131 = vmatpush.bf16.msra.mxu1 %v3383_v59  ;;  %3400 = vmatpush.bf16.msra.mxu3 %v3383_v59 }
 0x2e6   : > { %v2750_v4 = vor.u32 4788187, %v2749_v16  ;;  %v2753_v46 = vcvt.s32.f32 %v2746_v41  ;;  %v2623_v41 = vand.u32 3, %v2622_v62  ;;  %v2626_v16 = vxor.u32 2147483648, %v2620_v47 }
 0x2e7   : > { %v2975_v48 = vadd.f32 %v2959_v31, %v6123_v53  ;;  %v2983_v39 = vadd.f32 %v2967_v43, %v6126_v17 }
 0x2e8   : > { %v2751_v8 = vand.u32 2147483647, %v2750_v4  ;;  %vm2625_vm7 = vcmp.eq.s32.totalorder %v2623_v41, 0  ;;  %vm2628_vm0 = vcmp.eq.s32.totalorder %v2623_v41, 2  ;;  %vm2624_vm11 = vcmp.lt.s32.totalorder %v2623_v41, 2 }
 0x2e9   : > { %v2991_v58 = vmul.f32 0.7978846, %v2975_v48  ;;  %v2627_v15 = vsel %vm2625_vm7, %v2612_v27, %v2626_v16  ;;  %3132 = vmatpush.bf16.msra.mxu1 %v3382_v7  ;;  %3401 = vmatpush.bf16.msra.mxu3 %v3382_v7  ;;  %v2630_v37 = vsel %vm2628_vm0, %v2629_v55, %v2620_v47  ;;  %v3054_v47 = vmul.f32 %v3038_v14, %v6083_v40 }
 0x2ea   : > { %v2754_v23 = vmul.f32 %v2753_v46, %v2751_v8  ;;  %v2998_v8 = vmul.f32 0.7978846, %v2982_v32  ;;  %v2631_v6 = vsel %vm2624_vm11, %v2627_v15, %v2630_v37 }
 0x2eb   : > { %v2632_v2 = vsel %vm2621_vm2, nan, %v2631_v6 }
 0x2ec   : > { %v2755_v57 = vxor.u32 2147483648, %v2754_v23  ;;  %3428 = vtanh.f32 %v2998_v8  ;;  %v2911_v8 = vpop.f32.mrf.mxu2 }
 0x2ed   : > { %3430 = vtanh.f32 %v2991_v58  ;;  %3133 = vmatpush.bf16.msra.mxu1 %v3381_v11  ;;  %3402 = vmatpush.bf16.msra.mxu3 %v3381_v11 }
 0x2ee   : > { %v2756_v30 = vsel %vm2635_vm3, %v2755_v57, %v2754_v23  ;;  %v2999_v23 = vmul.f32 0.7978846, %v2983_v39  ;;  %v2778_v57 = vand.u32 3, %v2777_v13 }
 0x2ef   : > { %v6116_v38 = vsel %vm6107_vm12, %v6603_v3, %v2756_v30 }
 0x2f0   : > { %v2761_v19 = vmul.f32 %v6116_v38, %v6116_v38  ;;  %3432 = vtanh.f32 %v2999_v23  ;;  %vm2779_vm5 = vcmp.lt.s32.totalorder %v2778_v57, 2  ;;  %vm2780_vm13 = vcmp.eq.s32.totalorder %v2778_v57, 0 }
 0x2f1   : > { %vm2783_vm14 = vcmp.eq.s32.totalorder %v2778_v57, 2  ;;  %3134 = vmatpush.bf16.msra.mxu1 %v3380_v5  ;;  %3403 = vmatpush.bf16.msra.mxu3 %v3380_v5  ;;  %v6169_v23 = vadd.f32 %v6076_v56, %v2911_v8 }
 0x2f2   : > { %v2762_v33 = vmul.f32 -0.001358992, %v2761_v19  ;;  %v2769_v21 = vmul.f32 -0.00019511016, %v2761_v19  ;;  %v3429_v1 = vpop.eup %3428 }
 0x2f3   : > { %v3431_v24 = vpop.eup %3430 }
 0x2f4   : > { %v2763_v36 = vadd.f32 0.041655596, %v2762_v33  ;;  %v2770_v42 = vadd.f32 0.008332121, %v2769_v21  ;;  %v3023_v50 = vadd.f32 1.0, %v3431_v24 }
 0x2f6   : > { %v2764_v51 = vmul.f32 %v2763_v36, %v2761_v19  ;;  %v2771_v63 = vmul.f32 %v2770_v42, %v2761_v19  ;;  %v3433_v34 = vpop.eup %3432  ;;  %v3039_v21 = vmul.f32 0.5, %v3023_v50  ;;  %v2891_v42 = vpop.f32.mrf.mxu0 }
 0x2f7   : > { %v3031_v60 = vadd.f32 1.0, %v3433_v34  ;;  %v2892_v27 = vadd.f32 %v6076_v56, %v2891_v42 }
 0x2f8   : > { %v2765_v61 = vadd.f32 -0.4999988, %v2764_v51  ;;  %v2772_v4 = vadd.f32 -0.16666654, %v2771_v63  ;;  %v3055_v62 = vmul.f32 %v3039_v21, %v6123_v53 }
 0x2f9   : > { %v3047_v26 = vmul.f32 0.5, %v3031_v60  ;;  %v2928_v32 = vmul.f32 %v2892_v27, %v2892_v27 }
 0x2fa   : > { %v2766_v46 = vmul.f32 %v2765_v61, %v2761_v19  ;;  %v2773_v49 = vmul.f32 %v2772_v4, %v2761_v19  ;;  %v3030_v19 = vadd.f32 1.0, %v3429_v1  ;;  %v3070_v36 = vpack.c.bf16 %v3055_v62, %v3054_v47 }
 0x2fb   : > { %v3063_v3 = vmul.f32 %v3047_v26, %v6126_v17  ;;  %v2944_v51 = vmul.f32 %v2928_v32, %v2892_v27 }
 0x2fc   : > { %v2767_v20 = vadd.f32 1.0, %v2766_v46  ;;  %v2774_v22 = vadd.f32 1.0, %v2773_v49  ;;  %v3046_v12 = vmul.f32 0.5, %v3030_v19  ;;  %3135 = vmatmul.bf16.vlgmr.msra.gmra.mxu1 %v3070_v36  ;;  %v2913_v46 = vpop.f32.mrf.mxu2 }
 0x2fd   : > { %v2960_v63 = vmul.f32 0.044715, %v2944_v51  ;;  %v6172_v54 = vadd.f32 %v6076_v56, %v2913_v46 }
 0x2fe   : > { %v2775_v52 = vmul.f32 %v2774_v22, %v6116_v38  ;;  %v2784_v29 = vxor.u32 2147483648, %v2767_v20  ;;  %v3062_v44 = vmul.f32 %v3046_v12, %v6086_v18  ;;  %v2893_v10 = vpop.f32.mrf.mxu0 }
 0x2ff   : > { %v2894_v28 = vadd.f32 %v6076_v56, %v2893_v10  ;;  %v2976_v31 = vadd.f32 %v2960_v63, %v2892_v27  ;;  %v2937_v22 = vmul.f32 %v6172_v54, %v6172_v54 }
 0x300   : > { %v2781_v30 = vxor.u32 2147483648, %v2775_v52  ;;  %v2785_v38 = vsel %vm2783_vm14, %v2784_v29, %v2775_v52  ;;  %v3074_v45 = vpack.c.bf16 %v3063_v3, %v3062_v44 }
 0x301   : > { %v2929_v59 = vmul.f32 %v2894_v28, %v2894_v28  ;;  %v2992_v43 = vmul.f32 0.7978846, %v2976_v31  ;;  %v2953_v29 = vmul.f32 %v2937_v22, %v6172_v54 }
 0x302   : > { %v2782_v35 = vsel %vm2780_vm13, %v2767_v20, %v2781_v30  ;;  %3155 = vmatmul.bf16.vlgmr.msra.gmra.mxu3 %v3074_v45  ;;  %v2936_v20 = vmul.f32 %v6169_v23, %v6169_v23 }
 0x303   : > { %v2786_v0 = vsel %vm2779_vm5, %v2782_v35, %v2785_v38  ;;  %v2945_v40 = vmul.f32 %v2929_v59, %v2894_v28  ;;  %3434 = vtanh.f32 %v2992_v43 }
 0x304   : > { %v2787_v25 = vsel %vm2776_vm8, nan, %v2786_v0  ;;  %v2952_v52 = vmul.f32 %v2936_v20, %v6169_v23 }
 0x305   : > { %v2795_v33 = vpack.c.bf16 %v2787_v25, %v2632_v2  ;;  %v2961_v53 = vmul.f32 0.044715, %v2945_v40  ;;  %v2969_v2 = vmul.f32 0.044715, %v2953_v29 }
 0x306   : > { %v2896_v49 = vpop.f32.mrf.mxu0  ;;  %v2968_v24 = vmul.f32 0.044715, %v2952_v52 }
 0x307   : > { %2920 = vmatmul.bf16.gmra.mxu2 %v2795_v33  ;;  %v2977_v18 = vadd.f32 %v2961_v53, %v2894_v28  ;;  %v2916_v58 = vpop.f32.mrf.mxu2  ;;  %v6179_v11 = vadd.f32 %v6076_v56, %v2896_v49  ;;  %v2985_v14 = vadd.f32 %v2969_v2, %v6172_v54 }
 0x308   : > { %v6182_v37 = vadd.f32 %v6076_v56, %v2916_v58  ;;  %v2984_v50 = vadd.f32 %v2968_v24, %v6169_v23 }
 0x309   : > { %v2993_v17 = vmul.f32 0.7978846, %v2977_v18  ;;  %v3435_v41 = vpop.eup %3434  ;;  %v2930_v1 = vmul.f32 %v6179_v11, %v6179_v11  ;;  %v3001_v44 = vmul.f32 0.7978846, %v2985_v14 }
 0x30a   : > { %v3024_v61 = vadd.f32 1.0, %v3435_v41  ;;  %v2938_v5 = vmul.f32 %v6182_v37, %v6182_v37  ;;  %v3000_v62 = vmul.f32 0.7978846, %v2984_v50 }
 0x30b   : > { %3436 = vtanh.f32 %v2993_v17  ;;  %v2946_v19 = vmul.f32 %v2930_v1, %v6179_v11 }
 0x30c   : > { %v3040_v48 = vmul.f32 0.5, %v3024_v61  ;;  %v2954_v34 = vmul.f32 %v2938_v5, %v6182_v37  ;;  %3438 = vtanh.f32 %v3000_v62 }
 0x30d   : > { %v2962_v33 = vmul.f32 0.044715, %v2946_v19  ;;  %3440 = vtanh.f32 %v3001_v44 }
 0x30e   : > { %v3056_v55 = vmul.f32 %v3040_v48, %v2892_v27  ;;  %v2898_v15 = vpop.f32.mrf.mxu0  ;;  %v2970_v21 = vmul.f32 0.044715, %v2954_v34 }
 0x30f   : > { %v2918_v57 = vpop.f32.mrf.mxu2  ;;  %v6187_v6 = vadd.f32 %v6076_v56, %v2898_v15  ;;  %v2978_v10 = vadd.f32 %v2962_v33, %v6179_v11 }
 0x310   : > { %v6190_v9 = vadd.f32 %v6076_v56, %v2918_v57  ;;  %v2986_v27 = vadd.f32 %v2970_v21, %v6182_v37 }
 0x311   : > { %v3437_v16 = vpop.eup %3436  ;;  %v2931_v35 = vmul.f32 %v6187_v6, %v6187_v6  ;;  %v2994_v53 = vmul.f32 0.7978846, %v2978_v10 }
 0x312   : > { %v3025_v4 = vadd.f32 1.0, %v3437_v16  ;;  %v2939_v38 = vmul.f32 %v6190_v9, %v6190_v9  ;;  %v3439_v63 = vpop.eup %3438  ;;  %v3002_v18 = vmul.f32 0.7978846, %v2986_v27 }
 0x313   : > { %v2947_v25 = vmul.f32 %v2931_v35, %v6187_v6  ;;  %v3441_v43 = vpop.eup %3440  ;;  %v3032_v41 = vadd.f32 1.0, %v3439_v63  ;;  %3442 = vtanh.f32 %v2994_v53 }
 0x314   : > { %v3041_v39 = vmul.f32 0.5, %v3025_v4  ;;  %v2955_v60 = vmul.f32 %v2939_v38, %v6190_v9  ;;  %v3033_v61 = vadd.f32 1.0, %v3441_v43 }
 0x315   : > { %v2963_v26 = vmul.f32 0.044715, %v2947_v25  ;;  %v3048_v48 = vmul.f32 0.5, %v3032_v41 }
 0x316   : > { %v3057_v13 = vmul.f32 %v3041_v39, %v2894_v28  ;;  %v2971_v3 = vmul.f32 0.044715, %v2955_v60  ;;  %v3049_v39 = vmul.f32 0.5, %v3033_v61  ;;  %v6233_v60 = vld [vmem:[%s6298_s1 + $0x3] ss:$0 sm:$0xff] }
 0x317   : > { %v2979_v28 = vadd.f32 %v2963_v26, %v6187_v6 }
 0x318   : > { %v3071_v7 = vpack.c.bf16 %v3057_v13, %v3056_v55  ;;  %v2987_v32 = vadd.f32 %v2971_v3, %v6190_v9  ;;  %v3064_v13 = vmul.f32 %v3048_v48, %v6169_v23 }
 0x319   : > { %v2995_v31 = vmul.f32 0.7978846, %v2979_v28  ;;  %v3443_v46 = vpop.eup %3442 }
 0x31a   : > { %3140 = vmatmul.bf16.gmra.mxu1 %v3071_v7  ;;  %v3003_v16 = vmul.f32 0.7978846, %v2987_v32  ;;  %v3065_v7 = vmul.f32 %v3049_v39, %v6172_v54  ;;  %v3026_v15 = vadd.f32 1.0, %v3443_v46 }
 0x31b   : > { %3444 = vtanh.f32 %v2995_v31 }
 0x31c   : > { %3446 = vtanh.f32 %v3002_v18  ;;  %v3075_v49 = vpack.c.bf16 %v3065_v7, %v3064_v13  ;;  %v3042_v52 = vmul.f32 0.5, %v3026_v15 }
 0x31d   : > { %3448 = vtanh.f32 %v3003_v16 }
 0x31e   : > { %3160 = vmatmul.bf16.gmra.mxu3 %v3075_v49  ;;  %v3058_v23 = vmul.f32 %v3042_v52, %v6179_v11 }
 0x321   : > { %v3445_v58 = vpop.eup %3444 }
 0x322   : > { %v3447_v20 = vpop.eup %3446  ;;  %v3027_v22 = vadd.f32 1.0, %v3445_v58 }
 0x323   : > { %v3449_v57 = vpop.eup %3448 }
 0x324   : > { %v3043_v29 = vmul.f32 0.5, %v3027_v22  ;;  %v3035_v1 = vadd.f32 1.0, %v3449_v57 }
 0x326   : > { %v3059_v54 = vmul.f32 %v3043_v29, %v6187_v6  ;;  %v3051_v5 = vmul.f32 0.5, %v3035_v1 }
 0x328   : > { %v3072_v38 = vpack.c.bf16 %v3059_v54, %v3058_v23  ;;  %v3067_v14 = vmul.f32 %v3051_v5, %v6190_v9 }
 0x32a   : > { %3145 = vmatmul.bf16.gmra.mxu1 %v3072_v38 }
 0x341   : > { %v2901_v30 = vpop.f32.mrf.mxu0 }
 0x342   : > { %v6203_v0 = vadd.f32 %v6076_v56, %v2901_v30  ;;  %v3034_v30 = vadd.f32 1.0, %v3447_v20 }
 0x344   : > { %v2932_v12 = vmul.f32 %v6203_v0, %v6203_v0  ;;  %v3050_v19 = vmul.f32 0.5, %v3034_v30 }
 0x346   : > { %v2948_v42 = vmul.f32 %v2932_v12, %v6203_v0  ;;  %v3066_v33 = vmul.f32 %v3050_v19, %v6182_v37 }
 0x348   : > { %v2964_v51 = vmul.f32 0.044715, %v2948_v42  ;;  %v3076_v62 = vpack.c.bf16 %v3067_v14, %v3066_v33 }
 0x349   : > { %v2903_v47 = vpop.f32.mrf.mxu0 }
 0x34a   : > { %v6212_v36 = vadd.f32 %v6076_v56, %v2903_v47  ;;  %v2980_v4 = vadd.f32 %v2964_v51, %v6203_v0  ;;  %3165 = vmatmul.bf16.gmra.mxu3 %v3076_v62 }
 0x34c   : > { %v2933_v45 = vmul.f32 %v6212_v36, %v6212_v36  ;;  %v2996_v8 = vmul.f32 0.7978846, %v2980_v4 }
 0x34e   : > { %v2949_v59 = vmul.f32 %v2933_v45, %v6212_v36 }
 0x350   : > { %v2965_v40 = vmul.f32 0.044715, %v2949_v59 }
 0x352   : > { %v2981_v17 = vadd.f32 %v2965_v40, %v6212_v36 }
 0x354   : > { %v2997_v55 = vmul.f32 0.7978846, %v2981_v17 }
 0x356   : > { %3450 = vtanh.f32 %v2997_v55 }
 0x357   : > { %3452 = vtanh.f32 %v2996_v8 }
 0x35c   : > { %v3451_v24 = vpop.eup %3450 }
 0x35d   : > { %v3453_v34 = vpop.eup %3452  ;;  %v3029_v25 = vadd.f32 1.0, %v3451_v24 }
 0x35e   : > { %v3028_v21 = vadd.f32 1.0, %v3453_v34 }
 0x35f   : > { %v3045_v44 = vmul.f32 0.5, %v3029_v25 }
 0x360   : > { %v3044_v10 = vmul.f32 0.5, %v3028_v21 }
 0x361   : > { %v3061_v27 = vmul.f32 %v3045_v44, %v6212_v36 }
 0x362   : > { %v3060_v51 = vmul.f32 %v3044_v10, %v6203_v0 }
 0x364   : > { %v3073_v53 = vpack.c.bf16 %v3061_v27, %v3060_v51 }
 0x366   : > { %3150 = vmatmul.bf16.gmra.mxu1 %v3073_v53 }
 0x379   : > { %v3136_v11 = vpop.f32.mrf.mxu1 }
 0x37a   : > { %v3137_v12 = vadd.f32 %v6233_v60, %v3136_v11 }
 0x37c   : > { %3177 = vst.msk [vmem:[%s6240_s10] sm:$0xff] %vm3176_vm1, %v3137_v12 }
 0x381   : > { %v3138_v32 = vpop.f32.mrf.mxu1 }
 0x382   : > { %v3139_v40 = vadd.f32 %v6233_v60, %v3138_v32 }
 0x384   : > { %3178 = vst.msk [vmem:[%s6240_s10 + $0x8] sm:$0xff] %vm3176_vm1, %v3139_v40 }
 0x385   : > { %v3156_v9 = vpop.f32.mrf.mxu3 }
 0x386   : > { %v3157_v26 = vadd.f32 %v6233_v60, %v3156_v9 }
 0x388   : > { %3185 = vst.msk [vmem:[%s6240_s10 + $0x40] sm:$0xff] %vm3176_vm1, %v3157_v26 }
 0x38a   : > { %v2921_v2 = vpop.f32.mrf.mxu2 }
 0x38b   : > { %v2922_v35 = vadd.f32 %v6076_v56, %v2921_v2 }
 0x38d   : > { %v2940_v50 = vmul.f32 %v2922_v35, %v2922_v35  ;;  %v3158_v18 = vpop.f32.mrf.mxu3 }
 0x38e   : > { %v3159_v36 = vadd.f32 %v6233_v60, %v3158_v18 }
 0x38f   : > { %v2956_v6 = vmul.f32 %v2940_v50, %v2922_v35 }
 0x390   : > { %3186 = vst.msk [vmem:[%s6240_s10 + $0x48] sm:$0xff] %vm3176_vm1, %v3159_v36 }
 0x391   : > { %v2972_v47 = vmul.f32 0.044715, %v2956_v6 }
 0x392   : > { %v2923_v3 = vpop.f32.mrf.mxu2 }
 0x393   : > { %v2988_v42 = vadd.f32 %v2972_v47, %v2922_v35  ;;  %v2924_v45 = vadd.f32 %v6076_v56, %v2923_v3 }
 0x395   : > { %v2941_v37 = vmul.f32 %v2924_v45, %v2924_v45  ;;  %v3004_v28 = vmul.f32 0.7978846, %v2988_v42 }
 0x397   : > { %v2957_v59 = vmul.f32 %v2941_v37, %v2924_v45  ;;  %3454 = vtanh.f32 %v3004_v28  ;;  %v3141_v55 = vpop.f32.mrf.mxu1 }
 0x398   : > { %v3142_v13 = vadd.f32 %v6233_v60, %v3141_v55 }
 0x399   : > { %v2973_v63 = vmul.f32 0.044715, %v2957_v59 }
 0x39a   : > { %3179 = vst.msk [vmem:[%s6240_s10 + $0x10] sm:$0xff] %vm3176_vm1, %v3142_v13 }
 0x39b   : > { %v2989_v56 = vadd.f32 %v2973_v63, %v2924_v45 }
 0x39d   : > { %v3005_v31 = vmul.f32 0.7978846, %v2989_v56  ;;  %v3455_v43 = vpop.eup %3454 }
 0x39e   : > { %v3036_v0 = vadd.f32 1.0, %v3455_v43 }
 0x39f   : > { %3456 = vtanh.f32 %v3005_v31  ;;  %v3143_v7 = vpop.f32.mrf.mxu1 }
 0x3a0   : > { %v3052_v16 = vmul.f32 0.5, %v3036_v0  ;;  %v3144_v8 = vadd.f32 %v6233_v60, %v3143_v7 }
 0x3a1   : > { %v3161_v46 = vpop.f32.mrf.mxu3 }
 0x3a2   : > { %v3068_v4 = vmul.f32 %v3052_v16, %v2922_v35  ;;  %3180 = vst.msk [vmem:[%s6240_s10 + $0x18] sm:$0xff] %vm3176_vm1, %v3144_v8  ;;  %v3162_v49 = vadd.f32 %v6233_v60, %v3161_v46 }
 0x3a4   : > { %3187 = vst.msk [vmem:[%s6240_s10 + $0x50] sm:$0xff] %vm3176_vm1, %v3162_v49 }
 0x3a5   : > { %v3457_v17 = vpop.eup %3456 }
 0x3a6   : > { %v3037_v41 = vadd.f32 1.0, %v3457_v17 }
 0x3a7   : > { %v3146_v58 = vpop.f32.mrf.mxu1 }
 0x3a8   : > { %v3053_v61 = vmul.f32 0.5, %v3037_v41  ;;  %v3147_v15 = vadd.f32 %v6233_v60, %v3146_v58 }
 0x3a9   : > { %v3163_v20 = vpop.f32.mrf.mxu3 }
 0x3aa   : > { %v3069_v48 = vmul.f32 %v3053_v61, %v2924_v45  ;;  %3181 = vst.msk [vmem:[%s6240_s10 + $0x20] sm:$0xff] %vm3176_vm1, %v3147_v15  ;;  %v3164_v22 = vadd.f32 %v6233_v60, %v3163_v20 }
 0x3ac   : > { %v3077_v39 = vpack.c.bf16 %v3069_v48, %v3068_v4  ;;  %3188 = vst.msk [vmem:[%s6240_s10 + $0x58] sm:$0xff] %vm3176_vm1, %v3164_v22 }
 0x3ae   : > { %3170 = vmatmul.bf16.gmra.mxu3 %v3077_v39 }
 0x3af   : > { %v3148_v57 = vpop.f32.mrf.mxu1 }
 0x3b0   : > { %v3149_v52 = vadd.f32 %v6233_v60, %v3148_v57 }
 0x3b2   : > { %3182 = vst.msk [vmem:[%s6240_s10 + $0x28] sm:$0xff] %vm3176_vm1, %v3149_v52 }
 0x3cd   : > { %v3166_v29 = vpop.f32.mrf.mxu3 }
 0x3ce   : > { %v3167_v30 = vadd.f32 %v6233_v60, %v3166_v29 }
 0x3d0   : > { %3189 = vst.msk [vmem:[%s6240_s10 + $0x60] sm:$0xff] %vm3176_vm1, %v3167_v30 }
 0x3d5   : > { %v3168_v54 = vpop.f32.mrf.mxu3 }
 0x3d6   : > { %v3169_v5 = vadd.f32 %v6233_v60, %v3168_v54 }
 0x3d8   : > { %3190 = vst.msk [vmem:[%s6240_s10 + $0x68] sm:$0xff] %vm3176_vm1, %v3169_v5 }
 0x3e3   : > { %v3151_v1 = vpop.f32.mrf.mxu1 }
 0x3e4   : > { %v3152_v23 = vadd.f32 %v6233_v60, %v3151_v1 }
 0x3e6   : > { %3183 = vst.msk [vmem:[%s6240_s10 + $0x30] sm:$0xff] %vm3176_vm1, %v3152_v23 }
 0x3eb   : > { %v3153_v24 = vpop.f32.mrf.mxu1 }
 0x3ec   : > { %v3154_v2 = vadd.f32 %v6233_v60, %v3153_v24 }
 0x3ee   : > { %3184 = vst.msk [vmem:[%s6240_s10 + $0x38] sm:$0xff] %vm3176_vm1, %v3154_v2 }
 0x431   : > { %v3171_v35 = vpop.f32.mrf.mxu3 }
 0x432   : > { %v3172_v38 = vadd.f32 %v6233_v60, %v3171_v35 }
 0x434   : > { %3191 = vst.msk [vmem:[%s6240_s10 + $0x70] sm:$0xff] %vm3176_vm1, %v3172_v38 }
 0x439   : > { %v3173_v19 = vpop.f32.mrf.mxu3 }
 0x43a   : > { %v3174_v34 = vadd.f32 %v6233_v60, %v3173_v19 }
 0x43c   : > { %3192 = vst.msk [vmem:[%s6240_s10 + $0x78] sm:$0xff] %vm3176_vm1, %v3174_v34 }
 0x43d PF: > { %s13_s12 = sadd.s32 1, %s3464_s12  }
 0x43e   : > { %p10_p4 = scmp.ge.s32.totalorder %s13_s12, 4  }
 0x440   :  { %12 = sbr.rel (!%p10_p4) target bundleno = 1 (0x1), region = 62 }

</bundles_post_ra>
